<compile_context>
chip_gen: v6e
topology: v6e:2x2x1
jax: 0.10.0
libtpu: 0.0.40
codegen_flags: <defaults>
</compile_context>

<pallas_src>
import functools

import jax
import jax.numpy as jnp
from jax.experimental import pallas as pl
from jax.experimental.pallas import tpu as pltpu


# ---------------------------------------------------------------------------
# Kernel helpers
# ---------------------------------------------------------------------------
def _gru_gates(gi, gh, h_prev, bhh_n_b, H):
    """One GRU cell update from fused pre-activations.

    gi: (B, 3H) input-side pre-activations (b_ih for all gates and b_hh for r,z
        already folded in), gate order r|z|n along the last axis.
    gh: (B, 3H) hidden-side pre-activations h_prev @ Whh_all (no bias).
    bhh_n_b: (B, H) pre-broadcast hidden bias of the n gate (stays inside r*(.)).
    """
    r = jax.nn.sigmoid(gi[:, 0:H] + gh[:, 0:H])
    z = jax.nn.sigmoid(gi[:, H:2 * H] + gh[:, H:2 * H])
    n = jnp.tanh(gi[:, 2 * H:3 * H] + r * (gh[:, 2 * H:3 * H] + bhh_n_b))
    return (1.0 - z) * n + z * h_prev


def gru2_linear_kernel(T_BLK, H, B,
                       x_ref, h_init_ref,
                       wih0_ref, bi0_ref,
                       whhblk_ref, bhh0n_ref,
                       wih1_ref, bi1_ref, bhh1n_ref,
                       wout_ref, bout_ref,
                       logits_ref, hfin_ref):
    tb = pl.program_id(0)

    # hfin (constant output block index => VMEM-resident across the grid) is the
    # hidden-state carry. Initialize it from h_init on the first block.
    @pl.when(tb == 0)
    def _():
        hfin_ref[...] = h_init_ref[...]

    h0 = hfin_ref[0]                      # (B, H)
    h1 = hfin_ref[1]                      # (B, H)

    # Resident weight loads hoisted out of the unrolled time loop.
    whh_blk = whhblk_ref[...]             # (2H, 6H) block-diagonal
    wih1 = wih1_ref[...]                  # (H, 3H)

    # Hoisted bias broadcasts (JAX does not CSE broadcast_in_dim in a loop).
    bi1_b = jnp.broadcast_to(bi1_ref[...], (B, 3 * H))
    bhh0n_b = jnp.broadcast_to(bhh0n_ref[...], (B, H))
    bhh1n_b = jnp.broadcast_to(bhh1n_ref[...], (B, H))

    # Layer-0 input projection: ONE 2D matmul per block (off the recurrence).
    # x_ref is the (T_BLK*B, input_size) slab for this time block.
    gi0_all = (jnp.dot(x_ref[...], wih0_ref[...],
                       preferred_element_type=jnp.float32)
               + bi0_ref[...])                                   # (T_BLK*B, 3H)

    # Static (fully unrolled) loop over the T_BLK timesteps of this block.
    # TODO(synk): for large T_BLK*H switch to lax.fori_loop(..., unroll=k) to
    # bound vreg live ranges (spill regime); unnecessary at these demo shapes.
    rows = []
    for i in range(T_BLK):
        # Fused hidden-side matmul for BOTH layers (block-diagonal weights);
        # legal because gh0/gh1 depend only on previous-step h0/h1.
        gh = jnp.dot(jnp.concatenate([h0, h1], axis=1), whh_blk,
                     preferred_element_type=jnp.float32)          # (B, 6H)
        gh0 = gh[:, 0:3 * H]
        gh1 = gh[:, 3 * H:6 * H]

        gi0 = gi0_all[i * B:(i + 1) * B, :]                       # (B, 3H)
        h0 = _gru_gates(gi0, gh0, h0, bhh0n_b, H)

        gi1 = jnp.dot(h0, wih1, preferred_element_type=jnp.float32) + bi1_b
        h1 = _gru_gates(gi1, gh1, h1, bhh1n_b, H)

        rows.append(h1[0:1, :])           # rnn_out[0] row for this timestep

    # Persist the carry for the next block (also the final-hidden output).
    hfin_ref[0] = h0
    hfin_ref[1] = h1

    # One lane-dense Linear per block: (T_BLK, H) @ (H, 128k) + bias.
    h1b0 = jnp.concatenate(rows, axis=0)                          # (T_BLK, H)
    logits_ref[...] = (jnp.dot(h1b0, wout_ref[...],
                               preferred_element_type=jnp.float32)
                       + bout_ref[...])


# ---------------------------------------------------------------------------
# Wrapper
# ---------------------------------------------------------------------------
def model_forward(x, params, hidden=None, t_blk=None):
    """x: (batch, seq, input_size) f32 (PyTorch batch_first layout).

    Returns (out, rnn_hidden) like the PyTorch module:
      out: (seq, input_size) logits for batch element 0 (== self.out(rnn_out[0]))
      rnn_hidden: (2, batch, hidden_size) final hidden states of both layers.
    """
    batch, seq, input_size = x.shape
    H = params["bhh0n"].shape[1]
    out_pad = params["wout_pad"].shape[1]     # input_size padded to 128 lanes

    if t_blk is None:
        t_blk = seq
        for cand in (32, 16, 8):
            if seq % cand == 0 and (cand * batch) % 8 == 0:
                t_blk = cand
                break
    assert seq % t_blk == 0, "seq must be divisible by the time block"
    nb = seq // t_blk

    # (batch, seq, in) -> (seq, batch, in) -> (seq*batch, in): each time block is
    # a contiguous (t_blk*batch, in) row range, so the kernel sees a 2D slab.
    x_flat = (jnp.transpose(x, (1, 0, 2))
              .astype(jnp.float32)
              .reshape(seq * batch, input_size))

    if hidden is None:
        hidden = jnp.zeros((2, batch, H), jnp.float32)
    hidden = hidden.astype(jnp.float32)

    def const_spec(shape):
        n = len(shape)
        return pl.BlockSpec(shape, lambda tb, _n=n: (0,) * _n)

    weight_args = (params["wih0"], params["bi0"],
                   params["whh_blk"], params["bhh0n"],
                   params["wih1"], params["bi1"], params["bhh1n"],
                   params["wout_pad"], params["bout_pad"])

    in_specs = [
        pl.BlockSpec((t_blk * batch, input_size), lambda tb: (tb, 0)),   # x slab
        const_spec((2, batch, H)),                                       # h_init
    ] + [const_spec(w.shape) for w in weight_args]

    out_shape = (
        jax.ShapeDtypeStruct((seq, out_pad), jnp.float32),
        jax.ShapeDtypeStruct((2, batch, H), jnp.float32),
    )
    out_specs = (
        pl.BlockSpec((t_blk, out_pad), lambda tb: (tb, 0)),      # lane-dense logits
        pl.BlockSpec((2, batch, H), lambda tb: (0, 0, 0)),       # hidden carry/out
    )

    kernel = functools.partial(gru2_linear_kernel, t_blk, H, batch)

    # TODO(synk): for large H on v7x (64 MiB VMEM), store weights in bf16 (keep
    # f32 accumulation), re-derive t_blk / vmem budget, and consider pipelining
    # layer 0 / layer 1 across the two TensorCores; not worthwhile at demo shapes.
    logits_pad, h_fin = pl.pallas_call(
        kernel,
        out_shape=out_shape,
        grid=(nb,),
        in_specs=in_specs,
        out_specs=out_specs,
        compiler_params=pltpu.CompilerParams(
            dimension_semantics=("arbitrary",),
            vmem_limit_bytes=32 * 1024 * 1024,
        ),
    )(x_flat, hidden, *weight_args)

    return logits_pad[:, :input_size], h_fin


# ---------------------------------------------------------------------------
# Deterministic parameter init (nn.GRU / nn.Linear shapes & init range)
# ---------------------------------------------------------------------------
def init_params(key, input_size, hidden_size):
    H = hidden_size
    k = 1.0 / jnp.sqrt(jnp.float32(H))
    keys = jax.random.split(key, 10)

    def u(kk, shape):
        return jax.random.uniform(kk, shape, jnp.float32, -k, k)

    # PyTorch-shaped parameters (gate order r,z,n stacked along rows).
    pt = dict(
        w_ih_l0=u(keys[0], (3 * H, input_size)),
        w_hh_l0=u(keys[1], (3 * H, H)),
        b_ih_l0=u(keys[2], (3 * H,)),
        b_hh_l0=u(keys[3], (3 * H,)),
        w_ih_l1=u(keys[4], (3 * H, H)),
        w_hh_l1=u(keys[5], (3 * H, H)),
        b_ih_l1=u(keys[6], (3 * H,)),
        b_hh_l1=u(keys[7], (3 * H,)),
        w_out=u(keys[8], (input_size, H)),
        b_out=u(keys[9], (input_size,)),
    )

    def fold_bias(b_ih, b_hh):
        # Fold b_hh into b_ih for the r and z gates; keep b_hh_n separate
        # (it lives inside the r * (h @ Whh_n + b_hh_n) term).
        folded = b_ih + jnp.concatenate([b_hh[:2 * H], jnp.zeros((H,), jnp.float32)])
        return folded.reshape(1, 3 * H), b_hh[2 * H:].reshape(1, H)

    bi0, bhh0n = fold_bias(pt["b_ih_l0"], pt["b_hh_l0"])
    bi1, bhh1n = fold_bias(pt["b_ih_l1"], pt["b_hh_l1"])

    # Block-diagonal fused hidden-side weight: [h0|h1] @ whh_blk == [gh0 | gh1].
    whh_blk = jnp.zeros((2 * H, 6 * H), jnp.float32)
    whh_blk = whh_blk.at[:H, :3 * H].set(pt["w_hh_l0"].T)
    whh_blk = whh_blk.at[H:, 3 * H:].set(pt["w_hh_l1"].T)

    # Lane-dense output projection: pad the output dim up to a multiple of 128.
    out_pad = ((input_size + 127) // 128) * 128
    wout_pad = jnp.zeros((H, out_pad), jnp.float32).at[:, :input_size].set(pt["w_out"].T)
    bout_pad = jnp.zeros((1, out_pad), jnp.float32).at[:, :input_size].set(pt["b_out"])

    # TODO(synk): for real sizes pick H as a multiple of 128 (and pad batch to 8)
    # so the r|z|n gate slices land on vreg lane/sublane boundaries.
    kernel_params = dict(
        wih0=pt["w_ih_l0"].T,        # (in, 3H)   columns ordered r|z|n
        bi0=bi0, bhh0n=bhh0n,
        whh_blk=whh_blk,             # (2H, 6H)   blockdiag(whh0, whh1)
        wih1=pt["w_ih_l1"].T,        # (H, 3H)
        bi1=bi1, bhh1n=bhh1n,
        wout_pad=wout_pad,           # (H, 128k)
        bout_pad=bout_pad,           # (1, 128k)
    )
    return pt, kernel_params


# ---------------------------------------------------------------------------
# Pure-JAX reference (mirrors torch.nn.GRU semantics) for a correctness check
# ---------------------------------------------------------------------------
def ref_forward(x, pt, hidden=None):
    batch, seq, input_size = x.shape
    H = pt["w_hh_l0"].shape[1]
    if hidden is None:
        hidden = jnp.zeros((2, batch, H), jnp.float32)

    def cell(x_t, h, w_ih, w_hh, b_ih, b_hh):
        gi = x_t @ w_ih.T + b_ih
        gh = h @ w_hh.T + b_hh
        i_r, i_z, i_n = jnp.split(gi, 3, axis=-1)
        h_r, h_z, h_n = jnp.split(gh, 3, axis=-1)
        r = jax.nn.sigmoid(i_r + h_r)
        z = jax.nn.sigmoid(i_z + h_z)
        n = jnp.tanh(i_n + r * h_n)
        return (1.0 - z) * n + z * h

    def step(carry, x_t):
        h0, h1 = carry
        h0 = cell(x_t, h0, pt["w_ih_l0"], pt["w_hh_l0"], pt["b_ih_l0"], pt["b_hh_l0"])
        h1 = cell(h0, h1, pt["w_ih_l1"], pt["w_hh_l1"], pt["b_ih_l1"], pt["b_hh_l1"])
        return (h0, h1), h1

    x_tm = jnp.transpose(x, (1, 0, 2))
    (h0_f, h1_f), h1_all = jax.lax.scan(step, (hidden[0], hidden[1]), x_tm)
    rnn_out_b0 = h1_all[:, 0, :]                       # (seq, H)  == rnn_out[0]
    out = rnn_out_b0 @ pt["w_out"].T + pt["b_out"]     # (seq, input_size)
    return out, jnp.stack([h0_f, h1_f])


# ---------------------------------------------------------------------------
if __name__ == "__main__":
    jax.config.update("jax_default_matmul_precision", "highest")

    batch, seq, input_size, hidden_size = 2, 8, 16, 32

    key = jax.random.PRNGKey(0)
    k_x, k_p = jax.random.split(key)
    x = jax.random.normal(k_x, (batch, seq, input_size), jnp.float32)
    pt_params, kernel_params = init_params(k_p, input_size, hidden_size)

    out, rnn_hidden = model_forward(x, kernel_params)
    out = jax.block_until_ready(out)
    rnn_hidden = jax.block_until_ready(rnn_hidden)

    ref_out, ref_hidden = ref_forward(x, pt_params)
    assert out.shape == (seq, input_size)
    assert rnn_hidden.shape == (2, batch, hidden_size)
    assert jnp.allclose(out, ref_out, atol=1e-3, rtol=1e-3), "logits mismatch"
    assert jnp.allclose(rnn_hidden, ref_hidden, atol=1e-3, rtol=1e-3), "hidden mismatch"

    print("KERNEL_OK")
</pallas_src>

<mosaic_0001>
module attributes {stable_mosaic.version = 11 : i64} {
  func.func @gru2_linear_kernel(%arg0: i32, %arg1: memref<16x16xf32, #tpu.memory_space<vmem>>, %arg2: memref<2x2x32xf32, #tpu.memory_space<vmem>>, %arg3: memref<16x96xf32, #tpu.memory_space<vmem>>, %arg4: memref<1x96xf32, #tpu.memory_space<vmem>>, %arg5: memref<64x192xf32, #tpu.memory_space<vmem>>, %arg6: memref<1x32xf32, #tpu.memory_space<vmem>>, %arg7: memref<32x96xf32, #tpu.memory_space<vmem>>, %arg8: memref<1x96xf32, #tpu.memory_space<vmem>>, %arg9: memref<1x32xf32, #tpu.memory_space<vmem>>, %arg10: memref<32x128xf32, #tpu.memory_space<vmem>>, %arg11: memref<1x128xf32, #tpu.memory_space<vmem>>, %arg12: memref<8x128xf32, #tpu.memory_space<vmem>>, %arg13: memref<2x2x32xf32, #tpu.memory_space<vmem>>) attributes {dimension_semantics = [#tpu.dimension_semantics<arbitrary>], iteration_bounds = array<i64: 1>, scalar_prefetch = 0 : i64, scratch_operands = 0 : i64, tpu.core_type = #tpu.core_type<tc>, window_params = [{transform_indices = @transform_0, window_bounds = array<i64: 16, 16>}, {pipeline_mode = #tpu.pipeline_mode<synchronous>, transform_indices = @transform_1, window_bounds = array<i64: 2, 2, 32>}, {pipeline_mode = #tpu.pipeline_mode<synchronous>, transform_indices = @transform_2, window_bounds = array<i64: 16, 96>}, {pipeline_mode = #tpu.pipeline_mode<synchronous>, transform_indices = @transform_3, window_bounds = array<i64: 1, 96>}, {pipeline_mode = #tpu.pipeline_mode<synchronous>, transform_indices = @transform_4, window_bounds = array<i64: 64, 192>}, {pipeline_mode = #tpu.pipeline_mode<synchronous>, transform_indices = @transform_5, window_bounds = array<i64: 1, 32>}, {pipeline_mode = #tpu.pipeline_mode<synchronous>, transform_indices = @transform_6, window_bounds = array<i64: 32, 96>}, {pipeline_mode = #tpu.pipeline_mode<synchronous>, transform_indices = @transform_7, window_bounds = array<i64: 1, 96>}, {pipeline_mode = #tpu.pipeline_mode<synchronous>, transform_indices = @transform_8, window_bounds = array<i64: 1, 32>}, {pipeline_mode = #tpu.pipeline_mode<synchronous>, transform_indices = @transform_9, window_bounds = array<i64: 32, 128>}, {pipeline_mode = #tpu.pipeline_mode<synchronous>, transform_indices = @transform_10, window_bounds = array<i64: 1, 128>}, {transform_indices = @transform_11, window_bounds = array<i64: 8, 128>}, {pipeline_mode = #tpu.pipeline_mode<synchronous>, transform_indices = @transform_12, window_bounds = array<i64: 2, 2, 32>}]} {
    %c0_i32 = arith.constant 0 : i32
    %0 = arith.cmpi eq, %arg0, %c0_i32 : i32
    %1 = arith.extui %0 : i1 to i32
    %c0_i32_0 = arith.constant 0 : i32
    %2 = arith.cmpi ne, %1, %c0_i32_0 : i32
    scf.if %2 {
      %c0_98 = arith.constant 0 : index
      %c0_99 = arith.constant 0 : index
      %c0_100 = arith.constant 0 : index
      %533 = vector.load %arg2[%c0_98, %c0_99, %c0_100] : memref<2x2x32xf32, #tpu.memory_space<vmem>>, vector<2x2x32xf32>
      %c0_101 = arith.constant 0 : index
      %c0_102 = arith.constant 0 : index
      %c0_103 = arith.constant 0 : index
      %534 = vector.load %arg13[%c0_101, %c0_102, %c0_103] : memref<2x2x32xf32, #tpu.memory_space<vmem>>, vector<2x2x32xf32>
      tpu.vector_store %arg13[%c0_101, %c0_102, %c0_103], %533 {strides = array<i32>} : memref<2x2x32xf32, #tpu.memory_space<vmem>>, vector<2x2x32xf32>,
    } else {
    }
    %c0 = arith.constant 0 : index
    %c0_1 = arith.constant 0 : index
    %c0_2 = arith.constant 0 : index
    %3 = vector.load %arg13[%c0, %c0_1, %c0_2] : memref<2x2x32xf32, #tpu.memory_space<vmem>>, vector<1x2x32xf32>
    %4 = vector.shape_cast %3 : vector<1x2x32xf32> to vector<2x32xf32>
    %c1 = arith.constant 1 : index
    %c0_3 = arith.constant 0 : index
    %c0_4 = arith.constant 0 : index
    %5 = vector.load %arg13[%c1, %c0_3, %c0_4] : memref<2x2x32xf32, #tpu.memory_space<vmem>>, vector<1x2x32xf32>
    %6 = vector.shape_cast %5 : vector<1x2x32xf32> to vector<2x32xf32>
    %c0_5 = arith.constant 0 : index
    %c0_6 = arith.constant 0 : index
    %7 = vector.load %arg5[%c0_5, %c0_6] : memref<64x192xf32, #tpu.memory_space<vmem>>, vector<64x192xf32>
    %c0_7 = arith.constant 0 : index
    %c0_8 = arith.constant 0 : index
    %8 = vector.load %arg7[%c0_7, %c0_8] : memref<32x96xf32, #tpu.memory_space<vmem>>, vector<32x96xf32>
    %c0_9 = arith.constant 0 : index
    %c0_10 = arith.constant 0 : index
    %9 = vector.load %arg8[%c0_9, %c0_10] : memref<1x96xf32, #tpu.memory_space<vmem>>, vector<1x96xf32>
    %10 = vector.shape_cast %9 : vector<1x96xf32> to vector<1x96xf32>
    %11 = vector.broadcast %10 : vector<1x96xf32> to vector<2x96xf32>
    %c0_11 = arith.constant 0 : index
    %c0_12 = arith.constant 0 : index
    %12 = vector.load %arg6[%c0_11, %c0_12] : memref<1x32xf32, #tpu.memory_space<vmem>>, vector<1x32xf32>
    %13 = vector.shape_cast %12 : vector<1x32xf32> to vector<1x32xf32>
    %14 = vector.broadcast %13 : vector<1x32xf32> to vector<2x32xf32>
    %c0_13 = arith.constant 0 : index
    %c0_14 = arith.constant 0 : index
    %15 = vector.load %arg9[%c0_13, %c0_14] : memref<1x32xf32, #tpu.memory_space<vmem>>, vector<1x32xf32>
    %16 = vector.shape_cast %15 : vector<1x32xf32> to vector<1x32xf32>
    %17 = vector.broadcast %16 : vector<1x32xf32> to vector<2x32xf32>
    %c0_15 = arith.constant 0 : index
    %c0_16 = arith.constant 0 : index
    %18 = vector.load %arg1[%c0_15, %c0_16] : memref<16x16xf32, #tpu.memory_space<vmem>>, vector<16x16xf32>
    %c0_17 = arith.constant 0 : index
    %c0_18 = arith.constant 0 : index
    %19 = vector.load %arg3[%c0_17, %c0_18] : memref<16x96xf32, #tpu.memory_space<vmem>>, vector<16x96xf32>
    %cst = arith.constant dense<0.000000e+00> : vector<16x96xf32>
    %20 = tpu.matmul %18, %19, %cst {dimension_numbers = #tpu.dot_dimension_numbers<[1], [0], [0], [1], [0, 0, 1, 1], [], []>, precision = #tpu.contract_precision<fp32>} : vector<16x16xf32>, vector<16x96xf32>, vector<16x96xf32> -> vector<16x96xf32>
    %c0_19 = arith.constant 0 : index
    %c0_20 = arith.constant 0 : index
    %21 = vector.load %arg4[%c0_19, %c0_20] : memref<1x96xf32, #tpu.memory_space<vmem>>, vector<1x96xf32>
    %22 = vector.broadcast %21 : vector<1x96xf32> to vector<16x96xf32>
    %23 = arith.addf %20, %22 : vector<16x96xf32>
    %24 = tpu.concatenate %4, %6 in 1 : vector<2x32xf32>, vector<2x32xf32> -> vector<2x64xf32>
    %cst_21 = arith.constant dense<0.000000e+00> : vector<2x192xf32>
    %25 = tpu.matmul %24, %7, %cst_21 {dimension_numbers = #tpu.dot_dimension_numbers<[1], [0], [0], [1], [0, 0, 1, 1], [], []>, precision = #tpu.contract_precision<fp32>} : vector<2x64xf32>, vector<64x192xf32>, vector<2x192xf32> -> vector<2x192xf32>
    %26 = vector.extract_strided_slice %25 {offsets = [0, 0], sizes = [2, 96], strides = [1, 1]} : vector<2x192xf32> to vector<2x96xf32>
    %27 = vector.extract_strided_slice %25 {offsets = [0, 96], sizes = [2, 96], strides = [1, 1]} : vector<2x192xf32> to vector<2x96xf32>
    %28 = vector.extract_strided_slice %23 {offsets = [0, 0], sizes = [2, 96], strides = [1, 1]} : vector<16x96xf32> to vector<2x96xf32>
    %29 = vector.extract_strided_slice %28 {offsets = [0, 0], sizes = [2, 32], strides = [1, 1]} : vector<2x96xf32> to vector<2x32xf32>
    %30 = vector.extract_strided_slice %26 {offsets = [0, 0], sizes = [2, 32], strides = [1, 1]} : vector<2x96xf32> to vector<2x32xf32>
    %31 = arith.addf %29, %30 : vector<2x32xf32>
    %32 = arith.negf %31 : vector<2x32xf32>
    %33 = math.exp %32 : vector<2x32xf32>
    %cst_22 = arith.constant 1.000000e+00 : f32
    %34 = vector.broadcast %cst_22 : f32 to vector<2x32xf32>
    %35 = arith.addf %34, %33 : vector<2x32xf32>
    %36 = arith.divf %34, %35 : vector<2x32xf32>
    %37 = vector.extract_strided_slice %28 {offsets = [0, 32], sizes = [2, 32], strides = [1, 1]} : vector<2x96xf32> to vector<2x32xf32>
    %38 = vector.extract_strided_slice %26 {offsets = [0, 32], sizes = [2, 32], strides = [1, 1]} : vector<2x96xf32> to vector<2x32xf32>
    %39 = arith.addf %37, %38 : vector<2x32xf32>
    %40 = arith.negf %39 : vector<2x32xf32>
    %41 = math.exp %40 : vector<2x32xf32>
    %cst_23 = arith.constant 1.000000e+00 : f32
    %42 = vector.broadcast %cst_23 : f32 to vector<2x32xf32>
    %43 = arith.addf %42, %41 : vector<2x32xf32>
    %44 = arith.divf %42, %43 : vector<2x32xf32>
    %45 = vector.extract_strided_slice %28 {offsets = [0, 64], sizes = [2, 32], strides = [1, 1]} : vector<2x96xf32> to vector<2x32xf32>
    %46 = vector.extract_strided_slice %26 {offsets = [0, 64], sizes = [2, 32], strides = [1, 1]} : vector<2x96xf32> to vector<2x32xf32>
    %47 = arith.addf %46, %14 : vector<2x32xf32>
    %48 = arith.mulf %36, %47 : vector<2x32xf32>
    %49 = arith.addf %45, %48 : vector<2x32xf32>
    %50 = math.tanh %49 : vector<2x32xf32>
    %cst_24 = arith.constant 1.000000e+00 : f32
    %51 = vector.broadcast %cst_24 : f32 to vector<2x32xf32>
    %52 = arith.subf %51, %44 : vector<2x32xf32>
    %53 = arith.mulf %52, %50 : vector<2x32xf32>
    %54 = arith.mulf %44, %4 : vector<2x32xf32>
    %55 = arith.addf %53, %54 : vector<2x32xf32>
    %cst_25 = arith.constant dense<0.000000e+00> : vector<2x96xf32>
    %56 = tpu.matmul %55, %8, %cst_25 {dimension_numbers = #tpu.dot_dimension_numbers<[1], [0], [0], [1], [0, 0, 1, 1], [], []>, precision = #tpu.contract_precision<fp32>} : vector<2x32xf32>, vector<32x96xf32>, vector<2x96xf32> -> vector<2x96xf32>
    %57 = arith.addf %56, %11 : vector<2x96xf32>
    %58 = vector.extract_strided_slice %57 {offsets = [0, 0], sizes = [2, 32], strides = [1, 1]} : vector<2x96xf32> to vector<2x32xf32>
    %59 = vector.extract_strided_slice %27 {offsets = [0, 0], sizes = [2, 32], strides = [1, 1]} : vector<2x96xf32> to vector<2x32xf32>
    %60 = arith.addf %58, %59 : vector<2x32xf32>
    %61 = arith.negf %60 : vector<2x32xf32>
    %62 = math.exp %61 : vector<2x32xf32>
    %cst_26 = arith.constant 1.000000e+00 : f32
    %63 = vector.broadcast %cst_26 : f32 to vector<2x32xf32>
    %64 = arith.addf %63, %62 : vector<2x32xf32>
    %65 = arith.divf %63, %64 : vector<2x32xf32>
    %66 = vector.extract_strided_slice %57 {offsets = [0, 32], sizes = [2, 32], strides = [1, 1]} : vector<2x96xf32> to vector<2x32xf32>
    %67 = vector.extract_strided_slice %27 {offsets = [0, 32], sizes = [2, 32], strides = [1, 1]} : vector<2x96xf32> to vector<2x32xf32>
    %68 = arith.addf %66, %67 : vector<2x32xf32>
    %69 = arith.negf %68 : vector<2x32xf32>
    %70 = math.exp %69 : vector<2x32xf32>
    %cst_27 = arith.constant 1.000000e+00 : f32
    %71 = vector.broadcast %cst_27 : f32 to vector<2x32xf32>
    %72 = arith.addf %71, %70 : vector<2x32xf32>
    %73 = arith.divf %71, %72 : vector<2x32xf32>
    %74 = vector.extract_strided_slice %57 {offsets = [0, 64], sizes = [2, 32], strides = [1, 1]} : vector<2x96xf32> to vector<2x32xf32>
    %75 = vector.extract_strided_slice %27 {offsets = [0, 64], sizes = [2, 32], strides = [1, 1]} : vector<2x96xf32> to vector<2x32xf32>
    %76 = arith.addf %75, %17 : vector<2x32xf32>
    %77 = arith.mulf %65, %76 : vector<2x32xf32>
    %78 = arith.addf %74, %77 : vector<2x32xf32>
    %79 = math.tanh %78 : vector<2x32xf32>
    %cst_28 = arith.constant 1.000000e+00 : f32
    %80 = vector.broadcast %cst_28 : f32 to vector<2x32xf32>
    %81 = arith.subf %80, %73 : vector<2x32xf32>
    %82 = arith.mulf %81, %79 : vector<2x32xf32>
    %83 = arith.mulf %73, %6 : vector<2x32xf32>
    %84 = arith.addf %82, %83 : vector<2x32xf32>
    %85 = vector.extract_strided_slice %84 {offsets = [0, 0], sizes = [1, 32], strides = [1, 1]} : vector<2x32xf32> to vector<1x32xf32>
    %86 = tpu.concatenate %55, %84 in 1 : vector<2x32xf32>, vector<2x32xf32> -> vector<2x64xf32>
    %cst_29 = arith.constant dense<0.000000e+00> : vector<2x192xf32>
    %87 = tpu.matmul %86, %7, %cst_29 {dimension_numbers = #tpu.dot_dimension_numbers<[1], [0], [0], [1], [0, 0, 1, 1], [], []>, precision = #tpu.contract_precision<fp32>} : vector<2x64xf32>, vector<64x192xf32>, vector<2x192xf32> -> vector<2x192xf32>
    %88 = vector.extract_strided_slice %87 {offsets = [0, 0], sizes = [2, 96], strides = [1, 1]} : vector<2x192xf32> to vector<2x96xf32>
    %89 = vector.extract_strided_slice %87 {offsets = [0, 96], sizes = [2, 96], strides = [1, 1]} : vector<2x192xf32> to vector<2x96xf32>
    %90 = vector.extract_strided_slice %23 {offsets = [2, 0], sizes = [2, 96], strides = [1, 1]} : vector<16x96xf32> to vector<2x96xf32>
    %91 = vector.extract_strided_slice %90 {offsets = [0, 0], sizes = [2, 32], strides = [1, 1]} : vector<2x96xf32> to vector<2x32xf32>
    %92 = vector.extract_strided_slice %88 {offsets = [0, 0], sizes = [2, 32], strides = [1, 1]} : vector<2x96xf32> to vector<2x32xf32>
    %93 = arith.addf %91, %92 : vector<2x32xf32>
    %94 = arith.negf %93 : vector<2x32xf32>
    %95 = math.exp %94 : vector<2x32xf32>
    %cst_30 = arith.constant 1.000000e+00 : f32
    %96 = vector.broadcast %cst_30 : f32 to vector<2x32xf32>
    %97 = arith.addf %96, %95 : vector<2x32xf32>
    %98 = arith.divf %96, %97 : vector<2x32xf32>
    %99 = vector.extract_strided_slice %90 {offsets = [0, 32], sizes = [2, 32], strides = [1, 1]} : vector<2x96xf32> to vector<2x32xf32>
    %100 = vector.extract_strided_slice %88 {offsets = [0, 32], sizes = [2, 32], strides = [1, 1]} : vector<2x96xf32> to vector<2x32xf32>
    %101 = arith.addf %99, %100 : vector<2x32xf32>
    %102 = arith.negf %101 : vector<2x32xf32>
    %103 = math.exp %102 : vector<2x32xf32>
    %cst_31 = arith.constant 1.000000e+00 : f32
    %104 = vector.broadcast %cst_31 : f32 to vector<2x32xf32>
    %105 = arith.addf %104, %103 : vector<2x32xf32>
    %106 = arith.divf %104, %105 : vector<2x32xf32>
    %107 = vector.extract_strided_slice %90 {offsets = [0, 64], sizes = [2, 32], strides = [1, 1]} : vector<2x96xf32> to vector<2x32xf32>
    %108 = vector.extract_strided_slice %88 {offsets = [0, 64], sizes = [2, 32], strides = [1, 1]} : vector<2x96xf32> to vector<2x32xf32>
    %109 = arith.addf %108, %14 : vector<2x32xf32>
    %110 = arith.mulf %98, %109 : vector<2x32xf32>
    %111 = arith.addf %107, %110 : vector<2x32xf32>
    %112 = math.tanh %111 : vector<2x32xf32>
    %cst_32 = arith.constant 1.000000e+00 : f32
    %113 = vector.broadcast %cst_32 : f32 to vector<2x32xf32>
    %114 = arith.subf %113, %106 : vector<2x32xf32>
    %115 = arith.mulf %114, %112 : vector<2x32xf32>
    %116 = arith.mulf %106, %55 : vector<2x32xf32>
    %117 = arith.addf %115, %116 : vector<2x32xf32>
    %cst_33 = arith.constant dense<0.000000e+00> : vector<2x96xf32>
    %118 = tpu.matmul %117, %8, %cst_33 {dimension_numbers = #tpu.dot_dimension_numbers<[1], [0], [0], [1], [0, 0, 1, 1], [], []>, precision = #tpu.contract_precision<fp32>} : vector<2x32xf32>, vector<32x96xf32>, vector<2x96xf32> -> vector<2x96xf32>
    %119 = arith.addf %118, %11 : vector<2x96xf32>
    %120 = vector.extract_strided_slice %119 {offsets = [0, 0], sizes = [2, 32], strides = [1, 1]} : vector<2x96xf32> to vector<2x32xf32>
    %121 = vector.extract_strided_slice %89 {offsets = [0, 0], sizes = [2, 32], strides = [1, 1]} : vector<2x96xf32> to vector<2x32xf32>
    %122 = arith.addf %120, %121 : vector<2x32xf32>
    %123 = arith.negf %122 : vector<2x32xf32>
    %124 = math.exp %123 : vector<2x32xf32>
    %cst_34 = arith.constant 1.000000e+00 : f32
    %125 = vector.broadcast %cst_34 : f32 to vector<2x32xf32>
    %126 = arith.addf %125, %124 : vector<2x32xf32>
    %127 = arith.divf %125, %126 : vector<2x32xf32>
    %128 = vector.extract_strided_slice %119 {offsets = [0, 32], sizes = [2, 32], strides = [1, 1]} : vector<2x96xf32> to vector<2x32xf32>
    %129 = vector.extract_strided_slice %89 {offsets = [0, 32], sizes = [2, 32], strides = [1, 1]} : vector<2x96xf32> to vector<2x32xf32>
    %130 = arith.addf %128, %129 : vector<2x32xf32>
    %131 = arith.negf %130 : vector<2x32xf32>
    %132 = math.exp %131 : vector<2x32xf32>
    %cst_35 = arith.constant 1.000000e+00 : f32
    %133 = vector.broadcast %cst_35 : f32 to vector<2x32xf32>
    %134 = arith.addf %133, %132 : vector<2x32xf32>
    %135 = arith.divf %133, %134 : vector<2x32xf32>
    %136 = vector.extract_strided_slice %119 {offsets = [0, 64], sizes = [2, 32], strides = [1, 1]} : vector<2x96xf32> to vector<2x32xf32>
    %137 = vector.extract_strided_slice %89 {offsets = [0, 64], sizes = [2, 32], strides = [1, 1]} : vector<2x96xf32> to vector<2x32xf32>
    %138 = arith.addf %137, %17 : vector<2x32xf32>
    %139 = arith.mulf %127, %138 : vector<2x32xf32>
    %140 = arith.addf %136, %139 : vector<2x32xf32>
    %141 = math.tanh %140 : vector<2x32xf32>
    %cst_36 = arith.constant 1.000000e+00 : f32
    %142 = vector.broadcast %cst_36 : f32 to vector<2x32xf32>
    %143 = arith.subf %142, %135 : vector<2x32xf32>
    %144 = arith.mulf %143, %141 : vector<2x32xf32>
    %145 = arith.mulf %135, %84 : vector<2x32xf32>
    %146 = arith.addf %144, %145 : vector<2x32xf32>
    %147 = vector.extract_strided_slice %146 {offsets = [0, 0], sizes = [1, 32], strides = [1, 1]} : vector<2x32xf32> to vector<1x32xf32>
    %148 = tpu.concatenate %117, %146 in 1 : vector<2x32xf32>, vector<2x32xf32> -> vector<2x64xf32>
    %cst_37 = arith.constant dense<0.000000e+00> : vector<2x192xf32>
    %149 = tpu.matmul %148, %7, %cst_37 {dimension_numbers = #tpu.dot_dimension_numbers<[1], [0], [0], [1], [0, 0, 1, 1], [], []>, precision = #tpu.contract_precision<fp32>} : vector<2x64xf32>, vector<64x192xf32>, vector<2x192xf32> -> vector<2x192xf32>
    %150 = vector.extract_strided_slice %149 {offsets = [0, 0], sizes = [2, 96], strides = [1, 1]} : vector<2x192xf32> to vector<2x96xf32>
    %151 = vector.extract_strided_slice %149 {offsets = [0, 96], sizes = [2, 96], strides = [1, 1]} : vector<2x192xf32> to vector<2x96xf32>
    %152 = vector.extract_strided_slice %23 {offsets = [4, 0], sizes = [2, 96], strides = [1, 1]} : vector<16x96xf32> to vector<2x96xf32>
    %153 = vector.extract_strided_slice %152 {offsets = [0, 0], sizes = [2, 32], strides = [1, 1]} : vector<2x96xf32> to vector<2x32xf32>
    %154 = vector.extract_strided_slice %150 {offsets = [0, 0], sizes = [2, 32], strides = [1, 1]} : vector<2x96xf32> to vector<2x32xf32>
    %155 = arith.addf %153, %154 : vector<2x32xf32>
    %156 = arith.negf %155 : vector<2x32xf32>
    %157 = math.exp %156 : vector<2x32xf32>
    %cst_38 = arith.constant 1.000000e+00 : f32
    %158 = vector.broadcast %cst_38 : f32 to vector<2x32xf32>
    %159 = arith.addf %158, %157 : vector<2x32xf32>
    %160 = arith.divf %158, %159 : vector<2x32xf32>
    %161 = vector.extract_strided_slice %152 {offsets = [0, 32], sizes = [2, 32], strides = [1, 1]} : vector<2x96xf32> to vector<2x32xf32>
    %162 = vector.extract_strided_slice %150 {offsets = [0, 32], sizes = [2, 32], strides = [1, 1]} : vector<2x96xf32> to vector<2x32xf32>
    %163 = arith.addf %161, %162 : vector<2x32xf32>
    %164 = arith.negf %163 : vector<2x32xf32>
    %165 = math.exp %164 : vector<2x32xf32>
    %cst_39 = arith.constant 1.000000e+00 : f32
    %166 = vector.broadcast %cst_39 : f32 to vector<2x32xf32>
    %167 = arith.addf %166, %165 : vector<2x32xf32>
    %168 = arith.divf %166, %167 : vector<2x32xf32>
    %169 = vector.extract_strided_slice %152 {offsets = [0, 64], sizes = [2, 32], strides = [1, 1]} : vector<2x96xf32> to vector<2x32xf32>
    %170 = vector.extract_strided_slice %150 {offsets = [0, 64], sizes = [2, 32], strides = [1, 1]} : vector<2x96xf32> to vector<2x32xf32>
    %171 = arith.addf %170, %14 : vector<2x32xf32>
    %172 = arith.mulf %160, %171 : vector<2x32xf32>
    %173 = arith.addf %169, %172 : vector<2x32xf32>
    %174 = math.tanh %173 : vector<2x32xf32>
    %cst_40 = arith.constant 1.000000e+00 : f32
    %175 = vector.broadcast %cst_40 : f32 to vector<2x32xf32>
    %176 = arith.subf %175, %168 : vector<2x32xf32>
    %177 = arith.mulf %176, %174 : vector<2x32xf32>
    %178 = arith.mulf %168, %117 : vector<2x32xf32>
    %179 = arith.addf %177, %178 : vector<2x32xf32>
    %cst_41 = arith.constant dense<0.000000e+00> : vector<2x96xf32>
    %180 = tpu.matmul %179, %8, %cst_41 {dimension_numbers = #tpu.dot_dimension_numbers<[1], [0], [0], [1], [0, 0, 1, 1], [], []>, precision = #tpu.contract_precision<fp32>} : vector<2x32xf32>, vector<32x96xf32>, vector<2x96xf32> -> vector<2x96xf32>
    %181 = arith.addf %180, %11 : vector<2x96xf32>
    %182 = vector.extract_strided_slice %181 {offsets = [0, 0], sizes = [2, 32], strides = [1, 1]} : vector<2x96xf32> to vector<2x32xf32>
    %183 = vector.extract_strided_slice %151 {offsets = [0, 0], sizes = [2, 32], strides = [1, 1]} : vector<2x96xf32> to vector<2x32xf32>
    %184 = arith.addf %182, %183 : vector<2x32xf32>
    %185 = arith.negf %184 : vector<2x32xf32>
    %186 = math.exp %185 : vector<2x32xf32>
    %cst_42 = arith.constant 1.000000e+00 : f32
    %187 = vector.broadcast %cst_42 : f32 to vector<2x32xf32>
    %188 = arith.addf %187, %186 : vector<2x32xf32>
    %189 = arith.divf %187, %188 : vector<2x32xf32>
    %190 = vector.extract_strided_slice %181 {offsets = [0, 32], sizes = [2, 32], strides = [1, 1]} : vector<2x96xf32> to vector<2x32xf32>
    %191 = vector.extract_strided_slice %151 {offsets = [0, 32], sizes = [2, 32], strides = [1, 1]} : vector<2x96xf32> to vector<2x32xf32>
    %192 = arith.addf %190, %191 : vector<2x32xf32>
    %193 = arith.negf %192 : vector<2x32xf32>
    %194 = math.exp %193 : vector<2x32xf32>
    %cst_43 = arith.constant 1.000000e+00 : f32
    %195 = vector.broadcast %cst_43 : f32 to vector<2x32xf32>
    %196 = arith.addf %195, %194 : vector<2x32xf32>
    %197 = arith.divf %195, %196 : vector<2x32xf32>
    %198 = vector.extract_strided_slice %181 {offsets = [0, 64], sizes = [2, 32], strides = [1, 1]} : vector<2x96xf32> to vector<2x32xf32>
    %199 = vector.extract_strided_slice %151 {offsets = [0, 64], sizes = [2, 32], strides = [1, 1]} : vector<2x96xf32> to vector<2x32xf32>
    %200 = arith.addf %199, %17 : vector<2x32xf32>
    %201 = arith.mulf %189, %200 : vector<2x32xf32>
    %202 = arith.addf %198, %201 : vector<2x32xf32>
    %203 = math.tanh %202 : vector<2x32xf32>
    %cst_44 = arith.constant 1.000000e+00 : f32
    %204 = vector.broadcast %cst_44 : f32 to vector<2x32xf32>
    %205 = arith.subf %204, %197 : vector<2x32xf32>
    %206 = arith.mulf %205, %203 : vector<2x32xf32>
    %207 = arith.mulf %197, %146 : vector<2x32xf32>
    %208 = arith.addf %206, %207 : vector<2x32xf32>
    %209 = vector.extract_strided_slice %208 {offsets = [0, 0], sizes = [1, 32], strides = [1, 1]} : vector<2x32xf32> to vector<1x32xf32>
    %210 = tpu.concatenate %179, %208 in 1 : vector<2x32xf32>, vector<2x32xf32> -> vector<2x64xf32>
    %cst_45 = arith.constant dense<0.000000e+00> : vector<2x192xf32>
    %211 = tpu.matmul %210, %7, %cst_45 {dimension_numbers = #tpu.dot_dimension_numbers<[1], [0], [0], [1], [0, 0, 1, 1], [], []>, precision = #tpu.contract_precision<fp32>} : vector<2x64xf32>, vector<64x192xf32>, vector<2x192xf32> -> vector<2x192xf32>
    %212 = vector.extract_strided_slice %211 {offsets = [0, 0], sizes = [2, 96], strides = [1, 1]} : vector<2x192xf32> to vector<2x96xf32>
    %213 = vector.extract_strided_slice %211 {offsets = [0, 96], sizes = [2, 96], strides = [1, 1]} : vector<2x192xf32> to vector<2x96xf32>
    %214 = vector.extract_strided_slice %23 {offsets = [6, 0], sizes = [2, 96], strides = [1, 1]} : vector<16x96xf32> to vector<2x96xf32>
    %215 = vector.extract_strided_slice %214 {offsets = [0, 0], sizes = [2, 32], strides = [1, 1]} : vector<2x96xf32> to vector<2x32xf32>
    %216 = vector.extract_strided_slice %212 {offsets = [0, 0], sizes = [2, 32], strides = [1, 1]} : vector<2x96xf32> to vector<2x32xf32>
    %217 = arith.addf %215, %216 : vector<2x32xf32>
    %218 = arith.negf %217 : vector<2x32xf32>
    %219 = math.exp %218 : vector<2x32xf32>
    %cst_46 = arith.constant 1.000000e+00 : f32
    %220 = vector.broadcast %cst_46 : f32 to vector<2x32xf32>
    %221 = arith.addf %220, %219 : vector<2x32xf32>
    %222 = arith.divf %220, %221 : vector<2x32xf32>
    %223 = vector.extract_strided_slice %214 {offsets = [0, 32], sizes = [2, 32], strides = [1, 1]} : vector<2x96xf32> to vector<2x32xf32>
    %224 = vector.extract_strided_slice %212 {offsets = [0, 32], sizes = [2, 32], strides = [1, 1]} : vector<2x96xf32> to vector<2x32xf32>
    %225 = arith.addf %223, %224 : vector<2x32xf32>
    %226 = arith.negf %225 : vector<2x32xf32>
    %227 = math.exp %226 : vector<2x32xf32>
    %cst_47 = arith.constant 1.000000e+00 : f32
    %228 = vector.broadcast %cst_47 : f32 to vector<2x32xf32>
    %229 = arith.addf %228, %227 : vector<2x32xf32>
    %230 = arith.divf %228, %229 : vector<2x32xf32>
    %231 = vector.extract_strided_slice %214 {offsets = [0, 64], sizes = [2, 32], strides = [1, 1]} : vector<2x96xf32> to vector<2x32xf32>
    %232 = vector.extract_strided_slice %212 {offsets = [0, 64], sizes = [2, 32], strides = [1, 1]} : vector<2x96xf32> to vector<2x32xf32>
    %233 = arith.addf %232, %14 : vector<2x32xf32>
    %234 = arith.mulf %222, %233 : vector<2x32xf32>
    %235 = arith.addf %231, %234 : vector<2x32xf32>
    %236 = math.tanh %235 : vector<2x32xf32>
    %cst_48 = arith.constant 1.000000e+00 : f32
    %237 = vector.broadcast %cst_48 : f32 to vector<2x32xf32>
    %238 = arith.subf %237, %230 : vector<2x32xf32>
    %239 = arith.mulf %238, %236 : vector<2x32xf32>
    %240 = arith.mulf %230, %179 : vector<2x32xf32>
    %241 = arith.addf %239, %240 : vector<2x32xf32>
    %cst_49 = arith.constant dense<0.000000e+00> : vector<2x96xf32>
    %242 = tpu.matmul %241, %8, %cst_49 {dimension_numbers = #tpu.dot_dimension_numbers<[1], [0], [0], [1], [0, 0, 1, 1], [], []>, precision = #tpu.contract_precision<fp32>} : vector<2x32xf32>, vector<32x96xf32>, vector<2x96xf32> -> vector<2x96xf32>
    %243 = arith.addf %242, %11 : vector<2x96xf32>
    %244 = vector.extract_strided_slice %243 {offsets = [0, 0], sizes = [2, 32], strides = [1, 1]} : vector<2x96xf32> to vector<2x32xf32>
    %245 = vector.extract_strided_slice %213 {offsets = [0, 0], sizes = [2, 32], strides = [1, 1]} : vector<2x96xf32> to vector<2x32xf32>
    %246 = arith.addf %244, %245 : vector<2x32xf32>
    %247 = arith.negf %246 : vector<2x32xf32>
    %248 = math.exp %247 : vector<2x32xf32>
    %cst_50 = arith.constant 1.000000e+00 : f32
    %249 = vector.broadcast %cst_50 : f32 to vector<2x32xf32>
    %250 = arith.addf %249, %248 : vector<2x32xf32>
    %251 = arith.divf %249, %250 : vector<2x32xf32>
    %252 = vector.extract_strided_slice %243 {offsets = [0, 32], sizes = [2, 32], strides = [1, 1]} : vector<2x96xf32> to vector<2x32xf32>
    %253 = vector.extract_strided_slice %213 {offsets = [0, 32], sizes = [2, 32], strides = [1, 1]} : vector<2x96xf32> to vector<2x32xf32>
    %254 = arith.addf %252, %253 : vector<2x32xf32>
    %255 = arith.negf %254 : vector<2x32xf32>
    %256 = math.exp %255 : vector<2x32xf32>
    %cst_51 = arith.constant 1.000000e+00 : f32
    %257 = vector.broadcast %cst_51 : f32 to vector<2x32xf32>
    %258 = arith.addf %257, %256 : vector<2x32xf32>
    %259 = arith.divf %257, %258 : vector<2x32xf32>
    %260 = vector.extract_strided_slice %243 {offsets = [0, 64], sizes = [2, 32], strides = [1, 1]} : vector<2x96xf32> to vector<2x32xf32>
    %261 = vector.extract_strided_slice %213 {offsets = [0, 64], sizes = [2, 32], strides = [1, 1]} : vector<2x96xf32> to vector<2x32xf32>
    %262 = arith.addf %261, %17 : vector<2x32xf32>
    %263 = arith.mulf %251, %262 : vector<2x32xf32>
    %264 = arith.addf %260, %263 : vector<2x32xf32>
    %265 = math.tanh %264 : vector<2x32xf32>
    %cst_52 = arith.constant 1.000000e+00 : f32
    %266 = vector.broadcast %cst_52 : f32 to vector<2x32xf32>
    %267 = arith.subf %266, %259 : vector<2x32xf32>
    %268 = arith.mulf %267, %265 : vector<2x32xf32>
    %269 = arith.mulf %259, %208 : vector<2x32xf32>
    %270 = arith.addf %268, %269 : vector<2x32xf32>
    %271 = vector.extract_strided_slice %270 {offsets = [0, 0], sizes = [1, 32], strides = [1, 1]} : vector<2x32xf32> to vector<1x32xf32>
    %272 = tpu.concatenate %241, %270 in 1 : vector<2x32xf32>, vector<2x32xf32> -> vector<2x64xf32>
    %cst_53 = arith.constant dense<0.000000e+00> : vector<2x192xf32>
    %273 = tpu.matmul %272, %7, %cst_53 {dimension_numbers = #tpu.dot_dimension_numbers<[1], [0], [0], [1], [0, 0, 1, 1], [], []>, precision = #tpu.contract_precision<fp32>} : vector<2x64xf32>, vector<64x192xf32>, vector<2x192xf32> -> vector<2x192xf32>
    %274 = vector.extract_strided_slice %273 {offsets = [0, 0], sizes = [2, 96], strides = [1, 1]} : vector<2x192xf32> to vector<2x96xf32>
    %275 = vector.extract_strided_slice %273 {offsets = [0, 96], sizes = [2, 96], strides = [1, 1]} : vector<2x192xf32> to vector<2x96xf32>
    %276 = vector.extract_strided_slice %23 {offsets = [8, 0], sizes = [2, 96], strides = [1, 1]} : vector<16x96xf32> to vector<2x96xf32>
    %277 = vector.extract_strided_slice %276 {offsets = [0, 0], sizes = [2, 32], strides = [1, 1]} : vector<2x96xf32> to vector<2x32xf32>
    %278 = vector.extract_strided_slice %274 {offsets = [0, 0], sizes = [2, 32], strides = [1, 1]} : vector<2x96xf32> to vector<2x32xf32>
    %279 = arith.addf %277, %278 : vector<2x32xf32>
    %280 = arith.negf %279 : vector<2x32xf32>
    %281 = math.exp %280 : vector<2x32xf32>
    %cst_54 = arith.constant 1.000000e+00 : f32
    %282 = vector.broadcast %cst_54 : f32 to vector<2x32xf32>
    %283 = arith.addf %282, %281 : vector<2x32xf32>
    %284 = arith.divf %282, %283 : vector<2x32xf32>
    %285 = vector.extract_strided_slice %276 {offsets = [0, 32], sizes = [2, 32], strides = [1, 1]} : vector<2x96xf32> to vector<2x32xf32>
    %286 = vector.extract_strided_slice %274 {offsets = [0, 32], sizes = [2, 32], strides = [1, 1]} : vector<2x96xf32> to vector<2x32xf32>
    %287 = arith.addf %285, %286 : vector<2x32xf32>
    %288 = arith.negf %287 : vector<2x32xf32>
    %289 = math.exp %288 : vector<2x32xf32>
    %cst_55 = arith.constant 1.000000e+00 : f32
    %290 = vector.broadcast %cst_55 : f32 to vector<2x32xf32>
    %291 = arith.addf %290, %289 : vector<2x32xf32>
    %292 = arith.divf %290, %291 : vector<2x32xf32>
    %293 = vector.extract_strided_slice %276 {offsets = [0, 64], sizes = [2, 32], strides = [1, 1]} : vector<2x96xf32> to vector<2x32xf32>
    %294 = vector.extract_strided_slice %274 {offsets = [0, 64], sizes = [2, 32], strides = [1, 1]} : vector<2x96xf32> to vector<2x32xf32>
    %295 = arith.addf %294, %14 : vector<2x32xf32>
    %296 = arith.mulf %284, %295 : vector<2x32xf32>
    %297 = arith.addf %293, %296 : vector<2x32xf32>
    %298 = math.tanh %297 : vector<2x32xf32>
    %cst_56 = arith.constant 1.000000e+00 : f32
    %299 = vector.broadcast %cst_56 : f32 to vector<2x32xf32>
    %300 = arith.subf %299, %292 : vector<2x32xf32>
    %301 = arith.mulf %300, %298 : vector<2x32xf32>
    %302 = arith.mulf %292, %241 : vector<2x32xf32>
    %303 = arith.addf %301, %302 : vector<2x32xf32>
    %cst_57 = arith.constant dense<0.000000e+00> : vector<2x96xf32>
    %304 = tpu.matmul %303, %8, %cst_57 {dimension_numbers = #tpu.dot_dimension_numbers<[1], [0], [0], [1], [0, 0, 1, 1], [], []>, precision = #tpu.contract_precision<fp32>} : vector<2x32xf32>, vector<32x96xf32>, vector<2x96xf32> -> vector<2x96xf32>
    %305 = arith.addf %304, %11 : vector<2x96xf32>
    %306 = vector.extract_strided_slice %305 {offsets = [0, 0], sizes = [2, 32], strides = [1, 1]} : vector<2x96xf32> to vector<2x32xf32>
    %307 = vector.extract_strided_slice %275 {offsets = [0, 0], sizes = [2, 32], strides = [1, 1]} : vector<2x96xf32> to vector<2x32xf32>
    %308 = arith.addf %306, %307 : vector<2x32xf32>
    %309 = arith.negf %308 : vector<2x32xf32>
    %310 = math.exp %309 : vector<2x32xf32>
    %cst_58 = arith.constant 1.000000e+00 : f32
    %311 = vector.broadcast %cst_58 : f32 to vector<2x32xf32>
    %312 = arith.addf %311, %310 : vector<2x32xf32>
    %313 = arith.divf %311, %312 : vector<2x32xf32>
    %314 = vector.extract_strided_slice %305 {offsets = [0, 32], sizes = [2, 32], strides = [1, 1]} : vector<2x96xf32> to vector<2x32xf32>
    %315 = vector.extract_strided_slice %275 {offsets = [0, 32], sizes = [2, 32], strides = [1, 1]} : vector<2x96xf32> to vector<2x32xf32>
    %316 = arith.addf %314, %315 : vector<2x32xf32>
    %317 = arith.negf %316 : vector<2x32xf32>
    %318 = math.exp %317 : vector<2x32xf32>
    %cst_59 = arith.constant 1.000000e+00 : f32
    %319 = vector.broadcast %cst_59 : f32 to vector<2x32xf32>
    %320 = arith.addf %319, %318 : vector<2x32xf32>
    %321 = arith.divf %319, %320 : vector<2x32xf32>
    %322 = vector.extract_strided_slice %305 {offsets = [0, 64], sizes = [2, 32], strides = [1, 1]} : vector<2x96xf32> to vector<2x32xf32>
    %323 = vector.extract_strided_slice %275 {offsets = [0, 64], sizes = [2, 32], strides = [1, 1]} : vector<2x96xf32> to vector<2x32xf32>
    %324 = arith.addf %323, %17 : vector<2x32xf32>
    %325 = arith.mulf %313, %324 : vector<2x32xf32>
    %326 = arith.addf %322, %325 : vector<2x32xf32>
    %327 = math.tanh %326 : vector<2x32xf32>
    %cst_60 = arith.constant 1.000000e+00 : f32
    %328 = vector.broadcast %cst_60 : f32 to vector<2x32xf32>
    %329 = arith.subf %328, %321 : vector<2x32xf32>
    %330 = arith.mulf %329, %327 : vector<2x32xf32>
    %331 = arith.mulf %321, %270 : vector<2x32xf32>
    %332 = arith.addf %330, %331 : vector<2x32xf32>
    %333 = vector.extract_strided_slice %332 {offsets = [0, 0], sizes = [1, 32], strides = [1, 1]} : vector<2x32xf32> to vector<1x32xf32>
    %334 = tpu.concatenate %303, %332 in 1 : vector<2x32xf32>, vector<2x32xf32> -> vector<2x64xf32>
    %cst_61 = arith.constant dense<0.000000e+00> : vector<2x192xf32>
    %335 = tpu.matmul %334, %7, %cst_61 {dimension_numbers = #tpu.dot_dimension_numbers<[1], [0], [0], [1], [0, 0, 1, 1], [], []>, precision = #tpu.contract_precision<fp32>} : vector<2x64xf32>, vector<64x192xf32>, vector<2x192xf32> -> vector<2x192xf32>
    %336 = vector.extract_strided_slice %335 {offsets = [0, 0], sizes = [2, 96], strides = [1, 1]} : vector<2x192xf32> to vector<2x96xf32>
    %337 = vector.extract_strided_slice %335 {offsets = [0, 96], sizes = [2, 96], strides = [1, 1]} : vector<2x192xf32> to vector<2x96xf32>
    %338 = vector.extract_strided_slice %23 {offsets = [10, 0], sizes = [2, 96], strides = [1, 1]} : vector<16x96xf32> to vector<2x96xf32>
    %339 = vector.extract_strided_slice %338 {offsets = [0, 0], sizes = [2, 32], strides = [1, 1]} : vector<2x96xf32> to vector<2x32xf32>
    %340 = vector.extract_strided_slice %336 {offsets = [0, 0], sizes = [2, 32], strides = [1, 1]} : vector<2x96xf32> to vector<2x32xf32>
    %341 = arith.addf %339, %340 : vector<2x32xf32>
    %342 = arith.negf %341 : vector<2x32xf32>
    %343 = math.exp %342 : vector<2x32xf32>
    %cst_62 = arith.constant 1.000000e+00 : f32
    %344 = vector.broadcast %cst_62 : f32 to vector<2x32xf32>
    %345 = arith.addf %344, %343 : vector<2x32xf32>
    %346 = arith.divf %344, %345 : vector<2x32xf32>
    %347 = vector.extract_strided_slice %338 {offsets = [0, 32], sizes = [2, 32], strides = [1, 1]} : vector<2x96xf32> to vector<2x32xf32>
    %348 = vector.extract_strided_slice %336 {offsets = [0, 32], sizes = [2, 32], strides = [1, 1]} : vector<2x96xf32> to vector<2x32xf32>
    %349 = arith.addf %347, %348 : vector<2x32xf32>
    %350 = arith.negf %349 : vector<2x32xf32>
    %351 = math.exp %350 : vector<2x32xf32>
    %cst_63 = arith.constant 1.000000e+00 : f32
    %352 = vector.broadcast %cst_63 : f32 to vector<2x32xf32>
    %353 = arith.addf %352, %351 : vector<2x32xf32>
    %354 = arith.divf %352, %353 : vector<2x32xf32>
    %355 = vector.extract_strided_slice %338 {offsets = [0, 64], sizes = [2, 32], strides = [1, 1]} : vector<2x96xf32> to vector<2x32xf32>
    %356 = vector.extract_strided_slice %336 {offsets = [0, 64], sizes = [2, 32], strides = [1, 1]} : vector<2x96xf32> to vector<2x32xf32>
    %357 = arith.addf %356, %14 : vector<2x32xf32>
    %358 = arith.mulf %346, %357 : vector<2x32xf32>
    %359 = arith.addf %355, %358 : vector<2x32xf32>
    %360 = math.tanh %359 : vector<2x32xf32>
    %cst_64 = arith.constant 1.000000e+00 : f32
    %361 = vector.broadcast %cst_64 : f32 to vector<2x32xf32>
    %362 = arith.subf %361, %354 : vector<2x32xf32>
    %363 = arith.mulf %362, %360 : vector<2x32xf32>
    %364 = arith.mulf %354, %303 : vector<2x32xf32>
    %365 = arith.addf %363, %364 : vector<2x32xf32>
    %cst_65 = arith.constant dense<0.000000e+00> : vector<2x96xf32>
    %366 = tpu.matmul %365, %8, %cst_65 {dimension_numbers = #tpu.dot_dimension_numbers<[1], [0], [0], [1], [0, 0, 1, 1], [], []>, precision = #tpu.contract_precision<fp32>} : vector<2x32xf32>, vector<32x96xf32>, vector<2x96xf32> -> vector<2x96xf32>
    %367 = arith.addf %366, %11 : vector<2x96xf32>
    %368 = vector.extract_strided_slice %367 {offsets = [0, 0], sizes = [2, 32], strides = [1, 1]} : vector<2x96xf32> to vector<2x32xf32>
    %369 = vector.extract_strided_slice %337 {offsets = [0, 0], sizes = [2, 32], strides = [1, 1]} : vector<2x96xf32> to vector<2x32xf32>
    %370 = arith.addf %368, %369 : vector<2x32xf32>
    %371 = arith.negf %370 : vector<2x32xf32>
    %372 = math.exp %371 : vector<2x32xf32>
    %cst_66 = arith.constant 1.000000e+00 : f32
    %373 = vector.broadcast %cst_66 : f32 to vector<2x32xf32>
    %374 = arith.addf %373, %372 : vector<2x32xf32>
    %375 = arith.divf %373, %374 : vector<2x32xf32>
    %376 = vector.extract_strided_slice %367 {offsets = [0, 32], sizes = [2, 32], strides = [1, 1]} : vector<2x96xf32> to vector<2x32xf32>
    %377 = vector.extract_strided_slice %337 {offsets = [0, 32], sizes = [2, 32], strides = [1, 1]} : vector<2x96xf32> to vector<2x32xf32>
    %378 = arith.addf %376, %377 : vector<2x32xf32>
    %379 = arith.negf %378 : vector<2x32xf32>
    %380 = math.exp %379 : vector<2x32xf32>
    %cst_67 = arith.constant 1.000000e+00 : f32
    %381 = vector.broadcast %cst_67 : f32 to vector<2x32xf32>
    %382 = arith.addf %381, %380 : vector<2x32xf32>
    %383 = arith.divf %381, %382 : vector<2x32xf32>
    %384 = vector.extract_strided_slice %367 {offsets = [0, 64], sizes = [2, 32], strides = [1, 1]} : vector<2x96xf32> to vector<2x32xf32>
    %385 = vector.extract_strided_slice %337 {offsets = [0, 64], sizes = [2, 32], strides = [1, 1]} : vector<2x96xf32> to vector<2x32xf32>
    %386 = arith.addf %385, %17 : vector<2x32xf32>
    %387 = arith.mulf %375, %386 : vector<2x32xf32>
    %388 = arith.addf %384, %387 : vector<2x32xf32>
    %389 = math.tanh %388 : vector<2x32xf32>
    %cst_68 = arith.constant 1.000000e+00 : f32
    %390 = vector.broadcast %cst_68 : f32 to vector<2x32xf32>
    %391 = arith.subf %390, %383 : vector<2x32xf32>
    %392 = arith.mulf %391, %389 : vector<2x32xf32>
    %393 = arith.mulf %383, %332 : vector<2x32xf32>
    %394 = arith.addf %392, %393 : vector<2x32xf32>
    %395 = vector.extract_strided_slice %394 {offsets = [0, 0], sizes = [1, 32], strides = [1, 1]} : vector<2x32xf32> to vector<1x32xf32>
    %396 = tpu.concatenate %365, %394 in 1 : vector<2x32xf32>, vector<2x32xf32> -> vector<2x64xf32>
    %cst_69 = arith.constant dense<0.000000e+00> : vector<2x192xf32>
    %397 = tpu.matmul %396, %7, %cst_69 {dimension_numbers = #tpu.dot_dimension_numbers<[1], [0], [0], [1], [0, 0, 1, 1], [], []>, precision = #tpu.contract_precision<fp32>} : vector<2x64xf32>, vector<64x192xf32>, vector<2x192xf32> -> vector<2x192xf32>
    %398 = vector.extract_strided_slice %397 {offsets = [0, 0], sizes = [2, 96], strides = [1, 1]} : vector<2x192xf32> to vector<2x96xf32>
    %399 = vector.extract_strided_slice %397 {offsets = [0, 96], sizes = [2, 96], strides = [1, 1]} : vector<2x192xf32> to vector<2x96xf32>
    %400 = vector.extract_strided_slice %23 {offsets = [12, 0], sizes = [2, 96], strides = [1, 1]} : vector<16x96xf32> to vector<2x96xf32>
    %401 = vector.extract_strided_slice %400 {offsets = [0, 0], sizes = [2, 32], strides = [1, 1]} : vector<2x96xf32> to vector<2x32xf32>
    %402 = vector.extract_strided_slice %398 {offsets = [0, 0], sizes = [2, 32], strides = [1, 1]} : vector<2x96xf32> to vector<2x32xf32>
    %403 = arith.addf %401, %402 : vector<2x32xf32>
    %404 = arith.negf %403 : vector<2x32xf32>
    %405 = math.exp %404 : vector<2x32xf32>
    %cst_70 = arith.constant 1.000000e+00 : f32
    %406 = vector.broadcast %cst_70 : f32 to vector<2x32xf32>
    %407 = arith.addf %406, %405 : vector<2x32xf32>
    %408 = arith.divf %406, %407 : vector<2x32xf32>
    %409 = vector.extract_strided_slice %400 {offsets = [0, 32], sizes = [2, 32], strides = [1, 1]} : vector<2x96xf32> to vector<2x32xf32>
    %410 = vector.extract_strided_slice %398 {offsets = [0, 32], sizes = [2, 32], strides = [1, 1]} : vector<2x96xf32> to vector<2x32xf32>
    %411 = arith.addf %409, %410 : vector<2x32xf32>
    %412 = arith.negf %411 : vector<2x32xf32>
    %413 = math.exp %412 : vector<2x32xf32>
    %cst_71 = arith.constant 1.000000e+00 : f32
    %414 = vector.broadcast %cst_71 : f32 to vector<2x32xf32>
    %415 = arith.addf %414, %413 : vector<2x32xf32>
    %416 = arith.divf %414, %415 : vector<2x32xf32>
    %417 = vector.extract_strided_slice %400 {offsets = [0, 64], sizes = [2, 32], strides = [1, 1]} : vector<2x96xf32> to vector<2x32xf32>
    %418 = vector.extract_strided_slice %398 {offsets = [0, 64], sizes = [2, 32], strides = [1, 1]} : vector<2x96xf32> to vector<2x32xf32>
    %419 = arith.addf %418, %14 : vector<2x32xf32>
    %420 = arith.mulf %408, %419 : vector<2x32xf32>
    %421 = arith.addf %417, %420 : vector<2x32xf32>
    %422 = math.tanh %421 : vector<2x32xf32>
    %cst_72 = arith.constant 1.000000e+00 : f32
    %423 = vector.broadcast %cst_72 : f32 to vector<2x32xf32>
    %424 = arith.subf %423, %416 : vector<2x32xf32>
    %425 = arith.mulf %424, %422 : vector<2x32xf32>
    %426 = arith.mulf %416, %365 : vector<2x32xf32>
    %427 = arith.addf %425, %426 : vector<2x32xf32>
    %cst_73 = arith.constant dense<0.000000e+00> : vector<2x96xf32>
    %428 = tpu.matmul %427, %8, %cst_73 {dimension_numbers = #tpu.dot_dimension_numbers<[1], [0], [0], [1], [0, 0, 1, 1], [], []>, precision = #tpu.contract_precision<fp32>} : vector<2x32xf32>, vector<32x96xf32>, vector<2x96xf32> -> vector<2x96xf32>
    %429 = arith.addf %428, %11 : vector<2x96xf32>
    %430 = vector.extract_strided_slice %429 {offsets = [0, 0], sizes = [2, 32], strides = [1, 1]} : vector<2x96xf32> to vector<2x32xf32>
    %431 = vector.extract_strided_slice %399 {offsets = [0, 0], sizes = [2, 32], strides = [1, 1]} : vector<2x96xf32> to vector<2x32xf32>
    %432 = arith.addf %430, %431 : vector<2x32xf32>
    %433 = arith.negf %432 : vector<2x32xf32>
    %434 = math.exp %433 : vector<2x32xf32>
    %cst_74 = arith.constant 1.000000e+00 : f32
    %435 = vector.broadcast %cst_74 : f32 to vector<2x32xf32>
    %436 = arith.addf %435, %434 : vector<2x32xf32>
    %437 = arith.divf %435, %436 : vector<2x32xf32>
    %438 = vector.extract_strided_slice %429 {offsets = [0, 32], sizes = [2, 32], strides = [1, 1]} : vector<2x96xf32> to vector<2x32xf32>
    %439 = vector.extract_strided_slice %399 {offsets = [0, 32], sizes = [2, 32], strides = [1, 1]} : vector<2x96xf32> to vector<2x32xf32>
    %440 = arith.addf %438, %439 : vector<2x32xf32>
    %441 = arith.negf %440 : vector<2x32xf32>
    %442 = math.exp %441 : vector<2x32xf32>
    %cst_75 = arith.constant 1.000000e+00 : f32
    %443 = vector.broadcast %cst_75 : f32 to vector<2x32xf32>
    %444 = arith.addf %443, %442 : vector<2x32xf32>
    %445 = arith.divf %443, %444 : vector<2x32xf32>
    %446 = vector.extract_strided_slice %429 {offsets = [0, 64], sizes = [2, 32], strides = [1, 1]} : vector<2x96xf32> to vector<2x32xf32>
    %447 = vector.extract_strided_slice %399 {offsets = [0, 64], sizes = [2, 32], strides = [1, 1]} : vector<2x96xf32> to vector<2x32xf32>
    %448 = arith.addf %447, %17 : vector<2x32xf32>
    %449 = arith.mulf %437, %448 : vector<2x32xf32>
    %450 = arith.addf %446, %449 : vector<2x32xf32>
    %451 = math.tanh %450 : vector<2x32xf32>
    %cst_76 = arith.constant 1.000000e+00 : f32
    %452 = vector.broadcast %cst_76 : f32 to vector<2x32xf32>
    %453 = arith.subf %452, %445 : vector<2x32xf32>
    %454 = arith.mulf %453, %451 : vector<2x32xf32>
    %455 = arith.mulf %445, %394 : vector<2x32xf32>
    %456 = arith.addf %454, %455 : vector<2x32xf32>
    %457 = vector.extract_strided_slice %456 {offsets = [0, 0], sizes = [1, 32], strides = [1, 1]} : vector<2x32xf32> to vector<1x32xf32>
    %458 = tpu.concatenate %427, %456 in 1 : vector<2x32xf32>, vector<2x32xf32> -> vector<2x64xf32>
    %cst_77 = arith.constant dense<0.000000e+00> : vector<2x192xf32>
    %459 = tpu.matmul %458, %7, %cst_77 {dimension_numbers = #tpu.dot_dimension_numbers<[1], [0], [0], [1], [0, 0, 1, 1], [], []>, precision = #tpu.contract_precision<fp32>} : vector<2x64xf32>, vector<64x192xf32>, vector<2x192xf32> -> vector<2x192xf32>
    %460 = vector.extract_strided_slice %459 {offsets = [0, 0], sizes = [2, 96], strides = [1, 1]} : vector<2x192xf32> to vector<2x96xf32>
    %461 = vector.extract_strided_slice %459 {offsets = [0, 96], sizes = [2, 96], strides = [1, 1]} : vector<2x192xf32> to vector<2x96xf32>
    %462 = vector.extract_strided_slice %23 {offsets = [14, 0], sizes = [2, 96], strides = [1, 1]} : vector<16x96xf32> to vector<2x96xf32>
    %463 = vector.extract_strided_slice %462 {offsets = [0, 0], sizes = [2, 32], strides = [1, 1]} : vector<2x96xf32> to vector<2x32xf32>
    %464 = vector.extract_strided_slice %460 {offsets = [0, 0], sizes = [2, 32], strides = [1, 1]} : vector<2x96xf32> to vector<2x32xf32>
    %465 = arith.addf %463, %464 : vector<2x32xf32>
    %466 = arith.negf %465 : vector<2x32xf32>
    %467 = math.exp %466 : vector<2x32xf32>
    %cst_78 = arith.constant 1.000000e+00 : f32
    %468 = vector.broadcast %cst_78 : f32 to vector<2x32xf32>
    %469 = arith.addf %468, %467 : vector<2x32xf32>
    %470 = arith.divf %468, %469 : vector<2x32xf32>
    %471 = vector.extract_strided_slice %462 {offsets = [0, 32], sizes = [2, 32], strides = [1, 1]} : vector<2x96xf32> to vector<2x32xf32>
    %472 = vector.extract_strided_slice %460 {offsets = [0, 32], sizes = [2, 32], strides = [1, 1]} : vector<2x96xf32> to vector<2x32xf32>
    %473 = arith.addf %471, %472 : vector<2x32xf32>
    %474 = arith.negf %473 : vector<2x32xf32>
    %475 = math.exp %474 : vector<2x32xf32>
    %cst_79 = arith.constant 1.000000e+00 : f32
    %476 = vector.broadcast %cst_79 : f32 to vector<2x32xf32>
    %477 = arith.addf %476, %475 : vector<2x32xf32>
    %478 = arith.divf %476, %477 : vector<2x32xf32>
    %479 = vector.extract_strided_slice %462 {offsets = [0, 64], sizes = [2, 32], strides = [1, 1]} : vector<2x96xf32> to vector<2x32xf32>
    %480 = vector.extract_strided_slice %460 {offsets = [0, 64], sizes = [2, 32], strides = [1, 1]} : vector<2x96xf32> to vector<2x32xf32>
    %481 = arith.addf %480, %14 : vector<2x32xf32>
    %482 = arith.mulf %470, %481 : vector<2x32xf32>
    %483 = arith.addf %479, %482 : vector<2x32xf32>
    %484 = math.tanh %483 : vector<2x32xf32>
    %cst_80 = arith.constant 1.000000e+00 : f32
    %485 = vector.broadcast %cst_80 : f32 to vector<2x32xf32>
    %486 = arith.subf %485, %478 : vector<2x32xf32>
    %487 = arith.mulf %486, %484 : vector<2x32xf32>
    %488 = arith.mulf %478, %427 : vector<2x32xf32>
    %489 = arith.addf %487, %488 : vector<2x32xf32>
    %cst_81 = arith.constant dense<0.000000e+00> : vector<2x96xf32>
    %490 = tpu.matmul %489, %8, %cst_81 {dimension_numbers = #tpu.dot_dimension_numbers<[1], [0], [0], [1], [0, 0, 1, 1], [], []>, precision = #tpu.contract_precision<fp32>} : vector<2x32xf32>, vector<32x96xf32>, vector<2x96xf32> -> vector<2x96xf32>
    %491 = arith.addf %490, %11 : vector<2x96xf32>
    %492 = vector.extract_strided_slice %491 {offsets = [0, 0], sizes = [2, 32], strides = [1, 1]} : vector<2x96xf32> to vector<2x32xf32>
    %493 = vector.extract_strided_slice %461 {offsets = [0, 0], sizes = [2, 32], strides = [1, 1]} : vector<2x96xf32> to vector<2x32xf32>
    %494 = arith.addf %492, %493 : vector<2x32xf32>
    %495 = arith.negf %494 : vector<2x32xf32>
    %496 = math.exp %495 : vector<2x32xf32>
    %cst_82 = arith.constant 1.000000e+00 : f32
    %497 = vector.broadcast %cst_82 : f32 to vector<2x32xf32>
    %498 = arith.addf %497, %496 : vector<2x32xf32>
    %499 = arith.divf %497, %498 : vector<2x32xf32>
    %500 = vector.extract_strided_slice %491 {offsets = [0, 32], sizes = [2, 32], strides = [1, 1]} : vector<2x96xf32> to vector<2x32xf32>
    %501 = vector.extract_strided_slice %461 {offsets = [0, 32], sizes = [2, 32], strides = [1, 1]} : vector<2x96xf32> to vector<2x32xf32>
    %502 = arith.addf %500, %501 : vector<2x32xf32>
    %503 = arith.negf %502 : vector<2x32xf32>
    %504 = math.exp %503 : vector<2x32xf32>
    %cst_83 = arith.constant 1.000000e+00 : f32
    %505 = vector.broadcast %cst_83 : f32 to vector<2x32xf32>
    %506 = arith.addf %505, %504 : vector<2x32xf32>
    %507 = arith.divf %505, %506 : vector<2x32xf32>
    %508 = vector.extract_strided_slice %491 {offsets = [0, 64], sizes = [2, 32], strides = [1, 1]} : vector<2x96xf32> to vector<2x32xf32>
    %509 = vector.extract_strided_slice %461 {offsets = [0, 64], sizes = [2, 32], strides = [1, 1]} : vector<2x96xf32> to vector<2x32xf32>
    %510 = arith.addf %509, %17 : vector<2x32xf32>
    %511 = arith.mulf %499, %510 : vector<2x32xf32>
    %512 = arith.addf %508, %511 : vector<2x32xf32>
    %513 = math.tanh %512 : vector<2x32xf32>
    %cst_84 = arith.constant 1.000000e+00 : f32
    %514 = vector.broadcast %cst_84 : f32 to vector<2x32xf32>
    %515 = arith.subf %514, %507 : vector<2x32xf32>
    %516 = arith.mulf %515, %513 : vector<2x32xf32>
    %517 = arith.mulf %507, %456 : vector<2x32xf32>
    %518 = arith.addf %516, %517 : vector<2x32xf32>
    %519 = vector.extract_strided_slice %518 {offsets = [0, 0], sizes = [1, 32], strides = [1, 1]} : vector<2x32xf32> to vector<1x32xf32>
    %c0_85 = arith.constant 0 : index
    %c0_86 = arith.constant 0 : index
    %c0_87 = arith.constant 0 : index
    %520 = vector.load %arg13[%c0_85, %c0_86, %c0_87] : memref<2x2x32xf32, #tpu.memory_space<vmem>>, vector<1x2x32xf32>
    %521 = vector.shape_cast %520 : vector<1x2x32xf32> to vector<2x32xf32>
    %522 = vector.shape_cast %489 : vector<2x32xf32> to vector<1x2x32xf32>
    tpu.vector_store %arg13[%c0_85, %c0_86, %c0_87], %522 {strides = array<i32>} : memref<2x2x32xf32, #tpu.memory_space<vmem>>, vector<1x2x32xf32>,
    %c1_88 = arith.constant 1 : index
    %c0_89 = arith.constant 0 : index
    %c0_90 = arith.constant 0 : index
    %523 = vector.load %arg13[%c1_88, %c0_89, %c0_90] : memref<2x2x32xf32, #tpu.memory_space<vmem>>, vector<1x2x32xf32>
    %524 = vector.shape_cast %523 : vector<1x2x32xf32> to vector<2x32xf32>
    %525 = vector.shape_cast %518 : vector<2x32xf32> to vector<1x2x32xf32>
    tpu.vector_store %arg13[%c1_88, %c0_89, %c0_90], %525 {strides = array<i32>} : memref<2x2x32xf32, #tpu.memory_space<vmem>>, vector<1x2x32xf32>,
    %526 = tpu.concatenate %85, %147, %209, %271, %333, %395, %457, %519 in 0 : vector<1x32xf32>, vector<1x32xf32>, vector<1x32xf32>, vector<1x32xf32>, vector<1x32xf32>, vector<1x32xf32>, vector<1x32xf32>, vector<1x32xf32> -> vector<8x32xf32>
    %c0_91 = arith.constant 0 : index
    %c0_92 = arith.constant 0 : index
    %527 = vector.load %arg10[%c0_91, %c0_92] : memref<32x128xf32, #tpu.memory_space<vmem>>, vector<32x128xf32>
    %cst_93 = arith.constant dense<0.000000e+00> : vector<8x128xf32>
    %528 = tpu.matmul %526, %527, %cst_93 {dimension_numbers = #tpu.dot_dimension_numbers<[1], [0], [0], [1], [0, 0, 1, 1], [], []>, precision = #tpu.contract_precision<fp32>} : vector<8x32xf32>, vector<32x128xf32>, vector<8x128xf32> -> vector<8x128xf32>
    %c0_94 = arith.constant 0 : index
    %c0_95 = arith.constant 0 : index
    %529 = vector.load %arg11[%c0_94, %c0_95] : memref<1x128xf32, #tpu.memory_space<vmem>>, vector<1x128xf32>
    %530 = vector.broadcast %529 : vector<1x128xf32> to vector<8x128xf32>
    %531 = arith.addf %528, %530 : vector<8x128xf32>
    %c0_96 = arith.constant 0 : index
    %c0_97 = arith.constant 0 : index
    %532 = vector.load %arg12[%c0_96, %c0_97] : memref<8x128xf32, #tpu.memory_space<vmem>>, vector<8x128xf32>
    tpu.vector_store %arg12[%c0_96, %c0_97], %531 {strides = array<i32>} : memref<8x128xf32, #tpu.memory_space<vmem>>, vector<8x128xf32>,
    return
  }
  func.func @transform_0(%arg0: i32) -> (i32, i32) {
    %c0_i32 = arith.constant 0 : i32
    %c0_i32_0 = arith.constant 0 : i32
    return %arg0, %c0_i32 : i32, i32
  }
  func.func @transform_1(%arg0: i32) -> (i32, i32, i32) {
    %c0_i32 = arith.constant 0 : i32
    %c0_i32_0 = arith.constant 0 : i32
    %c0_i32_1 = arith.constant 0 : i32
    %c0_i32_2 = arith.constant 0 : i32
    return %c0_i32, %c0_i32_0, %c0_i32_1 : i32, i32, i32
  }
  func.func @transform_2(%arg0: i32) -> (i32, i32) {
    %c0_i32 = arith.constant 0 : i32
    %c0_i32_0 = arith.constant 0 : i32
    %c0_i32_1 = arith.constant 0 : i32
    return %c0_i32, %c0_i32_0 : i32, i32
  }
  func.func @transform_3(%arg0: i32) -> (i32, i32) {
    %c0_i32 = arith.constant 0 : i32
    %c0_i32_0 = arith.constant 0 : i32
    %c0_i32_1 = arith.constant 0 : i32
    return %c0_i32, %c0_i32_0 : i32, i32
  }
  func.func @transform_4(%arg0: i32) -> (i32, i32) {
    %c0_i32 = arith.constant 0 : i32
    %c0_i32_0 = arith.constant 0 : i32
    %c0_i32_1 = arith.constant 0 : i32
    return %c0_i32, %c0_i32_0 : i32, i32
  }
  func.func @transform_5(%arg0: i32) -> (i32, i32) {
    %c0_i32 = arith.constant 0 : i32
    %c0_i32_0 = arith.constant 0 : i32
    %c0_i32_1 = arith.constant 0 : i32
    return %c0_i32, %c0_i32_0 : i32, i32
  }
  func.func @transform_6(%arg0: i32) -> (i32, i32) {
    %c0_i32 = arith.constant 0 : i32
    %c0_i32_0 = arith.constant 0 : i32
    %c0_i32_1 = arith.constant 0 : i32
    return %c0_i32, %c0_i32_0 : i32, i32
  }
  func.func @transform_7(%arg0: i32) -> (i32, i32) {
    %c0_i32 = arith.constant 0 : i32
    %c0_i32_0 = arith.constant 0 : i32
    %c0_i32_1 = arith.constant 0 : i32
    return %c0_i32, %c0_i32_0 : i32, i32
  }
  func.func @transform_8(%arg0: i32) -> (i32, i32) {
    %c0_i32 = arith.constant 0 : i32
    %c0_i32_0 = arith.constant 0 : i32
    %c0_i32_1 = arith.constant 0 : i32
    return %c0_i32, %c0_i32_0 : i32, i32
  }
  func.func @transform_9(%arg0: i32) -> (i32, i32) {
    %c0_i32 = arith.constant 0 : i32
    %c0_i32_0 = arith.constant 0 : i32
    %c0_i32_1 = arith.constant 0 : i32
    return %c0_i32, %c0_i32_0 : i32, i32
  }
  func.func @transform_10(%arg0: i32) -> (i32, i32) {
    %c0_i32 = arith.constant 0 : i32
    %c0_i32_0 = arith.constant 0 : i32
    %c0_i32_1 = arith.constant 0 : i32
    return %c0_i32, %c0_i32_0 : i32, i32
  }
  func.func @transform_11(%arg0: i32) -> (i32, i32) {
    %c0_i32 = arith.constant 0 : i32
    %c0_i32_0 = arith.constant 0 : i32
    return %arg0, %c0_i32 : i32, i32
  }
  func.func @transform_12(%arg0: i32) -> (i32, i32, i32) {
    %c0_i32 = arith.constant 0 : i32
    %c0_i32_0 = arith.constant 0 : i32
    %c0_i32_1 = arith.constant 0 : i32
    %c0_i32_2 = arith.constant 0 : i32
    return %c0_i32, %c0_i32_0, %c0_i32_1 : i32, i32, i32
  }
}

</mosaic_0001>

<bundles_post_ra>
// kernel: tpu_custom_call.1
= control target key start
LH: loop header
LB: loop body
LE: loop exit
PB: predicated region body
PF: predicated region fallthrough
CT: control target
= control target key end

     0   :  { %18 = vsyncpa [#allocation3], 0  ;;  %s14485_s0 = inlined_call_operand.hbm [shape: f32[16,16], index: 0, kind: input, shape index: {}]   ;;  %s14486_s1 = inlined_call_operand.hbm [shape: f32[2,2,32], index: 1, kind: input, shape index: {}]   ;;  %s14487_s2 = inlined_call_operand.hbm [shape: f32[16,96], index: 2, kind: input, shape index: {}]   ;;  %s14488_s3 = inlined_call_operand.vmem [shape: f32[1,96], index: 3, kind: input, shape index: {}]   ;;  %s14489_s4 = inlined_call_operand.hbm [shape: f32[64,192], index: 4, kind: input, shape index: {}]   ;;  %s14490_s5 = inlined_call_operand.vmem [shape: f32[1,32], index: 5, kind: input, shape index: {}]   ;;  %s14491_s6 = inlined_call_operand.hbm [shape: f32[32,96], index: 6, kind: input, shape index: {}]   ;;  %s14492_s7 = inlined_call_operand.vmem [shape: f32[1,96], index: 7, kind: input, shape index: {}]   ;;  %s14493_s8 = inlined_call_operand.vmem [shape: f32[1,32], index: 8, kind: input, shape index: {}]   ;;  %s14494_s9 = inlined_call_operand.hbm [shape: f32[32,128], index: 9, kind: input, shape index: {}]   ;;  %s14495_s10 = inlined_call_operand.vmem [shape: f32[1,128], index: 10, kind: input, shape index: {}]   ;;  %s14496_s11 = inlined_call_operand.hbm [shape: f32[8,128], index: 11, kind: output, shape index: {0}]   ;;  %s14497_s12 = inlined_call_operand.hbm [shape: f32[2,2,32], index: 12, kind: output, shape index: {1}]  }
   0x1   :  { %19 = vsyncpa [#allocation6], 0 }
   0x2   :  { %20 = vsyncpa [#allocation9], 0 }
   0x3   :  { %21 = vsyncpa [#allocation12], 0 }
   0x4   :  { %22 = vsyncpa [#allocation4], 0 }
   0x5   :  { %23 = vsyncpa [#allocation15], 0  ;;  %s12321_s21 = smov [#allocation5]  }
   0x6   :  { %s41_s22 = sshll.u32 %s12321_s21, 4  ;;  %s42_s22 = int_to_ptr.vmem [resolvable:$true] %s41_s22 }
   0x7   :  { %s12157_s23 = scalar_lea.vmem %s42_s22, 64  ;;  %p12162_p1 = scmp.lt.s32.totalorder %s42_s22, %s42_s22 }
   0x8   :  { %p12158_p0 = scmp.ne.s32.totalorder %s42_s22, %s12157_s23  ;;  %p12163_p2 = scmp.lt.s32.totalorder %s12157_s23, %s12157_s23 }
   0xa   :  { %p12164_p3 = por %p12163_p2, %p12162_p1 }
   0xc   :  { %p12165_p4 = pnand %p12164_p3, %p12158_p0 }
   0xe   :  { %12168 = shalt.err (!%p12165_p4)
}
   0xf   :  { %s12322_s24 = smov 32   ;;  %s12323_s25 = smov 2  }
  0x10   :  { %47 = dma.hbm_to_vmem [thread:$0]  %s14486_s1, 64, %s42_s22, [#allocation6], %s12322_s24, %s12322_s24, %s12323_s25  }
  0x11   :  { %s12324_s28 = smov [#allocation8]  }
  0x12   :  { %s67_s29 = sshll.u32 %s12324_s28, 4  ;;  %s68_s29 = int_to_ptr.vmem [resolvable:$true] %s67_s29 }
  0x13   :  { %s12177_s30 = scalar_lea.vmem %s68_s29, 2048  ;;  %p12182_p6 = scmp.lt.s32.totalorder %s68_s29, %s68_s29 }
  0x14   :  { %p12178_p5 = scmp.ne.s32.totalorder %s68_s29, %s12177_s30  ;;  %p12183_p7 = scmp.lt.s32.totalorder %s12177_s30, %s12177_s30 }
  0x16   :  { %p12184_p8 = por %p12183_p7, %p12182_p6 }
  0x18   :  { %p12185_p9 = pnand %p12184_p8, %p12178_p5 }
  0x1a   :  { %12188 = shalt.err (!%p12185_p9)
}
  0x1b   :  { %s12325_s13 = smov 256   ;;  %s12326_s14 = smov 16  }
  0x1c   :  { %73 = dma.hbm_to_vmem [thread:$0]  %s14489_s4, 2048, %s68_s29, [#allocation9], %s12325_s13, %s12325_s13, %s12326_s14  }
  0x1d   :  { %s12327_s17 = smov [#allocation2]  }
  0x1e   :  { %s29_s18 = sshll.u32 %s12327_s17, 4  ;;  %s30_s18 = int_to_ptr.vmem [resolvable:$true] %s29_s18 }
  0x1f   :  { %s12197_s1 = scalar_lea.vmem %s30_s18, 256  ;;  %p12202_p11 = scmp.lt.s32.totalorder %s30_s18, %s30_s18 }
  0x20   :  { %p12198_p10 = scmp.ne.s32.totalorder %s30_s18, %s12197_s1  ;;  %p12203_p12 = scmp.lt.s32.totalorder %s12197_s1, %s12197_s1 }
  0x22   :  { %p12204_p13 = por %p12203_p12, %p12202_p11 }
  0x24   :  { %p12205_p0 = pnand %p12204_p13, %p12198_p10 }
  0x26   :  { %12208 = shalt.err (!%p12205_p0)
}
  0x27   :  { %s12328_s19 = smov 128   ;;  %s12329_s20 = smov 8  }
  0x28   :  { %35 = dma.hbm_to_vmem [thread:$0]  %s14485_s0, 256, %s30_s18, [#allocation3], %s12328_s19, %s12328_s19, %s12329_s20  }
  0x29   :  { %s12330_s4 = smov [#allocation7]   ;;  %s12331_s26 = smov [#allocation10]  }
  0x2a   :  { %s53_s23 = sshll.u32 %s12330_s4, 4  ;;  %s81_s27 = sshll.u32 %s12331_s26, 4  ;;  %s54_s23 = int_to_ptr.vmem [resolvable:$true] %s53_s23  ;;  %s82_s27 = int_to_ptr.vmem [resolvable:$true] %s81_s27 }
  0x2b   :  { %s12217_s28 = scalar_lea.vmem %s54_s23, 256  ;;  %p12222_p2 = scmp.lt.s32.totalorder %s54_s23, %s54_s23 }
  0x2c   :  { %p12218_p1 = scmp.ne.s32.totalorder %s54_s23, %s12217_s28  ;;  %p12223_p3 = scmp.lt.s32.totalorder %s12217_s28, %s12217_s28 }
  0x2e   :  { %p12224_p4 = por %p12223_p3, %p12222_p2 }
  0x30   :  { %p12225_p5 = pnand %p12224_p4, %p12218_p1 }
  0x32   :  { %12228 = shalt.err (!%p12225_p5)
}
  0x33   :  { %59 = dma.hbm_to_vmem [thread:$0]  %s14487_s2, 256, %s54_s23, [#allocation6], %s12328_s19, %s12328_s19, %s12329_s20  }
  0x34   :  { %s12237_s0 = scalar_lea.vmem %s82_s27, 512  ;;  %p12242_p7 = scmp.lt.s32.totalorder %s82_s27, %s82_s27 }
  0x35   :  { %p12238_p6 = scmp.ne.s32.totalorder %s82_s27, %s12237_s0  ;;  %p12243_p8 = scmp.lt.s32.totalorder %s12237_s0, %s12237_s0 }
  0x37   :  { %p12244_p9 = por %p12243_p8, %p12242_p7 }
  0x39   :  { %p12245_p10 = pnand %p12244_p9, %p12238_p6 }
  0x3b   :  { %12248 = shalt.err (!%p12245_p10)
}
  0x3c   :  { %87 = dma.hbm_to_vmem [thread:$0]  %s14491_s6, 512, %s82_s27, [#allocation9], %s12328_s19, %s12328_s19, %s12329_s20  }
  0x3d   :  { %s12332_s15 = smov [#allocation11]  }
  0x3e   :  { %s97_s16 = sshll.u32 %s12332_s15, 4  ;;  %s98_s16 = int_to_ptr.vmem [resolvable:$true] %s97_s16 }
  0x3f   :  { %s12257_s17 = scalar_lea.vmem %s98_s16, 512  ;;  %p12262_p12 = scmp.lt.s32.totalorder %s98_s16, %s98_s16 }
  0x40   :  { %p12258_p11 = scmp.ne.s32.totalorder %s98_s16, %s12257_s17  ;;  %p12263_p13 = scmp.lt.s32.totalorder %s12257_s17, %s12257_s17 }
  0x42   :  { %p12264_p0 = por %p12263_p13, %p12262_p12 }
  0x44   :  { %p12265_p1 = pnand %p12264_p0, %p12258_p11 }
  0x46   :  { %12268 = shalt.err (!%p12265_p1)
}
  0x47   :  { %103 = dma.hbm_to_vmem [thread:$0]  %s14494_s9, 512, %s98_s16, [#allocation12], %s12328_s19, %s12328_s19, %s12329_s20  }
  0x48   :  { %12309 = dma.done.wait [#allocation3], 256  }
  0x49   :  { %12310 = vsyncadd [#allocation3], 4294967040 }
  0x4a   :  { %12311 = dma.done.wait [#allocation6], 320  }
  0x4b   :  { %12312 = vsyncadd [#allocation6], 4294966976 }
  0x4c   :  { %12313 = dma.done.wait [#allocation9], 2560  }
  0x4d   :  { %12314 = vsyncadd [#allocation9], 4294964736 }
  0x4e   :  { %12315 = dma.done.wait [#allocation12], 512  }
  0x4f   :  { %12316 = vsyncadd [#allocation12], 4294966784  ;;  %vm130_vm0 = vcmask 254976   ;;  %vm186_vm1 = vcmask 130048   ;;  %v129_v0 = vld [vmem:[#allocation5 + $0x2] sm:$0x3] }
  0x50   :  { %v178_v1 = vld [vmem:[#allocation7 + $0x8] sm:$0xff]  ;;  %v177_v2 = vld [vmem:[#allocation7] sm:$0xff]  ;;  %132 = vst.msk [vmem:[#allocation14 + $0x2] sm:$0x3] %vm130_vm0, %v129_v0  ;;  %v176_v6 = vld [vmem:[#allocation2 + $0x8] sm:$0xff]  ;;  %s12334_s1 = smov 64  }
  0x51   :  { %v12438_v3 = vand.u32 4294901760, %v178_v1  ;;  %v12440_v4 = vand.u32 4294901760, %v177_v2  ;;  %v175_v5 = vld [vmem:[#allocation2] sm:$0xff]  ;;  %v191_v9 = vsel %vm186_vm1, %v176_v6, 0  ;;  %v150_v11 = vld [vmem:[#allocation8 + $0x70] sm:$0xff]  ;;  %v149_v12 = vld [vmem:[#allocation8 + $0x68] sm:$0xff] }
  0x52   :  { %v151_v7 = vld [vmem:[#allocation8 + $0x78] sm:$0xff]  ;;  %v188_v8 = vsel %vm186_vm1, %v175_v5, 0  ;;  %v148_v13 = vld [vmem:[#allocation8 + $0x60] sm:$0xff]  ;;  %v12452_v17 = vand.u32 4294901760, %v191_v9  ;;  %v12459_v19 = vand.u32 4294901760, %v150_v11  ;;  %v12461_v20 = vand.u32 4294901760, %v149_v12 }
  0x53   :  { %v12442_v10 = vand.u32 4294901760, %v151_v7  ;;  %v12445_v14 = vsub.f32 %v178_v1, %v12438_v3  ;;  %v12448_v15 = vsub.f32 %v177_v2, %v12440_v4  ;;  %v12450_v16 = vand.u32 4294901760, %v188_v8  ;;  %11364 = vmatprep.subr.mxu0 %v12438_v3  ;;  %v128_v27 = vld [vmem:[#allocation5] sm:$0x3]  ;;  %v147_v36 = vld [vmem:[#allocation8 + $0x58] sm:$0xff]  ;;  %v146_v37 = vld [vmem:[#allocation8 + $0x50] sm:$0xff] }
  0x54   :  { %11365 = vmatpush3.msra.mxu0 %v12438_v3  ;;  %v12463_v21 = vand.u32 4294901760, %v148_v13  ;;  %v12473_v24 = vsub.f32 %v191_v9, %v12452_v17  ;;  %v12481_v26 = vsub.f32 %v150_v11, %v12459_v19  ;;  %131 = vst.msk [vmem:[#allocation14] sm:$0x3] %vm130_vm0, %v128_v27  ;;  %v12495_v34 = vsub.f32 %v149_v12, %v12461_v20  ;;  %v145_v42 = vld [vmem:[#allocation8 + $0x48] sm:$0xff]  ;;  %v144_v44 = vld [vmem:[#allocation8 + $0x40] sm:$0xff]  ;;  %v143_v45 = vld [vmem:[#allocation8 + $0x38] sm:$0xff] }
  0x55   :  { %v12457_v18 = vsub.f32 %v151_v7, %v12442_v10  ;;  %v12466_v22 = vand.u32 4294901760, %v12445_v14  ;;  %v12469_v23 = vand.u32 4294901760, %v12448_v15  ;;  %11375 = vmatprep.mubr.f32.mxu1 %v12450_v16  ;;  %v12476_v25 = vsub.f32 %v188_v8, %v12450_v16  ;;  %11366 = vmatprep.subr.mxu0 %v12440_v4  ;;  %v142_v46 = vld [vmem:[#allocation8 + $0x30] sm:$0xff]  ;;  %v141_v51 = vld [vmem:[#allocation8 + $0x28] sm:$0xff]  ;;  %v140_v52 = vld [vmem:[#allocation8 + $0x20] sm:$0xff]  ;;  %s12335_s21 = smov 96  }
  0x56   :  { %11367 = vmatpush3.msra.mxu0 %v12440_v4  ;;  %v272_v31 = vand.u32 4294901760, %v12473_v24  ;;  %v12498_v35 = vsub.f32 %v148_v13, %v12463_v21  ;;  %v12506_v43 = vand.u32 4294901760, %v12481_v26  ;;  %v12508_v49 = vand.u32 4294901760, %v147_v36 }
  0x57   :  { %14614 = vst [vmem:[#allocation22_spill] sm:$0xff] %v12457_v18  ;;  %v312_v28 = vsub.f32 %v12445_v14, %v12466_v22  ;;  %v319_v29 = vsub.f32 %v12448_v15, %v12469_v23  ;;  %v262_v30 = vand.u32 4294901760, %v12476_v25  ;;  %11378 = vmatprep.subr.mxu0 %v12445_v14  ;;  %v135_v32 = vld [vmem:[#allocation14 + $0x2] sm:$0x3]  ;;  %v12492_v33 = vand.u32 4294901760, %v12457_v18 }
  0x58   :  { %696 = vrot.lane.b32.xlu0 %v135_v32, %s12322_s24  ;;  %v273_v41 = vsub.f32 %v12473_v24, %v272_v31  ;;  %14616 = vst [vmem:[#allocation24_spill] sm:$0xff] %v12506_v43  ;;  %v12510_v50 = vand.u32 4294901760, %v146_v37  ;;  %v12515_v54 = vand.u32 4294901760, %v12495_v34  ;;  %v12518_v55 = vand.u32 4294901760, %v12498_v35 }
  0x59   :  { %14615 = vst [vmem:[#allocation23_spill] sm:$0xff] %v12492_v33  ;;  %v313_v38 = vand.u32 4294901760, %v312_v28  ;;  %v320_v39 = vand.u32 4294901760, %v319_v29  ;;  %v263_v40 = vsub.f32 %v12476_v25, %v262_v30  ;;  %v816_v53 = vsub.f32 %v12457_v18, %v12492_v33 }
  0x5a   :  { %v274_v48 = vand.u32 4294901760, %v273_v41  ;;  %14617 = vst [vmem:[#allocation25_spill] sm:$0xff] %v12515_v54  ;;  %14618 = vst [vmem:[#allocation26_spill] sm:$0xff] %v12518_v55  ;;  %v12520_v56 = vand.u32 4294901760, %v145_v42  ;;  %v12523_v57 = vsub.f32 %v147_v36, %v12508_v49  ;;  %v12526_v58 = vsub.f32 %v146_v37, %v12510_v50 }
  0x5b   :  { %11371 = vmatprep.subr.mxu1 %v313_v38  ;;  %v264_v47 = vand.u32 4294901760, %v263_v40  ;;  %v12528_v59 = vand.u32 4294901760, %v144_v44  ;;  %v12530_v60 = vand.u32 4294901760, %v143_v45  ;;  %v12535_v62 = vand.u32 4294901760, %v142_v46 }
  0x5c   :  { %11372 = vmatpush3.msra.mxu1 %v313_v38  ;;  %v12533_v61 = vsub.f32 %v145_v42, %v12520_v56  ;;  %v12537_v63 = vand.u32 4294901760, %v141_v51  ;;  %v12539_v0 = vand.u32 4294901760, %v140_v52  ;;  %v822_v1 = vsub.f32 %v12481_v26, %v12506_v43  ;;  %v137_v38 = vld [vmem:[#allocation8 + $0x8] sm:$0xff]  ;;  %v136_v42 = vld [vmem:[#allocation8] sm:$0xff] }
  0x5d   :  { %11373 = vmatprep.subr.mxu1 %v320_v39  ;;  %11368 = vmatprep.mubr.f32.mxu0 %v264_v47  ;;  %v12546_v2 = vand.u32 4294901760, %v12523_v57  ;;  %v12549_v5 = vsub.f32 %v144_v44, %v12528_v59  ;;  %v12552_v6 = vsub.f32 %v143_v45, %v12530_v60  ;;  %v828_v7 = vsub.f32 %v12495_v34, %v12515_v54 }
  0x5e   :  { %11374 = vmatpush3.msra.mxu1 %v320_v39  ;;  %11369 = vmatmul.mubr.f32.vlgmr.msra.gmra.mxu0 %v274_v48  ;;  %v12558_v8 = vand.u32 4294901760, %v12526_v58  ;;  %v12561_v9 = vand.u32 4294901760, %v12533_v61  ;;  %v12564_v11 = vsub.f32 %v142_v46, %v12535_v62  ;;  %v834_v12 = vsub.f32 %v12498_v35, %v12518_v55 }
  0x5f   :  { %11385 = vmatprep.subr.mxu1 %v12438_v3  ;;  %11376 = vmatmul.mubr.f32.vlgmr.msra.gmra.mxu1 %v12452_v17  ;;  %14619 = vst [vmem:[#allocation27_spill] sm:$0xff] %v12546_v2  ;;  %v12571_v13 = vsub.f32 %v141_v51, %v12537_v63  ;;  %v840_v27 = vsub.f32 %v12523_v57, %v12546_v2  ;;  %v12578_v28 = vand.u32 4294901760, %v12549_v5  ;;  %v12586_v32 = vand.u32 4294901760, %v816_v53 }
  0x60   :  { %11386 = vmatpush3.msra.mxu1 %v12438_v3  ;;  %11389 = vmatprep.mubr.f32.mxu1 %v262_v30  ;;  %14620 = vst [vmem:[#allocation28_spill] sm:$0xff] %v12558_v8  ;;  %14621 = vst [vmem:[#allocation29_spill] sm:$0xff] %v12561_v9  ;;  %v12581_v29 = vsub.f32 %v140_v52, %v12539_v0  ;;  %v138_v30 = vld [vmem:[#allocation8 + $0x10] sm:$0xff]  ;;  %v12588_v36 = vand.u32 4294901760, %v822_v1  ;;  %v12591_v37 = vand.u32 4294901760, %v12552_v6  ;;  %v12595_v39 = vand.u32 4294901760, %v828_v7 }
  0x61   :  { %11387 = vmatprep.subr.mxu1 %v12440_v4  ;;  %11379 = vmatpush3.msra.mxu0 %v12445_v14  ;;  %14622 = vst [vmem:[#allocation30_spill] sm:$0xff] %v12578_v28  ;;  %v139_v14 = vld [vmem:[#allocation8 + $0x18] sm:$0xff]  ;;  %14623 = vst [vmem:[#allocation31_spill] sm:$0xff] %v12586_v32  ;;  %v846_v40 = vsub.f32 %v12526_v58, %v12558_v8  ;;  %v12602_v41 = vand.u32 4294901760, %v12564_v11  ;;  %v12606_v44 = vand.u32 4294901760, %v834_v12  ;;  %v12613_v46 = vand.u32 4294901760, %v138_v30 }
  0x62   :  { %11388 = vmatpush3.msra.mxu1 %v12440_v4  ;;  %11380 = vmatprep.subr.mxu0 %v12448_v15  ;;  %14624 = vst [vmem:[#allocation32_spill] sm:$0xff] %v12588_v36  ;;  %14625 = vst [vmem:[#allocation33_spill] sm:$0xff] %v12591_v37  ;;  %v12611_v45 = vand.u32 4294901760, %v139_v14  ;;  %v12617_v47 = vand.u32 4294901760, %v840_v27  ;;  %v858_v48 = vsub.f32 %v12549_v5, %v12578_v28  ;;  %v12624_v51 = vand.u32 4294901760, %v137_v38 }
  0x63   :  { %11399 = vmatprep.subr.mxu1 %v12438_v3  ;;  %11390 = vmatmul.mubr.f32.vlgmr.msra.gmra.mxu1 %v272_v31  ;;  %14626 = vst [vmem:[#allocation34_spill] sm:$0xff] %v12595_v39  ;;  %v852_v31 = vsub.f32 %v12533_v61, %v12561_v9  ;;  %14627 = vst [vmem:[#allocation35_spill] sm:$0xff] %v12602_v41  ;;  %v864_v52 = vsub.f32 %v12552_v6, %v12591_v37  ;;  %v12636_v53 = vand.u32 4294901760, %v136_v42  ;;  %vm699_vm2 = vcmask 261120  }
  0x64   :  { %11400 = vmatpush3.msra.mxu1 %v12438_v3  ;;  %11403 = vmatprep.mubr.f32.mxu1 %v12450_v16  ;;  %14628 = vst [vmem:[#allocation36_spill] sm:$0xff] %v12606_v44  ;;  %v12609_v3 = vand.u32 4294901760, %v12571_v13  ;;  %14630 = vst [vmem:[#allocation38_spill] sm:$0xff] %v12617_v47  ;;  %v12640_v1 = vand.u32 4294901760, %v846_v40  ;;  %v870_v12 = vsub.f32 %v12564_v11, %v12602_v41  ;;  %vm701_vm3 = vcmask 523264  }
  0x65   :  { %11401 = vmatprep.subr.mxu1 %v12440_v4  ;;  %11381 = vmatpush3.msra.mxu0 %v12448_v15  ;;  %v12622_v15 = vand.u32 4294901760, %v12581_v29  ;;  %v12642_v7 = vand.u32 4294901760, %v852_v31  ;;  %v12647_v27 = vsub.f32 %v137_v38, %v12624_v51  ;;  %v12660_v40 = vsub.f32 %v136_v42, %v12636_v53 }
  0x66   :  { %14629 = vst [vmem:[#allocation37_spill] sm:$0xff] %v12609_v3  ;;  %11402 = vmatpush3.msra.mxu1 %v12440_v4  ;;  %11382 = vmatprep.mubr.f32.mxu0 %v12476_v25  ;;  %v12631_v4 = vsub.f32 %v139_v14, %v12611_v45  ;;  %v12634_v25 = vsub.f32 %v138_v30, %v12613_v46  ;;  %14632 = vst [vmem:[#allocation40_spill] sm:$0xff] %v12640_v1  ;;  %v12664_v38 = vand.u32 4294901760, %v858_v48  ;;  %vm12336_vm4 = vmmov 0  }
  0x67   :  { %14631 = vst [vmem:[#allocation39_spill] sm:$0xff] %v12622_v15  ;;  %818 = vmatprep.subr.mxu1 %v12586_v32  ;;  %11404 = vmatmul.mubr.f32.vlgmr.msra.gmra.mxu1 %v12452_v17  ;;  %14633 = vst [vmem:[#allocation41_spill] sm:$0xff] %v12642_v7  ;;  %v876_v14 = vsub.f32 %v12571_v13, %v12609_v3  ;;  %v882_v31 = vsub.f32 %v12581_v29, %v12622_v15  ;;  %vm10491_vm5 = vcmask 1040384   ;;  %vm10493_vm6 = vcmask 1041408  }
  0x68   :  { %824 = vmatpush1.msra.mxu1 %v12588_v36  ;;  %11383 = vmatmul.mubr.f32.vlgmr.msra.gmra.mxu0 %v12473_v24  ;;  %14634 = vst [vmem:[#allocation42_spill] sm:$0xff] %v12647_v27  ;;  %v12654_v30 = vand.u32 4294901760, %v12631_v4  ;;  %v12657_v24 = vand.u32 4294901760, %v12634_v25  ;;  %14637 = vst [vmem:[#allocation45_spill] sm:$0xff] %v12660_v40  ;;  %v12673_v36 = vand.u32 4294901760, %v864_v52  ;;  %vm10495_vm7 = vcmask 1042432  }
  0x69   :  { %830 = vmatprep.subr.mxu1 %v12595_v39  ;;  %11392 = vmatprep.subr.mxu0 %v12466_v22  ;;  %14638 = vst [vmem:[#allocation46_spill] sm:$0xff] %v12664_v38  ;;  %v12669_v39 = vand.u32 4294901760, %v12647_v27  ;;  %v12688_v52 = vand.u32 4294901760, %v876_v14  ;;  %vm10497_vm8 = vcmask 1043456   ;;  %vm10499_vm9 = vcmask 1044480  }
  0x6a   :  { %14635 = vst [vmem:[#allocation43_spill] sm:$0xff] %v12654_v30  ;;  %14636 = vst [vmem:[#allocation44_spill] sm:$0xff] %v12657_v24  ;;  %836 = vmatpush1.msra.mxu1 %v12606_v44  ;;  %11393 = vmatpush3.msra.mxu0 %v12466_v22  ;;  %v888_v42 = vsub.f32 %v12631_v4, %v12654_v30  ;;  %v12678_v44 = vand.u32 4294901760, %v12660_v40  ;;  %v12682_v22 = vand.u32 4294901760, %v870_v12  ;;  %vm10468_vm10 = vcmask 261126  }
  0x6b   :  { %14639 = vst [vmem:[#allocation47_spill] sm:$0xff] %v12669_v39  ;;  %842 = vmatprep.subr.mxu1 %v12617_v47  ;;  %11394 = vmatprep.subr.mxu0 %v12469_v23  ;;  %14640 = vst [vmem:[#allocation48_spill] sm:$0xff] %v12673_v36  ;;  %v894_v48 = vsub.f32 %v12634_v25, %v12657_v24  ;;  %v900_v47 = vsub.f32 %v12647_v27, %v12669_v39  ;;  %vm10501_vm11 = vcmask 1045504   ;;  %vm10503_vm12 = vcmask 1046528  }
  0x6c   :  { %14641 = vst [vmem:[#allocation49_spill] sm:$0xff] %v12678_v44  ;;  %848 = vmatpush1.msra.mxu1 %v12640_v1  ;;  %11395 = vmatpush3.msra.mxu0 %v12469_v23  ;;  %14642 = vst [vmem:[#allocation50_spill] sm:$0xff] %v12682_v22  ;;  %v12694_v1 = vand.u32 4294901760, %v882_v31  ;;  %v906_v23 = vsub.f32 %v12660_v40, %v12678_v44  ;;  %v11042_v31 = vld [vmem:[%s14490_s5] ss:$0 sm:$0xff] }
  0x6d   :  { %11396 = vmatprep.mubr.f32.mxu0 %v12450_v16  ;;  %854 = vmatprep.subr.mxu1 %v12642_v7  ;;  %14643 = vst [vmem:[#allocation51_spill] sm:$0xff] %v12688_v52  ;;  %v12700_v16 = vand.u32 4294901760, %v888_v42  ;;  %v12704_v12 = vand.u32 4294901760, %v894_v48  ;;  %v12738_v42 = vld [vmem:[#allocation14] sm:$0x3] }
  0x6e   :  { %11397 = vmatmul.mubr.f32.vlgmr.msra.gmra.mxu0 %v12452_v17  ;;  %860 = vmatpush1.msra.mxu1 %v12664_v38  ;;  %14644 = vst [vmem:[#allocation52_spill] sm:$0xff] %v12694_v1  ;;  %v12708_v17 = vand.u32 4294901760, %v900_v47  ;;  %v12712_v14 = vand.u32 4294901760, %v906_v23  ;;  %v14508_v47 = vmov 0.0  }
  0x6f   :  { %722 = vmatprep.subr.mxu0 %v12442_v10  ;;  %866 = vmatprep.subr.mxu1 %v12673_v36  ;;  %14645 = vst [vmem:[#allocation53_spill] sm:$0xff] %v12700_v16  ;;  %14646 = vst [vmem:[#allocation54_spill] sm:$0xff] %v12704_v12 }
  0x70   :  { %724 = vmatpush1.msra.mxu0 %v12459_v19  ;;  %872 = vmatpush1.msra.mxu1 %v12682_v22  ;;  %14647 = vst [vmem:[#allocation55_spill] sm:$0xff] %v12708_v17  ;;  %14648 = vst [vmem:[#allocation56_spill] sm:$0xff] %v12712_v14 }
  0x71   :  { %726 = vmatprep.subr.mxu0 %v12461_v20  ;;  %878 = vmatprep.subr.mxu1 %v12688_v52 }
  0x72   :  { %728 = vmatpush1.msra.mxu0 %v12463_v21  ;;  %884 = vmatpush1.msra.mxu1 %v12694_v1 }
  0x73   :  { %730 = vmatprep.subr.mxu0 %v12508_v49  ;;  %890 = vmatprep.subr.mxu1 %v12700_v16 }
  0x74   :  { %732 = vmatpush1.msra.mxu0 %v12510_v50  ;;  %896 = vmatpush1.msra.mxu1 %v12704_v12 }
  0x75   :  { %734 = vmatprep.subr.mxu0 %v12520_v56  ;;  %902 = vmatprep.subr.mxu1 %v12708_v17 }
  0x76   :  { %736 = vmatpush1.msra.mxu0 %v12528_v59  ;;  %908 = vmatpush1.msra.mxu1 %v12712_v14 }
  0x77   :  { %738 = vmatprep.subr.mxu0 %v12530_v60  ;;  %941 = vmatprep.mubr.f32.mxu1 %v14508_v47 }
  0x78   :  { %1071 = vmatprep.subr.mxu1 %v12442_v10  ;;  %740 = vmatpush1.msra.mxu0 %v12535_v62 }
  0x79   :  { %742 = vmatprep.subr.mxu0 %v12537_v63  ;;  %785 = vmatprep.mubr.f32.mxu0 %v14508_v47 }
  0x7a   :  { %744 = vmatpush1.msra.mxu0 %v12539_v0  ;;  %1359 = vrot.lane.b32.xlu0 %v11042_v31, %s12334_s1 }
  0x7b   :  { %746 = vmatprep.subr.mxu0 %v12611_v45 }
  0x7c   :  { %748 = vmatpush1.msra.mxu0 %v12613_v46 }
  0x7d   :  { %750 = vmatprep.subr.mxu0 %v12624_v51 }
  0x7e   :  { %752 = vmatpush1.msra.mxu0 %v12636_v53 }
  0x7f   :  { %967 = vmatprep.subr.mxu0 %v12457_v18  ;;  %v14650_v18 = vmov 0.0  }
  0xca   :  { %v12740_v48 = vpop.permute.xlu0 %696 }
  0xcb   :  { %14649 = vst [vmem:[#allocation57_spill] sm:$0xff] %v12740_v48  ;;  %v700_v23 = vsel %vm699_vm2, %v12738_v42, %v12740_v48 }
  0xcc   :  { %v703_v31 = vsel %vm701_vm3, %v700_v23, 0 }
  0xcd   :  { %v12746_v47 = vand.u32 4294901760, %v703_v31 }
  0xcf   :  { %v787_v14 = vsub.f32 %v703_v31, %v12746_v47  ;;  %943 = vmatmul.mubr.f32.vlgmr.msra.gmra.mxu1 %v12746_v47 }
  0xd0   :  { %1073 = vmatpush1.msra.mxu1 %v12459_v19  ;;  %1134 = vmatprep.mubr.f32.mxu1 %v14650_v18 }
  0xd1   :  { %v788_v17 = vand.u32 4294901760, %v787_v14  ;;  %1075 = vmatprep.subr.mxu1 %v12461_v20 }
  0xd2   :  { %1077 = vmatpush1.msra.mxu1 %v12463_v21 }
  0xd3   :  { %1079 = vmatprep.subr.mxu1 %v12508_v49  ;;  %v789_v48 = vsub.f32 %v787_v14, %v788_v17 }
  0xd4   :  { %1081 = vmatpush1.msra.mxu1 %v12510_v50 }
  0xd5   :  { %1083 = vmatprep.subr.mxu1 %v12520_v56  ;;  %v790_v23 = vand.u32 4294901760, %v789_v48 }
  0xd6   :  { %1085 = vmatpush1.msra.mxu1 %v12528_v59 }
  0xd7   :  { %1087 = vmatprep.subr.mxu1 %v12530_v60  ;;  %791 = vmatmul.mubr.f32.vlgmr.msra.gmra.mxu0 %v790_v23 }
  0xd8   :  { %970 = vmatpush1.msra.mxu0 %v12481_v26  ;;  %1089 = vmatpush1.msra.mxu1 %v12535_v62 }
  0xd9   :  { %973 = vmatprep.subr.mxu0 %v12495_v34  ;;  %1091 = vmatprep.subr.mxu1 %v12537_v63 }
  0xda   :  { %976 = vmatpush1.msra.mxu0 %v12498_v35  ;;  %1093 = vmatpush1.msra.mxu1 %v12539_v0 }
  0xdb   :  { %979 = vmatprep.subr.mxu0 %v12523_v57  ;;  %1095 = vmatprep.subr.mxu1 %v12611_v45 }
  0xdc   :  { %982 = vmatpush1.msra.mxu0 %v12526_v58  ;;  %1097 = vmatpush1.msra.mxu1 %v12613_v46 }
  0xdd   :  { %985 = vmatprep.subr.mxu0 %v12533_v61  ;;  %1099 = vmatprep.subr.mxu1 %v12624_v51 }
  0xde   :  { %988 = vmatpush1.msra.mxu0 %v12549_v5  ;;  %1101 = vmatpush1.msra.mxu1 %v12636_v53 }
  0xdf   :  { %991 = vmatprep.subr.mxu0 %v12552_v6  ;;  %1138 = vmatmul.mubr.f32.vlgmr.msra.gmra.mxu1 %v788_v17  ;;  %v11044_v17 = vld [vmem:[%s14488_s3] ss:$0 sm:$0xff] }
  0xe0   :  { %1281 = vmatprep.subr.mxu1 %v12442_v10  ;;  %994 = vmatpush1.msra.mxu0 %v12564_v11 }
  0xe1   :  { %1283 = vmatpush1.msra.mxu1 %v12459_v19  ;;  %997 = vmatprep.subr.mxu0 %v12571_v13 }
  0xe2   :  { %1285 = vmatprep.subr.mxu1 %v12461_v20  ;;  %1000 = vmatpush1.msra.mxu0 %v12581_v29 }
  0xe3   :  { %1287 = vmatpush1.msra.mxu1 %v12463_v21  ;;  %1003 = vmatprep.subr.mxu0 %v12631_v4 }
  0xe4   :  { %1289 = vmatprep.subr.mxu1 %v12508_v49  ;;  %1006 = vmatpush1.msra.mxu0 %v12634_v25 }
  0xe5   :  { %1291 = vmatpush1.msra.mxu1 %v12510_v50  ;;  %1009 = vmatprep.subr.mxu0 %v12647_v27 }
  0xe6   :  { %1293 = vmatprep.subr.mxu1 %v12520_v56  ;;  %1012 = vmatpush1.msra.mxu0 %v12660_v40 }
  0xe7   :  { %1045 = vmatprep.mubr.f32.mxu0 %v14650_v18  ;;  %1295 = vmatpush1.msra.mxu1 %v12528_v59 }
  0xe8   :  { %1048 = vmatmul.mubr.f32.vlgmr.msra.gmra.mxu0 %v787_v14  ;;  %1163 = vmatprep.subr.mxu0 %v12492_v33 }
  0xe9   :  { %1297 = vmatprep.subr.mxu1 %v12530_v60  ;;  %1167 = vmatpush1.msra.mxu0 %v12506_v43 }
  0xea   :  { %1299 = vmatpush1.msra.mxu1 %v12535_v62  ;;  %1171 = vmatprep.subr.mxu0 %v12515_v54 }
  0xeb   :  { %1301 = vmatprep.subr.mxu1 %v12537_v63  ;;  %1175 = vmatpush1.msra.mxu0 %v12518_v55 }
  0xec   :  { %1303 = vmatpush1.msra.mxu1 %v12539_v0  ;;  %1179 = vmatprep.subr.mxu0 %v12546_v2 }
  0xed   :  { %1305 = vmatprep.subr.mxu1 %v12611_v45  ;;  %1183 = vmatpush1.msra.mxu0 %v12558_v8 }
  0xee   :  { %1307 = vmatpush1.msra.mxu1 %v12613_v46  ;;  %1187 = vmatprep.subr.mxu0 %v12561_v9 }
  0xef   :  { %1309 = vmatprep.subr.mxu1 %v12624_v51  ;;  %1191 = vmatpush1.msra.mxu0 %v12578_v28 }
  0xf0   :  { %1311 = vmatpush1.msra.mxu1 %v12636_v53  ;;  %1344 = vmatprep.mubr.f32.mxu1 %v14650_v18 }
  0xf1   :  { %1195 = vmatprep.subr.mxu0 %v12591_v37  ;;  %1346 = vmatmul.mubr.f32.vlgmr.msra.gmra.mxu1 %v12746_v47 }
  0xf2   :  { %1199 = vmatpush1.msra.mxu0 %v12602_v41  ;;  %1256 = vmatprep.mubr.f32.mxu0 %v14650_v18 }
  0xf3   :  { %1203 = vmatprep.subr.mxu0 %v12609_v3  ;;  %11417 = vmatprep.subr.mxu1 %v14650_v18 }
  0xf4   :  { %1207 = vmatpush1.msra.mxu0 %v12622_v15  ;;  %11425 = vmatprep.mubr.msk.f32.mxu1 %vm12336_vm4, %v14650_v18 }
  0xf5   :  { %1211 = vmatprep.subr.mxu0 %v12654_v30 }
  0xf6   :  { %1215 = vmatpush1.msra.mxu0 %v12657_v24 }
  0xf7   :  { %1219 = vmatprep.subr.mxu0 %v12669_v39 }
  0xf8   :  { %1223 = vmatpush1.msra.mxu0 %v12678_v44 }
  0xf9   :  { %1258 = vmatmul.mubr.f32.vlgmr.msra.gmra.mxu0 %v12746_v47  ;;  %11406 = vmatprep.subr.mxu0 %v14650_v18 }
  0xfa   :  { %11414 = vmatprep.mubr.msk.f32.mxu0 %vm12336_vm4, %v14650_v18 }
 0x11e   :  { %v11370_v14 = vpop.f32.mrf.mxu0 }
 0x11f   :  { %v277_v48 = vadd.f32 %v11370_v14, %v11044_v17  ;;  %v11377_v31 = vpop.f32.mrf.mxu1 }
 0x120   :  { %v266_v23 = vpop.f32.mrf.mxu0 }
 0x121   :  { %v267_v15 = vadd.f32 %v11044_v17, %v266_v23  ;;  %v364_v30 = vadd.f32 %v11377_v31, %v277_v48  ;;  %v357_v3 = vpop.f32.mrf.mxu1 }
 0x123   :  { %v358_v24 = vadd.f32 %v357_v3, %v267_v15  ;;  %v11391_v41 = vpop.f32.mrf.mxu1 }
 0x125   :  { %v521_v28 = vpop.f32.mrf.mxu1 }
 0x127   :  { %v11405_v54 = vpop.f32.mrf.mxu1 }
 0x128   :  { %v11384_v39 = vpop.f32.mrf.mxu0 }
 0x129   :  { %v447_v37 = vadd.f32 %v11384_v39, %v364_v30  ;;  %v685_v14 = vpop.f32.mrf.mxu1 }
 0x12a   :  { %v439_v44 = vpop.f32.mrf.mxu0 }
 0x12b   :  { %v440_v47 = vadd.f32 %v439_v44, %v358_v24  ;;  %v530_v9 = vadd.f32 %v11391_v41, %v447_v37 }
 0x12d   :  { %v522_v8 = vadd.f32 %v521_v28, %v440_v47 }
 0x12e   :  { %v11398_v2 = vpop.f32.mrf.mxu0 }
 0x12f   :  { %v613_v55 = vadd.f32 %v11398_v2, %v530_v9 }
 0x130   :  { %v606_v33 = vpop.f32.mrf.mxu0 }
 0x131   :  { %v12823_v43 = vadd.f32 %v11405_v54, %v613_v55  ;;  %v12825_v55 = vpop.permute.xlu0 %1359 }
 0x132   :  { %14652 = vst [vmem:[#allocation59_spill] sm:$0xff] %v12825_v55 }
 0x133   :  { %14651 = vst [vmem:[#allocation58_spill] sm:$0xff] %v12823_v43 }
 0x18f   :  { %v944_v40 = vpop.f32.mrf.mxu1 }
 0x191   :  { %v946_v48 = vpop.f32.mrf.mxu1 }
 0x197   :  { %v792_v17 = vpop.f32.mrf.mxu0 }
 0x198   :  { %v945_v37 = vadd.f32 %v944_v40, %v792_v17 }
 0x199   :  { %v794_v31 = vpop.f32.mrf.mxu0 }
 0x19a   :  { %v947_v3 = vadd.f32 %v946_v48, %v794_v31  ;;  %v607_v48 = vadd.f32 %v606_v33, %v522_v8  ;;  %v11043_v33 = vld [vmem:[%s14493_s8] ss:$0 sm:$0xff] }
 0x19c   :  { %v12832_v31 = vadd.f32 %v685_v14, %v607_v48  ;;  %v153_v48 = vld [vmem:[#allocation10 + $0x8] sm:$0xff] }
 0x19e   :  { %14653 = vst [vmem:[#allocation60_spill] sm:$0xff] %v12832_v31 }
 0x19f   :  { %v1139_v15 = vpop.f32.mrf.mxu1 }
 0x1a1   :  { %v1141_v27 = vpop.f32.mrf.mxu1 }
 0x1a8   :  { %v1049_v23 = vpop.f32.mrf.mxu0 }
 0x1a9   :  { %v1050_v28 = vadd.f32 %v1049_v23, %v945_v37 }
 0x1aa   :  { %v1051_v39 = vpop.f32.mrf.mxu0 }
 0x1ab   :  { %v1052_v30 = vadd.f32 %v1051_v39, %v947_v3  ;;  %v1140_v41 = vadd.f32 %v1139_v15, %v1050_v28 }
 0x1ad   :  { %v1142_v44 = vadd.f32 %v1141_v27, %v1052_v30 }
 0x1b1   :  { %v1347_v54 = vpop.f32.mrf.mxu1 }
 0x1b9   :  { %v1259_v2 = vpop.f32.mrf.mxu0 }
 0x1ba   :  { %v1260_v9 = vadd.f32 %v1259_v2, %v1140_v41  ;;  %v1349_v41 = vpop.f32.mrf.mxu1 }
 0x1bb   :  { %v1261_v8 = vpop.f32.mrf.mxu0 }
 0x1bc   :  { %v12827_v24 = vadd.f32 %v1347_v54, %v1260_v9  ;;  %v1262_v37 = vadd.f32 %v1261_v8, %v1142_v44 }
 0x1be   :  { %v1362_v47 = vadd.f32 %v12825_v55, %v12827_v24  ;;  %v1352_v27 = vadd.f32 %v12827_v24, %v12832_v31  ;;  %v1350_v2 = vadd.f32 %v1349_v41, %v1262_v37 }
 0x1c0   :  { %1364 = vrot.lane.b32.xlu1 %v1362_v47, %s12334_s1  ;;  %v11045_v40 = vmul.f32 -1.442695, %v1352_v27  ;;  %v154_v47 = vld [vmem:[#allocation10 + $0x10] sm:$0xff] }
 0x1c2   :  { %12018 = vpow2.f32 %v11045_v40  ;;  %v12853_v40 = vand.u32 4294901760, %v154_v47 }
 0x1cf   :  { %v12019_v17 = vpop.eup %12018 }
 0x1d0   :  { %v1356_v3 = vadd.f32 1.0, %v12019_v17  ;;  %v12855_v17 = vand.u32 4294901760, %v153_v48 }
 0x1d2   :  { %12020 = vrcp.f32 %v1356_v3  ;;  %v12862_v3 = vsub.f32 %v154_v47, %v12853_v40  ;;  %v152_v47 = vld [vmem:[#allocation10] sm:$0xff] }
 0x1d4   :  { %14656 = vst [vmem:[#allocation63_spill] sm:$0xff] %v12862_v3  ;;  %v12874_v8 = vand.u32 4294901760, %v12862_v3 }
 0x1d6   :  { %14659 = vst [vmem:[#allocation66_spill] sm:$0xff] %v12874_v8  ;;  %v1505_v37 = vsub.f32 %v12862_v3, %v12874_v8 }
 0x1df   :  { %v12836_v15 = vpop.eup %12020 }
 0x232   :  { %v1365_v23 = vpop.permute.xlu1 %1364 }
 0x233   :  { %v1367_v39 = vmul.f32 %v12836_v15, %v1365_v23  ;;  %v12865_v23 = vsub.f32 %v153_v48, %v12855_v17  ;;  %v12901_v48 = vand.u32 4294901760, %v152_v47 }
 0x235   :  { %1369 = vrot.lane.b32.xlu1 %v1367_v39, %s12334_s1  ;;  %14657 = vst [vmem:[#allocation64_spill] sm:$0xff] %v12865_v23 }
 0x239   :  { %1381 = vrot.lane.b32.xlu1 %v12738_v42, %s12322_s24  ;;  %v155_v42 = vld [vmem:[#allocation10 + $0x18] sm:$0xff] }
 0x23a   :  { %v12851_v27 = vand.u32 4294901760, %v155_v42 }
 0x23c   :  { %v12859_v44 = vsub.f32 %v155_v42, %v12851_v27  ;;  %11407 = vmatpush3.msra.mxu0 %v12851_v27 }
 0x23d   :  { %1898 = vrot.lane.b32.xlu1 %v11043_v33, %s12322_s24  ;;  %11408 = vmatprep.subr.mxu0 %v14650_v18 }
 0x23e   :  { %14655 = vst [vmem:[#allocation62_spill] sm:$0xff] %v12859_v44  ;;  %v12871_v33 = vand.u32 4294901760, %v12859_v44  ;;  %11409 = vmatpush3.msra.mxu0 %v12853_v40 }
 0x23f   :  { %11410 = vmatprep.subr.mxu0 %v14650_v18 }
 0x240   :  { %14658 = vst [vmem:[#allocation65_spill] sm:$0xff] %v12871_v33  ;;  %11411 = vmatpush3.msra.mxu0 %v12855_v17 }
 0x241   :  { %11412 = vmatprep.subr.mxu0 %v14650_v18 }
 0x242   :  { %11413 = vmatpush3.msra.mxu0 %v12901_v48 }
 0x243   :  { %11428 = vmatprep.subr.mxu0 %v14650_v18 }
 0x2a7   :  { %v1370_v14 = vpop.permute.xlu1 %1369 }
 0x2a8   :  { %v1372_v30 = vadd.f32 %v1370_v14, %v12832_v31  ;;  %v12877_v14 = vand.u32 4294901760, %v12865_v23 }
 0x2aa   :  { %12022 = vtanh.f32 %v1372_v30  ;;  %14660 = vst [vmem:[#allocation67_spill] sm:$0xff] %v12877_v14  ;;  %v1498_v30 = vsub.f32 %v12859_v44, %v12871_v33  ;;  %v1512_v41 = vsub.f32 %v12865_v23, %v12877_v14 }
 0x2ab   :  { %v1382_v28 = vpop.permute.xlu1 %1381 }
 0x2ac   :  { %v12894_v42 = vand.u32 4294901760, %v1512_v41 }
 0x2ae   :  { %14663 = vst [vmem:[#allocation70_spill] sm:$0xff] %v12894_v42 }
 0x2af   :  { %v12847_v9 = vpop.permute.xlu1 %1898 }
 0x2b0   :  { %14654 = vst [vmem:[#allocation61_spill] sm:$0xff] %v12847_v9  ;;  %v1901_v54 = vadd.f32 %v12847_v9, %v1350_v2  ;;  %v1384_v9 = vmul.f32 %v12836_v15, %v1382_v28  ;;  %v14668_v28 = vld [vmem:[#allocation34_spill] sm:$0xff] }
 0x2b2   :  { %1903 = vrot.lane.b32.xlu1 %v1901_v54, %s12335_s21  ;;  %v12891_v54 = vand.u32 4294901760, %v1505_v37 }
 0x2b4   :  { %14662 = vst [vmem:[#allocation69_spill] sm:$0xff] %v12891_v54 }
 0x2b6   :  { %1888 = vrot.lane.b32.xlu1 %v1350_v2, %s12322_s24  ;;  %v12889_v2 = vand.u32 4294901760, %v1498_v30 }
 0x2b7   :  { %v12023_v39 = vpop.eup %12022 }
 0x2b8   :  { %1376 = vrot.lane.b32.xlu0 %v12023_v39, %s12335_s21  ;;  %14661 = vst [vmem:[#allocation68_spill] sm:$0xff] %v12889_v2  ;;  %11418 = vmatpush3.msra.mxu1 %v12889_v2  ;;  %v12904_v39 = vsub.f32 %v152_v47, %v12901_v48  ;;  %v1374_v47 = vsub.f32 1.0, %v12836_v15  ;;  %v14667_v15 = vld [vmem:[#allocation32_spill] sm:$0xff] }
 0x2b9   :  { %11419 = vmatprep.subr.mxu1 %v14650_v18 }
 0x2ba   :  { %11420 = vmatpush3.msra.mxu1 %v12891_v54  ;;  %14664 = vst [vmem:[#allocation71_spill] sm:$0xff] %v12904_v39  ;;  %v12909_v30 = vand.u32 4294901760, %v12904_v39 }
 0x2bb   :  { %11421 = vmatprep.subr.mxu1 %v14650_v18 }
 0x2bc   :  { %11422 = vmatpush3.msra.mxu1 %v12894_v42  ;;  %14665 = vst [vmem:[#allocation72_spill] sm:$0xff] %v12909_v30  ;;  %v1519_v37 = vsub.f32 %v12904_v39, %v12909_v30 }
 0x2bd   :  { %11423 = vmatprep.subr.mxu1 %v14650_v18 }
 0x2be   :  { %v12913_v41 = vand.u32 4294901760, %v1519_v37 }
 0x2c0   :  { %14666 = vst [vmem:[#allocation73_spill] sm:$0xff] %v12913_v41  ;;  %11424 = vmatpush3.msra.mxu1 %v12913_v41 }
 0x2c1   :  { %11439 = vmatprep.subr.mxu1 %v14650_v18 }
 0x32a   :  { %v1377_v43 = vpop.permute.xlu0 %1376 }
 0x32b   :  { %v1379_v31 = vmul.f32 %v1377_v43, %v1374_v47  ;;  %v14673_v47 = vld [vmem:[#allocation56_spill] sm:$0xff] }
 0x32d   :  { %v12923_v55 = vadd.f32 %v1384_v9, %v1379_v31  ;;  %v14669_v9 = vld [vmem:[#allocation36_spill] sm:$0xff] }
 0x32f   :  { %1387 = vrot.lane.b32.xlu0 %v12923_v55, %s12335_s21 }
 0x333   :  { %1877 = vrot.lane.b32.xlu0 %v12827_v24, %s12322_s24 }
 0x3a1   :  { %v12929_v37 = vpop.permute.xlu0 %1387 }
 0x3a2   :  { %v1389_v41 = vsel %vm699_vm2, %v12929_v37, 0 }
 0x3a3   :  { %v1460_v42 = vand.u32 4294901760, %v1389_v41 }
 0x3a5   :  { %v1461_v54 = vsub.f32 %v1389_v41, %v1460_v42  ;;  %11426 = vmatmul.mubr.f32.vlgmr.msra.gmra.mxu1 %v1460_v42  ;;  %v14671_v41 = vld [vmem:[#allocation40_spill] sm:$0xff] }
 0x3a6   :  { %11440 = vmatpush3.msra.mxu1 %v12851_v27  ;;  %11447 = vmatprep.mubr.msk.f32.mxu1 %vm12336_vm4, %v14650_v18 }
 0x3a7   :  { %v1462_v43 = vand.u32 4294901760, %v1461_v54  ;;  %11441 = vmatprep.subr.mxu1 %v14650_v18 }
 0x3a8   :  { %11442 = vmatpush3.msra.mxu1 %v12853_v40 }
 0x3a9   :  { %v1463_v31 = vsub.f32 %v1461_v54, %v1462_v43  ;;  %11443 = vmatprep.subr.mxu1 %v14650_v18 }
 0x3aa   :  { %11444 = vmatpush3.msra.mxu1 %v12855_v17 }
 0x3ab   :  { %11445 = vmatprep.subr.mxu1 %v14650_v18  ;;  %v1464_v24 = vand.u32 4294901760, %v1463_v31 }
 0x3ac   :  { %11446 = vmatpush3.msra.mxu1 %v12901_v48 }
 0x3ad   :  { %11448 = vmatmul.mubr.f32.vlgmr.msra.gmra.mxu1 %v1462_v43  ;;  %11461 = vmatprep.subr.mxu1 %v14650_v18  ;;  %v14674_v43 = vld [vmem:[#allocation22_spill] sm:$0xff] }
 0x3ae   :  { %11415 = vmatmul.mubr.f32.vlgmr.msra.gmra.mxu0 %v1464_v24  ;;  %11462 = vmatpush3.msra.mxu1 %v12851_v27 }
 0x3af   :  { %11429 = vmatpush3.msra.mxu0 %v12859_v44  ;;  %11463 = vmatprep.subr.mxu1 %v14650_v18 }
 0x3b0   :  { %11430 = vmatprep.subr.mxu0 %v14650_v18  ;;  %11464 = vmatpush3.msra.mxu1 %v12853_v40 }
 0x3b1   :  { %11431 = vmatpush3.msra.mxu0 %v12862_v3  ;;  %11465 = vmatprep.subr.mxu1 %v14650_v18 }
 0x3b2   :  { %11432 = vmatprep.subr.mxu0 %v14650_v18  ;;  %11466 = vmatpush3.msra.mxu1 %v12855_v17 }
 0x3b3   :  { %11433 = vmatpush3.msra.mxu0 %v12865_v23  ;;  %11467 = vmatprep.subr.mxu1 %v14650_v18 }
 0x3b4   :  { %11434 = vmatprep.subr.mxu0 %v14650_v18  ;;  %11436 = vmatprep.mubr.msk.f32.mxu0 %vm12336_vm4, %v14650_v18 }
 0x3b5   :  { %11435 = vmatpush3.msra.mxu0 %v12904_v39  ;;  %11468 = vmatpush3.msra.mxu1 %v12901_v48 }
 0x3b6   :  { %11469 = vmatprep.mubr.msk.f32.mxu1 %vm12336_vm4, %v14650_v18  ;;  %11437 = vmatmul.mubr.f32.vlgmr.msra.gmra.mxu0 %v1461_v54  ;;  %v14670_v54 = vld [vmem:[#allocation38_spill] sm:$0xff] }
 0x3b7   :  { %11450 = vmatprep.subr.mxu0 %v14650_v18  ;;  %11470 = vmatmul.mubr.f32.vlgmr.msra.gmra.mxu1 %v1460_v42 }
 0x3b8   :  { %11451 = vmatpush3.msra.mxu0 %v12871_v33  ;;  %11458 = vmatprep.mubr.msk.f32.mxu0 %vm12336_vm4, %v14650_v18 }
 0x3b9   :  { %11452 = vmatprep.subr.mxu0 %v14650_v18  ;;  %2039 = vmatprep.subr.mxu1 %v12586_v32 }
 0x3ba   :  { %11453 = vmatpush3.msra.mxu0 %v12874_v8  ;;  %2045 = vmatpush1.msra.mxu1 %v14667_v15 }
 0x3bb   :  { %11454 = vmatprep.subr.mxu0 %v14650_v18  ;;  %2051 = vmatprep.subr.mxu1 %v14668_v28 }
 0x3bc   :  { %11455 = vmatpush3.msra.mxu0 %v12877_v14  ;;  %2057 = vmatpush1.msra.mxu1 %v14669_v9 }
 0x3bd   :  { %11456 = vmatprep.subr.mxu0 %v14650_v18  ;;  %2063 = vmatprep.subr.mxu1 %v14670_v54 }
 0x3be   :  { %11457 = vmatpush3.msra.mxu0 %v12909_v30  ;;  %2069 = vmatpush1.msra.mxu1 %v14671_v41 }
 0x3bf   :  { %11459 = vmatmul.mubr.f32.vlgmr.msra.gmra.mxu0 %v1460_v42  ;;  %2075 = vmatprep.subr.mxu1 %v12642_v7  ;;  %v14672_v42 = vld [vmem:[#allocation55_spill] sm:$0xff] }
 0x3c0   :  { %2081 = vmatpush1.msra.mxu1 %v12664_v38  ;;  %1943 = vmatprep.subr.mxu0 %v12442_v10 }
 0x3c1   :  { %2087 = vmatprep.subr.mxu1 %v12673_v36  ;;  %1945 = vmatpush1.msra.mxu0 %v12459_v19 }
 0x3c2   :  { %2093 = vmatpush1.msra.mxu1 %v12682_v22  ;;  %1947 = vmatprep.subr.mxu0 %v12461_v20 }
 0x3c3   :  { %2099 = vmatprep.subr.mxu1 %v12688_v52  ;;  %1949 = vmatpush1.msra.mxu0 %v12463_v21 }
 0x3c4   :  { %2105 = vmatpush1.msra.mxu1 %v12694_v1  ;;  %1951 = vmatprep.subr.mxu0 %v12508_v49  ;;  %v13010_v1 = vld [vmem:[%s14492_s7] ss:$0 sm:$0xff] }
 0x3c5   :  { %2111 = vmatprep.subr.mxu1 %v12700_v16  ;;  %1953 = vmatpush1.msra.mxu0 %v12510_v50  ;;  %14675 = vst [vmem:[#allocation74_spill] sm:$0xff] %v13010_v1 }
 0x3c6   :  { %2117 = vmatpush1.msra.mxu1 %v12704_v12  ;;  %1955 = vmatprep.subr.mxu0 %v12520_v56 }
 0x3c7   :  { %2123 = vmatprep.subr.mxu1 %v14672_v42  ;;  %1957 = vmatpush1.msra.mxu0 %v12528_v59 }
 0x3c8   :  { %2129 = vmatpush1.msra.mxu1 %v14673_v47  ;;  %1959 = vmatprep.subr.mxu0 %v12530_v60 }
 0x3c9   :  { %2162 = vmatprep.mubr.f32.mxu1 %v14650_v18  ;;  %2292 = vmatprep.subr.mxu1 %v12442_v10 }
 0x3ca   :  { %1961 = vmatpush1.msra.mxu0 %v12535_v62  ;;  %2006 = vmatprep.mubr.f32.mxu0 %v14650_v18 }
 0x3cb   :  { %1963 = vmatprep.subr.mxu0 %v12537_v63 }
 0x3cc   :  { %1965 = vmatpush1.msra.mxu0 %v12539_v0 }
 0x3cd   :  { %1967 = vmatprep.subr.mxu0 %v12611_v45 }
 0x3ce   :  { %1969 = vmatpush1.msra.mxu0 %v12613_v46 }
 0x3cf   :  { %1971 = vmatprep.subr.mxu0 %v12624_v51 }
 0x3d0   :  { %1973 = vmatpush1.msra.mxu0 %v12636_v53 }
 0x3d1   :  { %2188 = vmatprep.subr.mxu0 %v14674_v43 }
 0x465   :  { %v1557_v31 = vpop.f32.mrf.mxu1 }
 0x467   :  { %v11427_v24 = vpop.f32.mrf.mxu1 }
 0x46d   :  { %v1714_v47 = vpop.f32.mrf.mxu1 }
 0x46e   :  { %v1466_v42 = vpop.f32.mrf.mxu0 }
 0x46f   :  { %v11449_v12 = vpop.f32.mrf.mxu1  ;;  %v1467_v52 = vadd.f32 %v13010_v1, %v1466_v42  ;;  %v1904_v42 = vpop.permute.xlu1 %1903 }
 0x470   :  { %v11416_v16 = vpop.f32.mrf.mxu0  ;;  %v1878_v12 = vpop.permute.xlu0 %1877 }
 0x471   :  { %v1558_v38 = vadd.f32 %v1557_v31, %v1467_v52 }
 0x476   :  { %v1637_v22 = vpop.f32.mrf.mxu0 }
 0x477   :  { %v1872_v36 = vpop.f32.mrf.mxu1  ;;  %v1638_v30 = vadd.f32 %v1637_v22, %v1558_v38  ;;  %v1889_v22 = vpop.permute.xlu1 %1888 }
 0x478   :  { %v11438_v7 = vpop.f32.mrf.mxu0 }
 0x479   :  { %v11471_v41 = vpop.f32.mrf.mxu1  ;;  %v1715_v43 = vadd.f32 %v1714_v47, %v1638_v30 }
 0x47f   :  { %v1797_v54 = vpop.f32.mrf.mxu0 }
 0x480   :  { %v1798_v24 = vadd.f32 %v1797_v54, %v1715_v43 }
 0x481   :  { %v11460_v9 = vpop.f32.mrf.mxu0 }
 0x482   :  { %v1873_v14 = vadd.f32 %v1872_v36, %v1798_v24 }
 0x484   :  { %v1880_v16 = vadd.f32 %v1878_v12, %v1873_v14  ;;  %v1891_v36 = vadd.f32 %v1889_v22, %v1873_v14  ;;  %v14682_v22 = vld [vmem:[#allocation25_spill] sm:$0xff] }
 0x486   :  { %v11046_v28 = vmul.f32 -1.442695, %v1880_v16  ;;  %v11047_v30 = vmul.f32 -1.442695, %v1891_v36  ;;  %v14683_v36 = vld [vmem:[#allocation26_spill] sm:$0xff] }
 0x488   :  { %12024 = vpow2.f32 %v11046_v28 }
 0x495   :  { %v12025_v15 = vpop.eup %12024 }
 0x496   :  { %v1884_v8 = vadd.f32 1.0, %v12025_v15 }
 0x498   :  { %12026 = vrcp.f32 %v1884_v8 }
 0x4a5   :  { %v12027_v32 = vpop.eup %12026 }
 0x4a6   :  { %v1906_v1 = vmul.f32 %v12027_v32, %v1904_v42  ;;  %v14676_v32 = vld [vmem:[#allocation57_spill] sm:$0xff]  ;;  %v14678_v42 = vld [vmem:[#allocation42_spill] sm:$0xff] }
 0x4a8   :  { %1908 = vrot.lane.b32.xlu0 %v1906_v1, %s12334_s1 }
 0x51a   :  { %v1909_v7 = vpop.permute.xlu0 %1908 }
 0x51b   :  { %v1911_v52 = vadd.f32 %v1909_v7, %v1873_v14  ;;  %v14679_v7 = vld [vmem:[#allocation45_spill] sm:$0xff] }
 0x51d   :  { %12028 = vtanh.f32 %v1911_v52  ;;  %v14680_v52 = vld [vmem:[#allocation23_spill] sm:$0xff] }
 0x51e   :  { %12030 = vpow2.f32 %v11047_v30  ;;  %v14684_v30 = vld [vmem:[#allocation27_spill] sm:$0xff] }
 0x52a   :  { %v12029_v38 = vpop.eup %12028 }
 0x52b   :  { %1915 = vrot.lane.b32.xlu0 %v12029_v38, %s12335_s21  ;;  %v12031_v9 = vpop.eup %12030  ;;  %v14681_v38 = vld [vmem:[#allocation24_spill] sm:$0xff] }
 0x52c   :  { %v1895_v28 = vadd.f32 1.0, %v12031_v9  ;;  %v14685_v9 = vld [vmem:[#allocation28_spill] sm:$0xff] }
 0x52e   :  { %12032 = vrcp.f32 %v1895_v28  ;;  %v14686_v28 = vld [vmem:[#allocation29_spill] sm:$0xff] }
 0x53b   :  { %v12033_v15 = vpop.eup %12032 }
 0x53c   :  { %v1913_v8 = vsub.f32 1.0, %v12033_v15  ;;  %v1919_v47 = vmul.f32 %v12033_v15, %v14676_v32  ;;  %v14687_v15 = vld [vmem:[#allocation30_spill] sm:$0xff]  ;;  %v14691_v32 = vld [vmem:[#allocation39_spill] sm:$0xff] }
 0x59d   :  { %v1916_v54 = vpop.permute.xlu0 %1915 }
 0x59e   :  { %v1918_v41 = vmul.f32 %v1916_v54, %v1913_v8  ;;  %v14688_v8 = vld [vmem:[#allocation33_spill] sm:$0xff]  ;;  %v14689_v54 = vld [vmem:[#allocation35_spill] sm:$0xff] }
 0x5a0   :  { %v13016_v1 = vadd.f32 %v1919_v47, %v1918_v41  ;;  %v14690_v41 = vld [vmem:[#allocation37_spill] sm:$0xff]  ;;  %v14692_v47 = vld [vmem:[#allocation43_spill] sm:$0xff] }
 0x5a2   :  { %14677 = vst [vmem:[#allocation57_spill] sm:$0xff] %v13016_v1  ;;  %v1922_v43 = vsel %vm699_vm2, %v12929_v37, %v13016_v1 }
 0x5a3   :  { %v1924_v31 = vsel %vm701_vm3, %v1922_v43, 0  ;;  %v14693_v43 = vld [vmem:[#allocation44_spill] sm:$0xff] }
 0x5a4   :  { %v13022_v14 = vand.u32 4294901760, %v1924_v31 }
 0x5a6   :  { %2164 = vmatmul.mubr.f32.vlgmr.msra.gmra.mxu1 %v13022_v14  ;;  %v2008_v24 = vsub.f32 %v1924_v31, %v13022_v14  ;;  %v14694_v31 = vld [vmem:[#allocation69_spill] sm:$0xff] }
 0x5a7   :  { %2294 = vmatpush1.msra.mxu1 %v12459_v19  ;;  %2355 = vmatprep.mubr.f32.mxu1 %v14650_v18 }
 0x5a8   :  { %2296 = vmatprep.subr.mxu1 %v12461_v20  ;;  %v2009_v12 = vand.u32 4294901760, %v2008_v24 }
 0x5a9   :  { %2298 = vmatpush1.msra.mxu1 %v12463_v21 }
 0x5aa   :  { %2300 = vmatprep.subr.mxu1 %v12508_v49  ;;  %v2010_v37 = vsub.f32 %v2008_v24, %v2009_v12 }
 0x5ab   :  { %2302 = vmatpush1.msra.mxu1 %v12510_v50 }
 0x5ac   :  { %2304 = vmatprep.subr.mxu1 %v12520_v56  ;;  %v2011_v16 = vand.u32 4294901760, %v2010_v37  ;;  %v14697_v37 = vld [vmem:[#allocation70_spill] sm:$0xff] }
 0x5ad   :  { %2306 = vmatpush1.msra.mxu1 %v12528_v59 }
 0x5ae   :  { %2308 = vmatprep.subr.mxu1 %v12530_v60  ;;  %2012 = vmatmul.mubr.f32.vlgmr.msra.gmra.mxu0 %v2011_v16  ;;  %v14698_v16 = vld [vmem:[#allocation73_spill] sm:$0xff] }
 0x5af   :  { %2191 = vmatpush1.msra.mxu0 %v12481_v26  ;;  %2310 = vmatpush1.msra.mxu1 %v12535_v62 }
 0x5b0   :  { %2194 = vmatprep.subr.mxu0 %v12495_v34  ;;  %2312 = vmatprep.subr.mxu1 %v12537_v63 }
 0x5b1   :  { %2197 = vmatpush1.msra.mxu0 %v12498_v35  ;;  %2314 = vmatpush1.msra.mxu1 %v12539_v0 }
 0x5b2   :  { %2200 = vmatprep.subr.mxu0 %v12523_v57  ;;  %2316 = vmatprep.subr.mxu1 %v12611_v45 }
 0x5b3   :  { %2203 = vmatpush1.msra.mxu0 %v12526_v58  ;;  %2318 = vmatpush1.msra.mxu1 %v12613_v46 }
 0x5b4   :  { %2206 = vmatprep.subr.mxu0 %v12533_v61  ;;  %2320 = vmatprep.subr.mxu1 %v12624_v51 }
 0x5b5   :  { %2209 = vmatpush1.msra.mxu0 %v12549_v5  ;;  %2322 = vmatpush1.msra.mxu1 %v12636_v53 }
 0x5b6   :  { %2212 = vmatprep.subr.mxu0 %v12552_v6  ;;  %2359 = vmatmul.mubr.f32.vlgmr.msra.gmra.mxu1 %v2009_v12  ;;  %v14696_v12 = vld [vmem:[#allocation49_spill] sm:$0xff] }
 0x5b7   :  { %2502 = vmatprep.subr.mxu1 %v12442_v10  ;;  %2215 = vmatpush1.msra.mxu0 %v12564_v11 }
 0x5b8   :  { %2504 = vmatpush1.msra.mxu1 %v12459_v19  ;;  %2218 = vmatprep.subr.mxu0 %v12571_v13 }
 0x5b9   :  { %2506 = vmatprep.subr.mxu1 %v12461_v20  ;;  %2221 = vmatpush1.msra.mxu0 %v12581_v29 }
 0x5ba   :  { %2508 = vmatpush1.msra.mxu1 %v12463_v21  ;;  %2224 = vmatprep.subr.mxu0 %v12631_v4 }
 0x5bb   :  { %2510 = vmatprep.subr.mxu1 %v12508_v49  ;;  %2227 = vmatpush1.msra.mxu0 %v12634_v25 }
 0x5bc   :  { %2512 = vmatpush1.msra.mxu1 %v12510_v50  ;;  %2230 = vmatprep.subr.mxu0 %v14678_v42 }
 0x5bd   :  { %2514 = vmatprep.subr.mxu1 %v12520_v56  ;;  %2233 = vmatpush1.msra.mxu0 %v14679_v7 }
 0x5be   :  { %2266 = vmatprep.mubr.f32.mxu0 %v14650_v18  ;;  %2516 = vmatpush1.msra.mxu1 %v12528_v59 }
 0x5bf   :  { %2269 = vmatmul.mubr.f32.vlgmr.msra.gmra.mxu0 %v2008_v24  ;;  %2384 = vmatprep.subr.mxu0 %v14680_v52  ;;  %v14695_v24 = vld [vmem:[#allocation47_spill] sm:$0xff] }
 0x5c0   :  { %2518 = vmatprep.subr.mxu1 %v12530_v60  ;;  %2388 = vmatpush1.msra.mxu0 %v14681_v38 }
 0x5c1   :  { %2520 = vmatpush1.msra.mxu1 %v12535_v62  ;;  %2392 = vmatprep.subr.mxu0 %v14682_v22  ;;  %v14699_v22 = vld [vmem:[#allocation59_spill] sm:$0xff] }
 0x5c2   :  { %2522 = vmatprep.subr.mxu1 %v12537_v63  ;;  %2396 = vmatpush1.msra.mxu0 %v14683_v36 }
 0x5c3   :  { %2524 = vmatpush1.msra.mxu1 %v12539_v0  ;;  %2400 = vmatprep.subr.mxu0 %v14684_v30 }
 0x5c4   :  { %2526 = vmatprep.subr.mxu1 %v12611_v45  ;;  %2404 = vmatpush1.msra.mxu0 %v14685_v9 }
 0x5c5   :  { %2528 = vmatpush1.msra.mxu1 %v12613_v46  ;;  %2408 = vmatprep.subr.mxu0 %v14686_v28 }
 0x5c6   :  { %2530 = vmatprep.subr.mxu1 %v12624_v51  ;;  %2412 = vmatpush1.msra.mxu0 %v14687_v15 }
 0x5c7   :  { %2532 = vmatpush1.msra.mxu1 %v12636_v53  ;;  %2565 = vmatprep.mubr.f32.mxu1 %v14650_v18 }
 0x5c8   :  { %2416 = vmatprep.subr.mxu0 %v14688_v8  ;;  %2567 = vmatmul.mubr.f32.vlgmr.msra.gmra.mxu1 %v13022_v14 }
 0x5c9   :  { %2420 = vmatpush1.msra.mxu0 %v14689_v54  ;;  %2477 = vmatprep.mubr.f32.mxu0 %v14650_v18 }
 0x5ca   :  { %2424 = vmatprep.subr.mxu0 %v14690_v41  ;;  %11483 = vmatprep.subr.mxu1 %v14650_v18 }
 0x5cb   :  { %2428 = vmatpush1.msra.mxu0 %v14691_v32  ;;  %11484 = vmatpush3.msra.mxu1 %v12889_v2 }
 0x5cc   :  { %2432 = vmatprep.subr.mxu0 %v14692_v47  ;;  %11485 = vmatprep.subr.mxu1 %v14650_v18 }
 0x5cd   :  { %2436 = vmatpush1.msra.mxu0 %v14693_v43  ;;  %11486 = vmatpush3.msra.mxu1 %v14694_v31 }
 0x5ce   :  { %2440 = vmatprep.subr.mxu0 %v14695_v24  ;;  %11487 = vmatprep.subr.mxu1 %v14650_v18 }
 0x5cf   :  { %2444 = vmatpush1.msra.mxu0 %v14696_v12  ;;  %11488 = vmatpush3.msra.mxu1 %v14697_v37 }
 0x5d0   :  { %2479 = vmatmul.mubr.f32.vlgmr.msra.gmra.mxu0 %v13022_v14  ;;  %11489 = vmatprep.subr.mxu1 %v14650_v18 }
 0x5d1   :  { %11490 = vmatpush3.msra.mxu1 %v14698_v16  ;;  %11472 = vmatprep.subr.mxu0 %v14650_v18 }
 0x5d2   :  { %11491 = vmatprep.mubr.msk.f32.mxu1 %vm12336_vm4, %v14650_v18  ;;  %11505 = vmatprep.subr.mxu1 %v14650_v18 }
 0x5d3   :  { %11473 = vmatpush3.msra.mxu0 %v12851_v27  ;;  %11480 = vmatprep.mubr.msk.f32.mxu0 %vm12336_vm4, %v14650_v18 }
 0x5d4   :  { %11474 = vmatprep.subr.mxu0 %v14650_v18 }
 0x5d5   :  { %11475 = vmatpush3.msra.mxu0 %v12853_v40 }
 0x5d6   :  { %11476 = vmatprep.subr.mxu0 %v14650_v18 }
 0x5d7   :  { %11477 = vmatpush3.msra.mxu0 %v12855_v17 }
 0x5d8   :  { %11478 = vmatprep.subr.mxu0 %v14650_v18 }
 0x5d9   :  { %11479 = vmatpush3.msra.mxu0 %v12901_v48 }
 0x5da   :  { %11494 = vmatprep.subr.mxu0 %v14650_v18 }
 0x666   :  { %v2165_v14 = vpop.f32.mrf.mxu1 }
 0x668   :  { %v2167_v37 = vpop.f32.mrf.mxu1 }
 0x66e   :  { %v2013_v16 = vpop.f32.mrf.mxu0 }
 0x66f   :  { %v2166_v54 = vadd.f32 %v2165_v14, %v2013_v16 }
 0x670   :  { %v2015_v12 = vpop.f32.mrf.mxu0 }
 0x671   :  { %v2168_v24 = vadd.f32 %v2167_v37, %v2015_v12  ;;  %v14700_v12 = vld [vmem:[#allocation60_spill] sm:$0xff] }
 0x676   :  { %v2360_v31 = vpop.f32.mrf.mxu1 }
 0x678   :  { %v2362_v32 = vpop.f32.mrf.mxu1 }
 0x67f   :  { %v2270_v43 = vpop.f32.mrf.mxu0 }
 0x680   :  { %v2271_v8 = vadd.f32 %v2270_v43, %v2166_v54 }
 0x681   :  { %v2272_v47 = vpop.f32.mrf.mxu0 }
 0x682   :  { %v2273_v2 = vadd.f32 %v2272_v47, %v2168_v24  ;;  %v2361_v15 = vadd.f32 %v2360_v31, %v2271_v8 }
 0x684   :  { %v2363_v41 = vadd.f32 %v2362_v32, %v2273_v2 }
 0x688   :  { %v2568_v30 = vpop.f32.mrf.mxu1 }
 0x68a   :  { %v2570_v16 = vpop.f32.mrf.mxu1 }
 0x690   :  { %v2480_v28 = vpop.f32.mrf.mxu0 }
 0x691   :  { %v2481_v9 = vadd.f32 %v2480_v28, %v2361_v15 }
 0x693   :  { %v2569_v36 = vadd.f32 %v2568_v30, %v2481_v9 }
 0x695   :  { %v2583_v38 = vadd.f32 %v2569_v36, %v14699_v22  ;;  %v2574_v7 = vrot.slane %v2569_v36, 6 }
 0x697   :  { %v2585_v52 = vrot.slane %v2583_v38, 6  ;;  %v2576_v37 = vadd.f32 %v2574_v7, %v14700_v12  ;;  %v2482_v7 = vpop.f32.mrf.mxu0 }
 0x698   :  { %v2483_v15 = vadd.f32 %v2482_v7, %v2363_v41  ;;  %v14704_v7 = vld [vmem:[#allocation32_spill] sm:$0xff] }
 0x699   :  { %2586 = vrot.lane.b32.xlu1 %v2585_v52, %s12334_s1  ;;  %v11048_v42 = vmul.f32 -1.442695, %v2576_v37 }
 0x69a   :  { %v2571_v14 = vadd.f32 %v2570_v16, %v2483_v15  ;;  %v14708_v15 = vld [vmem:[#allocation38_spill] sm:$0xff]  ;;  %v14711_v16 = vld [vmem:[#allocation41_spill] sm:$0xff] }
 0x69b   :  { %12034 = vpow2.f32 %v11048_v42  ;;  %v2602_v42 = vrot.slane %v12923_v55, 6 }
 0x6a8   :  { %v12035_v47 = vpop.eup %12034 }
 0x6a9   :  { %v2580_v24 = vadd.f32 1.0, %v12035_v47  ;;  %v14701_v47 = vld [vmem:[#allocation61_spill] sm:$0xff] }
 0x6ab   :  { %12036 = vrcp.f32 %v2580_v24  ;;  %v3118_v24 = vadd.f32 %v2571_v14, %v14701_v47 }
 0x6b8   :  { %v12037_v2 = vpop.eup %12036 }
 0x6b9   :  { %v2596_v52 = vsub.f32 1.0, %v12037_v2  ;;  %v2604_v32 = vmul.f32 %v12037_v2, %v2602_v42  ;;  %v14705_v42 = vld [vmem:[#allocation34_spill] sm:$0xff] }
 0x70b   :  { %v2587_v54 = vpop.permute.xlu1 %2586 }
 0x70c   :  { %v2589_v8 = vmul.f32 %v12037_v2, %v2587_v54 }
 0x70e   :  { %2591 = vrot.lane.b32.xlu0 %v2589_v8, %s12334_s1 }
 0x780   :  { %v2592_v28 = vpop.permute.xlu0 %2591 }
 0x781   :  { %v2594_v30 = vadd.f32 %v2592_v28, %v14700_v12 }
 0x783   :  { %12038 = vtanh.f32 %v2594_v30  ;;  %v14702_v30 = vld [vmem:[#allocation31_spill] sm:$0xff] }
 0x790   :  { %v12039_v38 = vpop.eup %12038 }
 0x791   :  { %2598 = vrot.lane.b32.xlu1 %v12039_v38, %s12335_s21  ;;  %v14703_v38 = vld [vmem:[#allocation66_spill] sm:$0xff] }
 0x795   :  { %3097 = vrot.lane.b32.xlu1 %v2569_v36, %s12322_s24 }
 0x803   :  { %v2599_v9 = vpop.permute.xlu1 %2598 }
 0x804   :  { %v2601_v43 = vmul.f32 %v2599_v9, %v2596_v52  ;;  %v14706_v52 = vld [vmem:[#allocation67_spill] sm:$0xff]  ;;  %v14707_v9 = vld [vmem:[#allocation36_spill] sm:$0xff] }
 0x806   :  { %v13124_v31 = vadd.f32 %v2604_v32, %v2601_v43  ;;  %v14709_v32 = vld [vmem:[#allocation72_spill] sm:$0xff] }
 0x807   :  { %v14710_v43 = vld [vmem:[#allocation40_spill] sm:$0xff] }
 0x808   :  { %v2607_v37 = vrot.slane %v13124_v31, 2 }
 0x80a   :  { %2608 = vrot.lane.b32.xlu0 %v2607_v37, %s12335_s21  ;;  %v14713_v37 = vld [vmem:[#allocation48_spill] sm:$0xff] }
 0x80e   :  { %3120 = vrot.lane.b32.xlu0 %v3118_v24, %s12335_s21  ;;  %v14714_v24 = vld [vmem:[#allocation50_spill] sm:$0xff] }
 0x812   :  { %3108 = vrot.lane.b32.xlu0 %v2571_v14, %s12322_s24  ;;  %v14712_v14 = vld [vmem:[#allocation46_spill] sm:$0xff] }
 0x816   :  { %3138 = vrot.lane.b32.xlu0 %v13124_v31, %s12335_s21 }
 0x87c   :  { %v2609_v55 = vpop.permute.xlu0 %2608 }
 0x87d   :  { %v2610_v36 = vsel %vm699_vm2, %v2609_v55, 0  ;;  %v14715_v55 = vld [vmem:[#allocation51_spill] sm:$0xff] }
 0x87e   :  { %v2681_v41 = vand.u32 4294901760, %v2610_v36 }
 0x880   :  { %v2682_v2 = vsub.f32 %v2610_v36, %v2681_v41  ;;  %11492 = vmatmul.mubr.f32.vlgmr.msra.gmra.mxu1 %v2681_v41  ;;  %v14716_v36 = vld [vmem:[#allocation52_spill] sm:$0xff] }
 0x881   :  { %11506 = vmatpush3.msra.mxu1 %v12851_v27  ;;  %11513 = vmatprep.mubr.msk.f32.mxu1 %vm12336_vm4, %v14650_v18 }
 0x882   :  { %v2683_v54 = vand.u32 4294901760, %v2682_v2  ;;  %11507 = vmatprep.subr.mxu1 %v14650_v18 }
 0x883   :  { %11508 = vmatpush3.msra.mxu1 %v12853_v40 }
 0x884   :  { %v2684_v8 = vsub.f32 %v2682_v2, %v2683_v54  ;;  %11509 = vmatprep.subr.mxu1 %v14650_v18 }
 0x885   :  { %11510 = vmatpush3.msra.mxu1 %v12855_v17 }
 0x886   :  { %v2685_v28 = vand.u32 4294901760, %v2684_v8  ;;  %11511 = vmatprep.subr.mxu1 %v14650_v18  ;;  %v14720_v8 = vld [vmem:[#allocation56_spill] sm:$0xff] }
 0x887   :  { %11512 = vmatpush3.msra.mxu1 %v12901_v48 }
 0x888   :  { %11514 = vmatmul.mubr.f32.vlgmr.msra.gmra.mxu1 %v2683_v54  ;;  %11527 = vmatprep.subr.mxu1 %v14650_v18  ;;  %v14719_v54 = vld [vmem:[#allocation55_spill] sm:$0xff] }
 0x889   :  { %11481 = vmatmul.mubr.f32.vlgmr.msra.gmra.mxu0 %v2685_v28  ;;  %11528 = vmatpush3.msra.mxu1 %v12851_v27  ;;  %v14721_v28 = vld [vmem:[#allocation22_spill] sm:$0xff] }
 0x88a   :  { %11495 = vmatpush3.msra.mxu0 %v12859_v44  ;;  %11529 = vmatprep.subr.mxu1 %v14650_v18 }
 0x88b   :  { %11496 = vmatprep.subr.mxu0 %v14650_v18  ;;  %11530 = vmatpush3.msra.mxu1 %v12853_v40 }
 0x88c   :  { %11497 = vmatpush3.msra.mxu0 %v12862_v3  ;;  %11531 = vmatprep.subr.mxu1 %v14650_v18 }
 0x88d   :  { %11498 = vmatprep.subr.mxu0 %v14650_v18  ;;  %11532 = vmatpush3.msra.mxu1 %v12855_v17 }
 0x88e   :  { %11499 = vmatpush3.msra.mxu0 %v12865_v23  ;;  %11533 = vmatprep.subr.mxu1 %v14650_v18 }
 0x88f   :  { %11500 = vmatprep.subr.mxu0 %v14650_v18  ;;  %11502 = vmatprep.mubr.msk.f32.mxu0 %vm12336_vm4, %v14650_v18 }
 0x890   :  { %11501 = vmatpush3.msra.mxu0 %v12904_v39  ;;  %11534 = vmatpush3.msra.mxu1 %v12901_v48 }
 0x891   :  { %11535 = vmatprep.mubr.msk.f32.mxu1 %vm12336_vm4, %v14650_v18  ;;  %11503 = vmatmul.mubr.f32.vlgmr.msra.gmra.mxu0 %v2682_v2  ;;  %v14718_v2 = vld [vmem:[#allocation54_spill] sm:$0xff] }
 0x892   :  { %11516 = vmatprep.subr.mxu0 %v14650_v18  ;;  %11536 = vmatmul.mubr.f32.vlgmr.msra.gmra.mxu1 %v2681_v41 }
 0x893   :  { %11517 = vmatpush3.msra.mxu0 %v12871_v33  ;;  %11524 = vmatprep.mubr.msk.f32.mxu0 %vm12336_vm4, %v14650_v18 }
 0x894   :  { %11518 = vmatprep.subr.mxu0 %v14650_v18  ;;  %3262 = vmatprep.subr.mxu1 %v14702_v30 }
 0x895   :  { %11519 = vmatpush3.msra.mxu0 %v14703_v38  ;;  %3268 = vmatpush1.msra.mxu1 %v14704_v7 }
 0x896   :  { %11520 = vmatprep.subr.mxu0 %v14650_v18  ;;  %3274 = vmatprep.subr.mxu1 %v14705_v42 }
 0x897   :  { %11521 = vmatpush3.msra.mxu0 %v14706_v52  ;;  %3280 = vmatpush1.msra.mxu1 %v14707_v9 }
 0x898   :  { %11522 = vmatprep.subr.mxu0 %v14650_v18  ;;  %3286 = vmatprep.subr.mxu1 %v14708_v15 }
 0x899   :  { %11523 = vmatpush3.msra.mxu0 %v14709_v32  ;;  %3292 = vmatpush1.msra.mxu1 %v14710_v43 }
 0x89a   :  { %11525 = vmatmul.mubr.f32.vlgmr.msra.gmra.mxu0 %v2681_v41  ;;  %3298 = vmatprep.subr.mxu1 %v14711_v16  ;;  %v14717_v41 = vld [vmem:[#allocation53_spill] sm:$0xff] }
 0x89b   :  { %3304 = vmatpush1.msra.mxu1 %v14712_v14  ;;  %3166 = vmatprep.subr.mxu0 %v12442_v10 }
 0x89c   :  { %3310 = vmatprep.subr.mxu1 %v14713_v37  ;;  %3168 = vmatpush1.msra.mxu0 %v12459_v19 }
 0x89d   :  { %3316 = vmatpush1.msra.mxu1 %v14714_v24  ;;  %3170 = vmatprep.subr.mxu0 %v12461_v20  ;;  %v14722_v24 = vld [vmem:[#allocation74_spill] sm:$0xff] }
 0x89e   :  { %3322 = vmatprep.subr.mxu1 %v14715_v55  ;;  %3172 = vmatpush1.msra.mxu0 %v12463_v21 }
 0x89f   :  { %3328 = vmatpush1.msra.mxu1 %v14716_v36  ;;  %3174 = vmatprep.subr.mxu0 %v12508_v49 }
 0x8a0   :  { %3334 = vmatprep.subr.mxu1 %v14717_v41  ;;  %3176 = vmatpush1.msra.mxu0 %v12510_v50 }
 0x8a1   :  { %3340 = vmatpush1.msra.mxu1 %v14718_v2  ;;  %3178 = vmatprep.subr.mxu0 %v12520_v56 }
 0x8a2   :  { %3346 = vmatprep.subr.mxu1 %v14719_v54  ;;  %3180 = vmatpush1.msra.mxu0 %v12528_v59 }
 0x8a3   :  { %3352 = vmatpush1.msra.mxu1 %v14720_v8  ;;  %3182 = vmatprep.subr.mxu0 %v12530_v60 }
 0x8a4   :  { %3385 = vmatprep.mubr.f32.mxu1 %v14650_v18  ;;  %3515 = vmatprep.subr.mxu1 %v12442_v10 }
 0x8a5   :  { %3184 = vmatpush1.msra.mxu0 %v12535_v62  ;;  %3229 = vmatprep.mubr.f32.mxu0 %v14650_v18 }
 0x8a6   :  { %3186 = vmatprep.subr.mxu0 %v12537_v63 }
 0x8a7   :  { %3188 = vmatpush1.msra.mxu0 %v12539_v0 }
 0x8a8   :  { %3190 = vmatprep.subr.mxu0 %v12611_v45 }
 0x8a9   :  { %3192 = vmatpush1.msra.mxu0 %v12613_v46 }
 0x8aa   :  { %3194 = vmatprep.subr.mxu0 %v12624_v51 }
 0x8ab   :  { %3196 = vmatpush1.msra.mxu0 %v12636_v53 }
 0x8ac   :  { %3411 = vmatprep.subr.mxu0 %v14721_v28  ;;  %v3098_v28 = vpop.permute.xlu1 %3097 }
 0x940   :  { %v2778_v8 = vpop.f32.mrf.mxu1 }
 0x942   :  { %v11493_v54 = vpop.f32.mrf.mxu1 }
 0x948   :  { %v2935_v2 = vpop.f32.mrf.mxu1 }
 0x949   :  { %v2687_v41 = vpop.f32.mrf.mxu0 }
 0x94a   :  { %v11515_v36 = vpop.f32.mrf.mxu1  ;;  %v2688_v37 = vadd.f32 %v14722_v24, %v2687_v41  ;;  %v3121_v24 = vpop.permute.xlu0 %3120 }
 0x94b   :  { %v11482_v55 = vpop.f32.mrf.mxu0 }
 0x94c   :  { %v2779_v43 = vadd.f32 %v2778_v8, %v2688_v37 }
 0x951   :  { %v2858_v14 = vpop.f32.mrf.mxu0 }
 0x952   :  { %v3093_v16 = vpop.f32.mrf.mxu1  ;;  %v2859_v9 = vadd.f32 %v2858_v14, %v2779_v43 }
 0x953   :  { %v11504_v32 = vpop.f32.mrf.mxu0 }
 0x954   :  { %v11537_v15 = vpop.f32.mrf.mxu1  ;;  %v2936_v52 = vadd.f32 %v2935_v2, %v2859_v9 }
 0x95a   :  { %v3018_v42 = vpop.f32.mrf.mxu0 }
 0x95b   :  { %v3019_v7 = vadd.f32 %v3018_v42, %v2936_v52 }
 0x95c   :  { %v11526_v38 = vpop.f32.mrf.mxu0 }
 0x95d   :  { %v3094_v30 = vadd.f32 %v3093_v16, %v3019_v7  ;;  %v3109_v38 = vpop.permute.xlu0 %3108 }
 0x95f   :  { %v3100_v33 = vadd.f32 %v3098_v28, %v3094_v30  ;;  %v3111_v7 = vadd.f32 %v3109_v38, %v3094_v30  ;;  %v14725_v38 = vld [vmem:[#allocation45_spill] sm:$0xff] }
 0x961   :  { %v11049_v54 = vmul.f32 -1.442695, %v3100_v33  ;;  %v11050_v42 = vmul.f32 -1.442695, %v3111_v7  ;;  %v3139_v28 = vpop.permute.xlu0 %3138  ;;  %v14726_v7 = vld [vmem:[#allocation23_spill] sm:$0xff] }
 0x963   :  { %12040 = vpow2.f32 %v11049_v54 }
 0x970   :  { %v12041_v39 = vpop.eup %12040 }
 0x971   :  { %v3104_v36 = vadd.f32 1.0, %v12041_v39 }
 0x973   :  { %12042 = vrcp.f32 %v3104_v36 }
 0x980   :  { %v12043_v55 = vpop.eup %12042 }
 0x981   :  { %v3123_v41 = vmul.f32 %v12043_v55, %v3121_v24 }
 0x983   :  { %3125 = vrot.lane.b32.xlu1 %v3123_v41, %s12334_s1 }
 0x9f5   :  { %v3126_v32 = vpop.permute.xlu1 %3125 }
 0x9f6   :  { %v3128_v15 = vadd.f32 %v3126_v32, %v3094_v30 }
 0x9f8   :  { %12044 = vtanh.f32 %v3128_v15 }
 0x9f9   :  { %12046 = vpow2.f32 %v11050_v42  ;;  %v14727_v42 = vld [vmem:[#allocation24_spill] sm:$0xff] }
 0xa05   :  { %v12045_v9 = vpop.eup %12044 }
 0xa06   :  { %3132 = vrot.lane.b32.xlu1 %v12045_v9, %s12335_s21  ;;  %v12047_v33 = vpop.eup %12046  ;;  %v14724_v9 = vld [vmem:[#allocation42_spill] sm:$0xff] }
 0xa07   :  { %v3115_v52 = vadd.f32 1.0, %v12047_v33  ;;  %v14728_v33 = vld [vmem:[#allocation25_spill] sm:$0xff] }
 0xa09   :  { %12048 = vrcp.f32 %v3115_v52  ;;  %v14729_v52 = vld [vmem:[#allocation26_spill] sm:$0xff] }
 0xa16   :  { %v12049_v39 = vpop.eup %12048 }
 0xa17   :  { %v3130_v43 = vsub.f32 1.0, %v12049_v39  ;;  %v3136_v37 = vmul.f32 %v12049_v39, %v13016_v1  ;;  %v14730_v39 = vld [vmem:[#allocation27_spill] sm:$0xff]  ;;  %v14744_v1 = vld [vmem:[#allocation70_spill] sm:$0xff] }
 0xa78   :  { %v3133_v16 = vpop.permute.xlu1 %3132 }
 0xa79   :  { %v3135_v14 = vmul.f32 %v3133_v16, %v3130_v43  ;;  %v14731_v43 = vld [vmem:[#allocation28_spill] sm:$0xff]  ;;  %v14732_v16 = vld [vmem:[#allocation29_spill] sm:$0xff] }
 0xa7b   :  { %v13212_v2 = vadd.f32 %v3136_v37, %v3135_v14  ;;  %v14733_v14 = vld [vmem:[#allocation30_spill] sm:$0xff]  ;;  %v14734_v37 = vld [vmem:[#allocation33_spill] sm:$0xff] }
 0xa7d   :  { %14723 = vst [vmem:[#allocation59_spill] sm:$0xff] %v13212_v2  ;;  %v3142_v8 = vrot.slane %v13212_v2, 6 }
 0xa7f   :  { %v3144_v54 = vsel %vm699_vm2, %v3139_v28, %v3142_v8  ;;  %v14735_v8 = vld [vmem:[#allocation35_spill] sm:$0xff]  ;;  %v14736_v28 = vld [vmem:[#allocation37_spill] sm:$0xff] }
 0xa80   :  { %v3146_v36 = vrot.slane %v3144_v54, 2  ;;  %v14737_v54 = vld [vmem:[#allocation39_spill] sm:$0xff] }
 0xa82   :  { %v3147_v30 = vsel %vm701_vm3, %v3146_v36, 0  ;;  %v14738_v36 = vld [vmem:[#allocation68_spill] sm:$0xff] }
 0xa83   :  { %v13217_v55 = vand.u32 4294901760, %v3147_v30 }
 0xa85   :  { %v3231_v24 = vsub.f32 %v3147_v30, %v13217_v55  ;;  %3387 = vmatmul.mubr.f32.vlgmr.msra.gmra.mxu1 %v13217_v55  ;;  %v14739_v30 = vld [vmem:[#allocation43_spill] sm:$0xff] }
 0xa86   :  { %3517 = vmatpush1.msra.mxu1 %v12459_v19  ;;  %3578 = vmatprep.mubr.f32.mxu1 %v14650_v18 }
 0xa87   :  { %3519 = vmatprep.subr.mxu1 %v12461_v20  ;;  %v3232_v41 = vand.u32 4294901760, %v3231_v24 }
 0xa88   :  { %3521 = vmatpush1.msra.mxu1 %v12463_v21 }
 0xa89   :  { %3523 = vmatprep.subr.mxu1 %v12508_v49  ;;  %v3233_v32 = vsub.f32 %v3231_v24, %v3232_v41 }
 0xa8a   :  { %3525 = vmatpush1.msra.mxu1 %v12510_v50 }
 0xa8b   :  { %3527 = vmatprep.subr.mxu1 %v12520_v56  ;;  %v3234_v15 = vand.u32 4294901760, %v3233_v32  ;;  %v14742_v32 = vld [vmem:[#allocation47_spill] sm:$0xff] }
 0xa8c   :  { %3529 = vmatpush1.msra.mxu1 %v12528_v59 }
 0xa8d   :  { %3531 = vmatprep.subr.mxu1 %v12530_v60  ;;  %3235 = vmatmul.mubr.f32.vlgmr.msra.gmra.mxu0 %v3234_v15  ;;  %v14743_v15 = vld [vmem:[#allocation49_spill] sm:$0xff] }
 0xa8e   :  { %3414 = vmatpush1.msra.mxu0 %v12481_v26  ;;  %3533 = vmatpush1.msra.mxu1 %v12535_v62 }
 0xa8f   :  { %3417 = vmatprep.subr.mxu0 %v12495_v34  ;;  %3535 = vmatprep.subr.mxu1 %v12537_v63 }
 0xa90   :  { %3420 = vmatpush1.msra.mxu0 %v12498_v35  ;;  %3537 = vmatpush1.msra.mxu1 %v12539_v0 }
 0xa91   :  { %3423 = vmatprep.subr.mxu0 %v12523_v57  ;;  %3539 = vmatprep.subr.mxu1 %v12611_v45 }
 0xa92   :  { %3426 = vmatpush1.msra.mxu0 %v12526_v58  ;;  %3541 = vmatpush1.msra.mxu1 %v12613_v46 }
 0xa93   :  { %3429 = vmatprep.subr.mxu0 %v12533_v61  ;;  %3543 = vmatprep.subr.mxu1 %v12624_v51 }
 0xa94   :  { %3432 = vmatpush1.msra.mxu0 %v12549_v5  ;;  %3545 = vmatpush1.msra.mxu1 %v12636_v53 }
 0xa95   :  { %3435 = vmatprep.subr.mxu0 %v12552_v6  ;;  %3582 = vmatmul.mubr.f32.vlgmr.msra.gmra.mxu1 %v3232_v41  ;;  %v14741_v41 = vld [vmem:[#allocation69_spill] sm:$0xff] }
 0xa96   :  { %3725 = vmatprep.subr.mxu1 %v12442_v10  ;;  %3438 = vmatpush1.msra.mxu0 %v12564_v11 }
 0xa97   :  { %3727 = vmatpush1.msra.mxu1 %v12459_v19  ;;  %3441 = vmatprep.subr.mxu0 %v12571_v13 }
 0xa98   :  { %3729 = vmatprep.subr.mxu1 %v12461_v20  ;;  %3444 = vmatpush1.msra.mxu0 %v12581_v29 }
 0xa99   :  { %3731 = vmatpush1.msra.mxu1 %v12463_v21  ;;  %3447 = vmatprep.subr.mxu0 %v12631_v4 }
 0xa9a   :  { %3733 = vmatprep.subr.mxu1 %v12508_v49  ;;  %3450 = vmatpush1.msra.mxu0 %v12634_v25 }
 0xa9b   :  { %3735 = vmatpush1.msra.mxu1 %v12510_v50  ;;  %3453 = vmatprep.subr.mxu0 %v14724_v9 }
 0xa9c   :  { %3737 = vmatprep.subr.mxu1 %v12520_v56  ;;  %3456 = vmatpush1.msra.mxu0 %v14725_v38 }
 0xa9d   :  { %3489 = vmatprep.mubr.f32.mxu0 %v14650_v18  ;;  %3739 = vmatpush1.msra.mxu1 %v12528_v59 }
 0xa9e   :  { %3492 = vmatmul.mubr.f32.vlgmr.msra.gmra.mxu0 %v3231_v24  ;;  %3607 = vmatprep.subr.mxu0 %v14726_v7  ;;  %v14740_v24 = vld [vmem:[#allocation44_spill] sm:$0xff] }
 0xa9f   :  { %3741 = vmatprep.subr.mxu1 %v12530_v60  ;;  %3611 = vmatpush1.msra.mxu0 %v14727_v42 }
 0xaa0   :  { %3743 = vmatpush1.msra.mxu1 %v12535_v62  ;;  %3615 = vmatprep.subr.mxu0 %v14728_v33 }
 0xaa1   :  { %3745 = vmatprep.subr.mxu1 %v12537_v63  ;;  %3619 = vmatpush1.msra.mxu0 %v14729_v52 }
 0xaa2   :  { %3747 = vmatpush1.msra.mxu1 %v12539_v0  ;;  %3623 = vmatprep.subr.mxu0 %v14730_v39 }
 0xaa3   :  { %3749 = vmatprep.subr.mxu1 %v12611_v45  ;;  %3627 = vmatpush1.msra.mxu0 %v14731_v43 }
 0xaa4   :  { %3751 = vmatpush1.msra.mxu1 %v12613_v46  ;;  %3631 = vmatprep.subr.mxu0 %v14732_v16 }
 0xaa5   :  { %3753 = vmatprep.subr.mxu1 %v12624_v51  ;;  %3635 = vmatpush1.msra.mxu0 %v14733_v14 }
 0xaa6   :  { %3755 = vmatpush1.msra.mxu1 %v12636_v53  ;;  %3788 = vmatprep.mubr.f32.mxu1 %v14650_v18 }
 0xaa7   :  { %3639 = vmatprep.subr.mxu0 %v14734_v37  ;;  %3790 = vmatmul.mubr.f32.vlgmr.msra.gmra.mxu1 %v13217_v55 }
 0xaa8   :  { %3643 = vmatpush1.msra.mxu0 %v14735_v8  ;;  %3700 = vmatprep.mubr.f32.mxu0 %v14650_v18 }
 0xaa9   :  { %3647 = vmatprep.subr.mxu0 %v14736_v28  ;;  %11549 = vmatprep.subr.mxu1 %v14650_v18 }
 0xaaa   :  { %3651 = vmatpush1.msra.mxu0 %v14737_v54  ;;  %11550 = vmatpush3.msra.mxu1 %v14738_v36  ;;  %v14745_v36 = vld [vmem:[#allocation73_spill] sm:$0xff] }
 0xaab   :  { %3655 = vmatprep.subr.mxu0 %v14739_v30  ;;  %11551 = vmatprep.subr.mxu1 %v14650_v18 }
 0xaac   :  { %3659 = vmatpush1.msra.mxu0 %v14740_v24  ;;  %11552 = vmatpush3.msra.mxu1 %v14741_v41 }
 0xaad   :  { %3663 = vmatprep.subr.mxu0 %v14742_v32  ;;  %11553 = vmatprep.subr.mxu1 %v14650_v18 }
 0xaae   :  { %3667 = vmatpush1.msra.mxu0 %v14743_v15  ;;  %11554 = vmatpush3.msra.mxu1 %v14744_v1 }
 0xaaf   :  { %3702 = vmatmul.mubr.f32.vlgmr.msra.gmra.mxu0 %v13217_v55  ;;  %11555 = vmatprep.subr.mxu1 %v14650_v18 }
 0xab0   :  { %11556 = vmatpush3.msra.mxu1 %v14745_v36  ;;  %11538 = vmatprep.subr.mxu0 %v14650_v18 }
 0xab1   :  { %11557 = vmatprep.mubr.msk.f32.mxu1 %vm12336_vm4, %v14650_v18  ;;  %11571 = vmatprep.subr.mxu1 %v14650_v18 }
 0xab2   :  { %11539 = vmatpush3.msra.mxu0 %v12851_v27  ;;  %11546 = vmatprep.mubr.msk.f32.mxu0 %vm12336_vm4, %v14650_v18 }
 0xab3   :  { %11540 = vmatprep.subr.mxu0 %v14650_v18 }
 0xab4   :  { %11541 = vmatpush3.msra.mxu0 %v12853_v40 }
 0xab5   :  { %11542 = vmatprep.subr.mxu0 %v14650_v18 }
 0xab6   :  { %11543 = vmatpush3.msra.mxu0 %v12855_v17 }
 0xab7   :  { %11544 = vmatprep.subr.mxu0 %v14650_v18 }
 0xab8   :  { %11545 = vmatpush3.msra.mxu0 %v12901_v48 }
 0xab9   :  { %11560 = vmatprep.subr.mxu0 %v14650_v18 }
 0xb45   :  { %v3388_v55 = vpop.f32.mrf.mxu1 }
 0xb47   :  { %v3390_v1 = vpop.f32.mrf.mxu1 }
 0xb4d   :  { %v3236_v36 = vpop.f32.mrf.mxu0 }
 0xb4e   :  { %v3389_v37 = vadd.f32 %v3388_v55, %v3236_v36 }
 0xb4f   :  { %v3238_v15 = vpop.f32.mrf.mxu0 }
 0xb50   :  { %v3391_v32 = vadd.f32 %v3390_v1, %v3238_v15 }
 0xb55   :  { %v3583_v41 = vpop.f32.mrf.mxu1 }
 0xb57   :  { %v3585_v28 = vpop.f32.mrf.mxu1 }
 0xb5e   :  { %v3493_v24 = vpop.f32.mrf.mxu0 }
 0xb5f   :  { %v3494_v14 = vadd.f32 %v3493_v24, %v3389_v37 }
 0xb60   :  { %v3495_v30 = vpop.f32.mrf.mxu0 }
 0xb61   :  { %v3496_v54 = vadd.f32 %v3495_v30, %v3391_v32  ;;  %v3584_v16 = vadd.f32 %v3583_v41, %v3494_v14 }
 0xb63   :  { %v3586_v8 = vadd.f32 %v3585_v28, %v3496_v54 }
 0xb67   :  { %v3791_v52 = vpop.f32.mrf.mxu1 }
 0xb69   :  { %v3793_v55 = vpop.f32.mrf.mxu1 }
 0xb6f   :  { %v3703_v43 = vpop.f32.mrf.mxu0 }
 0xb70   :  { %v3704_v39 = vadd.f32 %v3703_v43, %v3584_v16 }
 0xb72   :  { %v3792_v33 = vadd.f32 %v3791_v52, %v3704_v39  ;;  %v3825_v39 = vrot.slane %v13124_v31, 6 }
 0xb74   :  { %v3806_v42 = vadd.f32 %v3792_v33, %v14699_v22  ;;  %v3797_v38 = vrot.slane %v3792_v33, 4 }
 0xb76   :  { %v3808_v7 = vrot.slane %v3806_v42, 4  ;;  %v3799_v1 = vadd.f32 %v3797_v38, %v14700_v12  ;;  %v3705_v38 = vpop.f32.mrf.mxu0 }
 0xb77   :  { %v3706_v54 = vadd.f32 %v3705_v38, %v3586_v8  ;;  %v14749_v38 = vld [vmem:[#allocation66_spill] sm:$0xff] }
 0xb78   :  { %3809 = vrot.lane.b32.xlu1 %v3808_v7, %s12334_s1  ;;  %v11051_v15 = vmul.f32 -1.442695, %v3799_v1 }
 0xb79   :  { %v3794_v1 = vadd.f32 %v3793_v55, %v3706_v54  ;;  %v14753_v54 = vld [vmem:[#allocation36_spill] sm:$0xff] }
 0xb7a   :  { %12050 = vpow2.f32 %v11051_v15  ;;  %v14756_v55 = vld [vmem:[#allocation40_spill] sm:$0xff] }
 0xb87   :  { %v12051_v30 = vpop.eup %12050 }
 0xb88   :  { %v3803_v32 = vadd.f32 1.0, %v12051_v30  ;;  %v4341_v30 = vadd.f32 %v3794_v1, %v14701_v47 }
 0xb8a   :  { %12052 = vrcp.f32 %v3803_v32 }
 0xb97   :  { %v12053_v28 = vpop.eup %12052 }
 0xb98   :  { %v3819_v7 = vsub.f32 1.0, %v12053_v28  ;;  %v3827_v36 = vmul.f32 %v12053_v28, %v3825_v39  ;;  %v14751_v39 = vld [vmem:[#allocation34_spill] sm:$0xff] }
 0xbea   :  { %v3810_v37 = vpop.permute.xlu1 %3809 }
 0xbeb   :  { %v3812_v14 = vmul.f32 %v12053_v28, %v3810_v37 }
 0xbed   :  { %3814 = vrot.lane.b32.xlu0 %v3812_v14, %s12334_s1 }
 0xc5f   :  { %v3815_v43 = vpop.permute.xlu0 %3814 }
 0xc60   :  { %v3817_v52 = vadd.f32 %v3815_v43, %v14700_v12  ;;  %v14746_v43 = vld [vmem:[#allocation71_spill] sm:$0xff] }
 0xc62   :  { %12054 = vtanh.f32 %v3817_v52  ;;  %v14747_v52 = vld [vmem:[#allocation65_spill] sm:$0xff] }
 0xc6f   :  { %v12055_v42 = vpop.eup %12054 }
 0xc70   :  { %3821 = vrot.lane.b32.xlu1 %v12055_v42, %s12335_s21  ;;  %v14748_v42 = vld [vmem:[#allocation31_spill] sm:$0xff] }
 0xc74   :  { %4320 = vrot.lane.b32.xlu1 %v3792_v33, %s12322_s24 }
 0xce2   :  { %v3822_v16 = vpop.permute.xlu1 %3821 }
 0xce3   :  { %v3824_v24 = vmul.f32 %v3822_v16, %v3819_v7  ;;  %v14750_v7 = vld [vmem:[#allocation32_spill] sm:$0xff]  ;;  %v14752_v16 = vld [vmem:[#allocation67_spill] sm:$0xff] }
 0xce5   :  { %v13319_v41 = vadd.f32 %v3827_v36, %v3824_v24  ;;  %v14754_v36 = vld [vmem:[#allocation38_spill] sm:$0xff]  ;;  %v14755_v24 = vld [vmem:[#allocation72_spill] sm:$0xff] }
 0xce7   :  { %v3830_v15 = vrot.slane %v13319_v41, 4 }
 0xce9   :  { %3831 = vrot.lane.b32.xlu0 %v3830_v15, %s12335_s21  ;;  %v14758_v15 = vld [vmem:[#allocation46_spill] sm:$0xff] }
 0xced   :  { %4343 = vrot.lane.b32.xlu0 %v4341_v30, %s12335_s21  ;;  %v14759_v30 = vld [vmem:[#allocation48_spill] sm:$0xff] }
 0xcf1   :  { %4331 = vrot.lane.b32.xlu0 %v3794_v1, %s12322_s24  ;;  %v14757_v1 = vld [vmem:[#allocation41_spill] sm:$0xff] }
 0xcf5   :  { %4361 = vrot.lane.b32.xlu0 %v13319_v41, %s12335_s21 }
 0xd5b   :  { %v3832_v31 = vpop.permute.xlu0 %3831 }
 0xd5c   :  { %v3833_v33 = vsel %vm699_vm2, %v3832_v31, 0  ;;  %v14760_v31 = vld [vmem:[#allocation50_spill] sm:$0xff] }
 0xd5d   :  { %v3904_v8 = vand.u32 4294901760, %v3833_v33 }
 0xd5f   :  { %v3905_v32 = vsub.f32 %v3833_v33, %v3904_v8  ;;  %11558 = vmatmul.mubr.f32.vlgmr.msra.gmra.mxu1 %v3904_v8  ;;  %v14761_v33 = vld [vmem:[#allocation51_spill] sm:$0xff] }
 0xd60   :  { %11572 = vmatpush3.msra.mxu1 %v12851_v27  ;;  %11579 = vmatprep.mubr.msk.f32.mxu1 %vm12336_vm4, %v14650_v18 }
 0xd61   :  { %v3906_v28 = vand.u32 4294901760, %v3905_v32  ;;  %11573 = vmatprep.subr.mxu1 %v14650_v18 }
 0xd62   :  { %11574 = vmatpush3.msra.mxu1 %v12853_v40 }
 0xd63   :  { %v3907_v37 = vsub.f32 %v3905_v32, %v3906_v28  ;;  %11575 = vmatprep.subr.mxu1 %v14650_v18 }
 0xd64   :  { %11576 = vmatpush3.msra.mxu1 %v12855_v17 }
 0xd65   :  { %v3908_v14 = vand.u32 4294901760, %v3907_v37  ;;  %11577 = vmatprep.subr.mxu1 %v14650_v18  ;;  %v14765_v37 = vld [vmem:[#allocation55_spill] sm:$0xff] }
 0xd66   :  { %11578 = vmatpush3.msra.mxu1 %v12901_v48 }
 0xd67   :  { %11580 = vmatmul.mubr.f32.vlgmr.msra.gmra.mxu1 %v3906_v28  ;;  %11593 = vmatprep.subr.mxu1 %v14650_v18  ;;  %v14764_v28 = vld [vmem:[#allocation54_spill] sm:$0xff] }
 0xd68   :  { %11547 = vmatmul.mubr.f32.vlgmr.msra.gmra.mxu0 %v3908_v14  ;;  %11594 = vmatpush3.msra.mxu1 %v12851_v27  ;;  %v14766_v14 = vld [vmem:[#allocation56_spill] sm:$0xff] }
 0xd69   :  { %11561 = vmatpush3.msra.mxu0 %v12859_v44  ;;  %11595 = vmatprep.subr.mxu1 %v14650_v18 }
 0xd6a   :  { %11562 = vmatprep.subr.mxu0 %v14650_v18  ;;  %11596 = vmatpush3.msra.mxu1 %v12853_v40 }
 0xd6b   :  { %11563 = vmatpush3.msra.mxu0 %v12862_v3  ;;  %11597 = vmatprep.subr.mxu1 %v14650_v18 }
 0xd6c   :  { %11564 = vmatprep.subr.mxu0 %v14650_v18  ;;  %11598 = vmatpush3.msra.mxu1 %v12855_v17 }
 0xd6d   :  { %11565 = vmatpush3.msra.mxu0 %v12865_v23  ;;  %11599 = vmatprep.subr.mxu1 %v14650_v18 }
 0xd6e   :  { %11566 = vmatprep.subr.mxu0 %v14650_v18  ;;  %11568 = vmatprep.mubr.msk.f32.mxu0 %vm12336_vm4, %v14650_v18 }
 0xd6f   :  { %11567 = vmatpush3.msra.mxu0 %v14746_v43  ;;  %11600 = vmatpush3.msra.mxu1 %v12901_v48 }
 0xd70   :  { %11601 = vmatprep.mubr.msk.f32.mxu1 %vm12336_vm4, %v14650_v18  ;;  %11569 = vmatmul.mubr.f32.vlgmr.msra.gmra.mxu0 %v3905_v32  ;;  %v14762_v32 = vld [vmem:[#allocation52_spill] sm:$0xff] }
 0xd71   :  { %11582 = vmatprep.subr.mxu0 %v14650_v18  ;;  %11602 = vmatmul.mubr.f32.vlgmr.msra.gmra.mxu1 %v3904_v8 }
 0xd72   :  { %11583 = vmatpush3.msra.mxu0 %v14747_v52  ;;  %11590 = vmatprep.mubr.msk.f32.mxu0 %vm12336_vm4, %v14650_v18 }
 0xd73   :  { %11584 = vmatprep.subr.mxu0 %v14650_v18  ;;  %4485 = vmatprep.subr.mxu1 %v14748_v42 }
 0xd74   :  { %11585 = vmatpush3.msra.mxu0 %v14749_v38  ;;  %4491 = vmatpush1.msra.mxu1 %v14750_v7 }
 0xd75   :  { %11586 = vmatprep.subr.mxu0 %v14650_v18  ;;  %4497 = vmatprep.subr.mxu1 %v14751_v39 }
 0xd76   :  { %11587 = vmatpush3.msra.mxu0 %v14752_v16  ;;  %4503 = vmatpush1.msra.mxu1 %v14753_v54 }
 0xd77   :  { %11588 = vmatprep.subr.mxu0 %v14650_v18  ;;  %4509 = vmatprep.subr.mxu1 %v14754_v36 }
 0xd78   :  { %11589 = vmatpush3.msra.mxu0 %v14755_v24  ;;  %4515 = vmatpush1.msra.mxu1 %v14756_v55 }
 0xd79   :  { %11591 = vmatmul.mubr.f32.vlgmr.msra.gmra.mxu0 %v3904_v8  ;;  %4521 = vmatprep.subr.mxu1 %v14757_v1  ;;  %v14763_v8 = vld [vmem:[#allocation53_spill] sm:$0xff] }
 0xd7a   :  { %4527 = vmatpush1.msra.mxu1 %v14758_v15  ;;  %4389 = vmatprep.subr.mxu0 %v12442_v10 }
 0xd7b   :  { %4533 = vmatprep.subr.mxu1 %v14759_v30  ;;  %4391 = vmatpush1.msra.mxu0 %v12459_v19  ;;  %v13406_v30 = vld [vmem:[%s14492_s7] ss:$0 sm:$0xff] }
 0xd7c   :  { %4539 = vmatpush1.msra.mxu1 %v14760_v31  ;;  %4393 = vmatprep.subr.mxu0 %v12461_v20  ;;  %14768 = vst [vmem:[#allocation60_spill] sm:$0xff] %v13406_v30 }
 0xd7d   :  { %4545 = vmatprep.subr.mxu1 %v14761_v33  ;;  %4395 = vmatpush1.msra.mxu0 %v12463_v21 }
 0xd7e   :  { %4551 = vmatpush1.msra.mxu1 %v14762_v32  ;;  %4397 = vmatprep.subr.mxu0 %v12508_v49 }
 0xd7f   :  { %4557 = vmatprep.subr.mxu1 %v14763_v8  ;;  %4399 = vmatpush1.msra.mxu0 %v12510_v50 }
 0xd80   :  { %4563 = vmatpush1.msra.mxu1 %v14764_v28  ;;  %4401 = vmatprep.subr.mxu0 %v12520_v56 }
 0xd81   :  { %4569 = vmatprep.subr.mxu1 %v14765_v37  ;;  %4403 = vmatpush1.msra.mxu0 %v12528_v59 }
 0xd82   :  { %4575 = vmatpush1.msra.mxu1 %v14766_v14  ;;  %4405 = vmatprep.subr.mxu0 %v12530_v60  ;;  %v14767_v14 = vld [vmem:[#allocation22_spill] sm:$0xff] }
 0xd83   :  { %4608 = vmatprep.mubr.f32.mxu1 %v14650_v18  ;;  %4738 = vmatprep.subr.mxu1 %v12442_v10 }
 0xd84   :  { %4407 = vmatpush1.msra.mxu0 %v12535_v62  ;;  %4452 = vmatprep.mubr.f32.mxu0 %v14650_v18 }
 0xd85   :  { %4409 = vmatprep.subr.mxu0 %v12537_v63 }
 0xd86   :  { %4411 = vmatpush1.msra.mxu0 %v12539_v0 }
 0xd87   :  { %4413 = vmatprep.subr.mxu0 %v12611_v45 }
 0xd88   :  { %4415 = vmatpush1.msra.mxu0 %v12613_v46 }
 0xd89   :  { %4417 = vmatprep.subr.mxu0 %v12624_v51 }
 0xd8a   :  { %4419 = vmatpush1.msra.mxu0 %v12636_v53 }
 0xd8b   :  { %4634 = vmatprep.subr.mxu0 %v14767_v14 }
 0xe1f   :  { %v4001_v37 = vpop.f32.mrf.mxu1 }
 0xe21   :  { %v11559_v28 = vpop.f32.mrf.mxu1 }
 0xe27   :  { %v4158_v8 = vpop.f32.mrf.mxu1 }
 0xe28   :  { %v3910_v32 = vpop.f32.mrf.mxu0 }
 0xe29   :  { %v11581_v33 = vpop.f32.mrf.mxu1  ;;  %v3911_v15 = vadd.f32 %v13406_v30, %v3910_v32  ;;  %v4344_v32 = vpop.permute.xlu0 %4343 }
 0xe2a   :  { %v11548_v31 = vpop.f32.mrf.mxu0  ;;  %v4321_v33 = vpop.permute.xlu1 %4320 }
 0xe2b   :  { %v4002_v24 = vadd.f32 %v4001_v37, %v3911_v15 }
 0xe30   :  { %v4081_v1 = vpop.f32.mrf.mxu0 }
 0xe31   :  { %v4316_v55 = vpop.f32.mrf.mxu1  ;;  %v4082_v16 = vadd.f32 %v4081_v1, %v4002_v24 }
 0xe32   :  { %v11570_v36 = vpop.f32.mrf.mxu0 }
 0xe33   :  { %v11603_v54 = vpop.f32.mrf.mxu1  ;;  %v4159_v14 = vadd.f32 %v4158_v8, %v4082_v16 }
 0xe39   :  { %v4241_v39 = vpop.f32.mrf.mxu0 }
 0xe3a   :  { %v4242_v28 = vadd.f32 %v4241_v39, %v4159_v14 }
 0xe3b   :  { %v11592_v7 = vpop.f32.mrf.mxu0 }
 0xe3c   :  { %v4317_v38 = vadd.f32 %v4316_v55, %v4242_v28  ;;  %v4332_v7 = vpop.permute.xlu0 %4331 }
 0xe3e   :  { %v4323_v31 = vadd.f32 %v4321_v33, %v4317_v38  ;;  %v4334_v39 = vadd.f32 %v4332_v7, %v4317_v38  ;;  %v14771_v7 = vld [vmem:[#allocation23_spill] sm:$0xff] }
 0xe40   :  { %v11052_v42 = vmul.f32 -1.442695, %v4323_v31  ;;  %v11053_v24 = vmul.f32 -1.442695, %v4334_v39  ;;  %v4362_v37 = vpop.permute.xlu0 %4361  ;;  %v14772_v39 = vld [vmem:[#allocation24_spill] sm:$0xff] }
 0xe42   :  { %12056 = vpow2.f32 %v11052_v42 }
 0xe4f   :  { %v12057_v52 = vpop.eup %12056 }
 0xe50   :  { %v4327_v43 = vadd.f32 1.0, %v12057_v52 }
 0xe52   :  { %12058 = vrcp.f32 %v4327_v43 }
 0xe5f   :  { %v12059_v23 = vpop.eup %12058 }
 0xe60   :  { %v4346_v30 = vmul.f32 %v12059_v23, %v4344_v32 }
 0xe62   :  { %4348 = vrot.lane.b32.xlu1 %v4346_v30, %s12334_s1 }
 0xed4   :  { %v4349_v36 = vpop.permute.xlu1 %4348 }
 0xed5   :  { %v4351_v54 = vadd.f32 %v4349_v36, %v4317_v38 }
 0xed7   :  { %12060 = vtanh.f32 %v4351_v54 }
 0xed8   :  { %12062 = vpow2.f32 %v11053_v24  ;;  %v14773_v24 = vld [vmem:[#allocation25_spill] sm:$0xff] }
 0xee4   :  { %v12061_v16 = vpop.eup %12060 }
 0xee5   :  { %4355 = vrot.lane.b32.xlu1 %v12061_v16, %s12335_s21  ;;  %v12063_v55 = vpop.eup %12062  ;;  %v14770_v16 = vld [vmem:[#allocation45_spill] sm:$0xff] }
 0xee6   :  { %v4338_v42 = vadd.f32 1.0, %v12063_v55  ;;  %v14774_v55 = vld [vmem:[#allocation26_spill] sm:$0xff] }
 0xee8   :  { %12064 = vrcp.f32 %v4338_v42  ;;  %v14775_v42 = vld [vmem:[#allocation27_spill] sm:$0xff] }
 0xef5   :  { %v12065_v52 = vpop.eup %12064 }
 0xef6   :  { %v4353_v43 = vsub.f32 1.0, %v12065_v52  ;;  %v4359_v23 = vmul.f32 %v12065_v52, %v13212_v2  ;;  %v14776_v52 = vld [vmem:[#allocation28_spill] sm:$0xff]  ;;  %v14790_v2 = vld [vmem:[#allocation73_spill] sm:$0xff] }
 0xf57   :  { %v4356_v1 = vpop.permute.xlu1 %4355 }
 0xf58   :  { %v4358_v15 = vmul.f32 %v4356_v1, %v4353_v43  ;;  %v14777_v43 = vld [vmem:[#allocation29_spill] sm:$0xff]  ;;  %v14778_v1 = vld [vmem:[#allocation30_spill] sm:$0xff] }
 0xf5a   :  { %v13412_v30 = vadd.f32 %v4359_v23, %v4358_v15  ;;  %v14779_v15 = vld [vmem:[#allocation33_spill] sm:$0xff]  ;;  %v14780_v23 = vld [vmem:[#allocation35_spill] sm:$0xff] }
 0xf5c   :  { %14769 = vst [vmem:[#allocation74_spill] sm:$0xff] %v13412_v30  ;;  %v4365_v8 = vrot.slane %v13412_v30, 4 }
 0xf5e   :  { %v4367_v14 = vsel %vm699_vm2, %v4362_v37, %v4365_v8  ;;  %v14781_v8 = vld [vmem:[#allocation37_spill] sm:$0xff]  ;;  %v14782_v37 = vld [vmem:[#allocation39_spill] sm:$0xff] }
 0xf5f   :  { %v4369_v28 = vrot.slane %v4367_v14, 4  ;;  %v14783_v14 = vld [vmem:[#allocation68_spill] sm:$0xff] }
 0xf61   :  { %v4370_v38 = vsel %vm701_vm3, %v4369_v28, 0  ;;  %v14784_v28 = vld [vmem:[#allocation43_spill] sm:$0xff] }
 0xf62   :  { %v13417_v33 = vand.u32 4294901760, %v4370_v38 }
 0xf64   :  { %v4454_v31 = vsub.f32 %v4370_v38, %v13417_v33  ;;  %4610 = vmatmul.mubr.f32.vlgmr.msra.gmra.mxu1 %v13417_v33  ;;  %v14785_v38 = vld [vmem:[#allocation44_spill] sm:$0xff] }
 0xf65   :  { %4740 = vmatpush1.msra.mxu1 %v12459_v19  ;;  %4801 = vmatprep.mubr.f32.mxu1 %v14650_v18 }
 0xf66   :  { %4742 = vmatprep.subr.mxu1 %v12461_v20  ;;  %v4455_v32 = vand.u32 4294901760, %v4454_v31 }
 0xf67   :  { %4744 = vmatpush1.msra.mxu1 %v12463_v21 }
 0xf68   :  { %4746 = vmatprep.subr.mxu1 %v12508_v49  ;;  %v4456_v36 = vsub.f32 %v4454_v31, %v4455_v32 }
 0xf69   :  { %4748 = vmatpush1.msra.mxu1 %v12510_v50 }
 0xf6a   :  { %4750 = vmatprep.subr.mxu1 %v12520_v56  ;;  %v4457_v54 = vand.u32 4294901760, %v4456_v36  ;;  %v14788_v36 = vld [vmem:[#allocation49_spill] sm:$0xff] }
 0xf6b   :  { %4752 = vmatpush1.msra.mxu1 %v12528_v59 }
 0xf6c   :  { %4754 = vmatprep.subr.mxu1 %v12530_v60  ;;  %4458 = vmatmul.mubr.f32.vlgmr.msra.gmra.mxu0 %v4457_v54  ;;  %v14789_v54 = vld [vmem:[#allocation70_spill] sm:$0xff] }
 0xf6d   :  { %4637 = vmatpush1.msra.mxu0 %v12481_v26  ;;  %4756 = vmatpush1.msra.mxu1 %v12535_v62 }
 0xf6e   :  { %4640 = vmatprep.subr.mxu0 %v12495_v34  ;;  %4758 = vmatprep.subr.mxu1 %v12537_v63 }
 0xf6f   :  { %4643 = vmatpush1.msra.mxu0 %v12498_v35  ;;  %4760 = vmatpush1.msra.mxu1 %v12539_v0 }
 0xf70   :  { %4646 = vmatprep.subr.mxu0 %v12523_v57  ;;  %4762 = vmatprep.subr.mxu1 %v12611_v45 }
 0xf71   :  { %4649 = vmatpush1.msra.mxu0 %v12526_v58  ;;  %4764 = vmatpush1.msra.mxu1 %v12613_v46 }
 0xf72   :  { %4652 = vmatprep.subr.mxu0 %v12533_v61  ;;  %4766 = vmatprep.subr.mxu1 %v12624_v51 }
 0xf73   :  { %4655 = vmatpush1.msra.mxu0 %v12549_v5  ;;  %4768 = vmatpush1.msra.mxu1 %v12636_v53 }
 0xf74   :  { %4658 = vmatprep.subr.mxu0 %v12552_v6  ;;  %4805 = vmatmul.mubr.f32.vlgmr.msra.gmra.mxu1 %v4455_v32  ;;  %v14787_v32 = vld [vmem:[#allocation47_spill] sm:$0xff] }
 0xf75   :  { %4948 = vmatprep.subr.mxu1 %v12442_v10  ;;  %4661 = vmatpush1.msra.mxu0 %v12564_v11 }
 0xf76   :  { %4950 = vmatpush1.msra.mxu1 %v12459_v19  ;;  %4664 = vmatprep.subr.mxu0 %v12571_v13 }
 0xf77   :  { %4952 = vmatprep.subr.mxu1 %v12461_v20  ;;  %4667 = vmatpush1.msra.mxu0 %v12581_v29 }
 0xf78   :  { %4954 = vmatpush1.msra.mxu1 %v12463_v21  ;;  %4670 = vmatprep.subr.mxu0 %v12631_v4 }
 0xf79   :  { %4956 = vmatprep.subr.mxu1 %v12508_v49  ;;  %4673 = vmatpush1.msra.mxu0 %v12634_v25 }
 0xf7a   :  { %4958 = vmatpush1.msra.mxu1 %v12510_v50  ;;  %4676 = vmatprep.subr.mxu0 %v14724_v9 }
 0xf7b   :  { %4960 = vmatprep.subr.mxu1 %v12520_v56  ;;  %4679 = vmatpush1.msra.mxu0 %v14770_v16 }
 0xf7c   :  { %4712 = vmatprep.mubr.f32.mxu0 %v14650_v18  ;;  %4962 = vmatpush1.msra.mxu1 %v12528_v59 }
 0xf7d   :  { %4715 = vmatmul.mubr.f32.vlgmr.msra.gmra.mxu0 %v4454_v31  ;;  %4830 = vmatprep.subr.mxu0 %v14771_v7  ;;  %v14786_v31 = vld [vmem:[#allocation69_spill] sm:$0xff] }
 0xf7e   :  { %4964 = vmatprep.subr.mxu1 %v12530_v60  ;;  %4834 = vmatpush1.msra.mxu0 %v14772_v39 }
 0xf7f   :  { %4966 = vmatpush1.msra.mxu1 %v12535_v62  ;;  %4838 = vmatprep.subr.mxu0 %v14773_v24 }
 0xf80   :  { %4968 = vmatprep.subr.mxu1 %v12537_v63  ;;  %4842 = vmatpush1.msra.mxu0 %v14774_v55 }
 0xf81   :  { %4970 = vmatpush1.msra.mxu1 %v12539_v0  ;;  %4846 = vmatprep.subr.mxu0 %v14775_v42 }
 0xf82   :  { %4972 = vmatprep.subr.mxu1 %v12611_v45  ;;  %4850 = vmatpush1.msra.mxu0 %v14776_v52 }
 0xf83   :  { %4974 = vmatpush1.msra.mxu1 %v12613_v46  ;;  %4854 = vmatprep.subr.mxu0 %v14777_v43 }
 0xf84   :  { %4976 = vmatprep.subr.mxu1 %v12624_v51  ;;  %4858 = vmatpush1.msra.mxu0 %v14778_v1 }
 0xf85   :  { %4978 = vmatpush1.msra.mxu1 %v12636_v53  ;;  %5011 = vmatprep.mubr.f32.mxu1 %v14650_v18 }
 0xf86   :  { %4862 = vmatprep.subr.mxu0 %v14779_v15  ;;  %5013 = vmatmul.mubr.f32.vlgmr.msra.gmra.mxu1 %v13417_v33 }
 0xf87   :  { %4866 = vmatpush1.msra.mxu0 %v14780_v23  ;;  %4923 = vmatprep.mubr.f32.mxu0 %v14650_v18 }
 0xf88   :  { %4870 = vmatprep.subr.mxu0 %v14781_v8  ;;  %11615 = vmatprep.subr.mxu1 %v14650_v18 }
 0xf89   :  { %4874 = vmatpush1.msra.mxu0 %v14782_v37  ;;  %11616 = vmatpush3.msra.mxu1 %v14783_v14 }
 0xf8a   :  { %4878 = vmatprep.subr.mxu0 %v14784_v28  ;;  %11617 = vmatprep.subr.mxu1 %v14650_v18 }
 0xf8b   :  { %4882 = vmatpush1.msra.mxu0 %v14785_v38  ;;  %11618 = vmatpush3.msra.mxu1 %v14786_v31 }
 0xf8c   :  { %4886 = vmatprep.subr.mxu0 %v14787_v32  ;;  %11619 = vmatprep.subr.mxu1 %v14650_v18 }
 0xf8d   :  { %4890 = vmatpush1.msra.mxu0 %v14788_v36  ;;  %11620 = vmatpush3.msra.mxu1 %v14789_v54 }
 0xf8e   :  { %4925 = vmatmul.mubr.f32.vlgmr.msra.gmra.mxu0 %v13417_v33  ;;  %11621 = vmatprep.subr.mxu1 %v14650_v18 }
 0xf8f   :  { %11622 = vmatpush3.msra.mxu1 %v14790_v2  ;;  %11604 = vmatprep.subr.mxu0 %v14650_v18 }
 0xf90   :  { %11623 = vmatprep.mubr.msk.f32.mxu1 %vm12336_vm4, %v14650_v18  ;;  %11637 = vmatprep.subr.mxu1 %v14650_v18 }
 0xf91   :  { %11605 = vmatpush3.msra.mxu0 %v12851_v27  ;;  %11612 = vmatprep.mubr.msk.f32.mxu0 %vm12336_vm4, %v14650_v18 }
 0xf92   :  { %11606 = vmatprep.subr.mxu0 %v14650_v18 }
 0xf93   :  { %11607 = vmatpush3.msra.mxu0 %v12853_v40 }
 0xf94   :  { %11608 = vmatprep.subr.mxu0 %v14650_v18 }
 0xf95   :  { %11609 = vmatpush3.msra.mxu0 %v12855_v17 }
 0xf96   :  { %11610 = vmatprep.subr.mxu0 %v14650_v18 }
 0xf97   :  { %11611 = vmatpush3.msra.mxu0 %v12901_v48 }
 0xf98   :  { %11626 = vmatprep.subr.mxu0 %v14650_v18 }
0x1024   :  { %v4611_v33 = vpop.f32.mrf.mxu1 }
0x1026   :  { %v4613_v54 = vpop.f32.mrf.mxu1 }
0x102c   :  { %v4459_v2 = vpop.f32.mrf.mxu0 }
0x102d   :  { %v4612_v23 = vadd.f32 %v4611_v33, %v4459_v2 }
0x102e   :  { %v4461_v36 = vpop.f32.mrf.mxu0 }
0x102f   :  { %v4614_v32 = vadd.f32 %v4613_v54, %v4461_v36 }
0x1034   :  { %v4806_v31 = vpop.f32.mrf.mxu1 }
0x1036   :  { %v4808_v37 = vpop.f32.mrf.mxu1 }
0x103d   :  { %v4716_v38 = vpop.f32.mrf.mxu0 }
0x103e   :  { %v4717_v15 = vadd.f32 %v4716_v38, %v4612_v23 }
0x103f   :  { %v4718_v28 = vpop.f32.mrf.mxu0 }
0x1040   :  { %v4719_v14 = vadd.f32 %v4718_v28, %v4614_v32  ;;  %v4807_v1 = vadd.f32 %v4806_v31, %v4717_v15 }
0x1042   :  { %v4809_v8 = vadd.f32 %v4808_v37, %v4719_v14 }
0x1046   :  { %v5014_v42 = vpop.f32.mrf.mxu1 }
0x1048   :  { %v5016_v33 = vpop.f32.mrf.mxu1 }
0x104e   :  { %v4926_v43 = vpop.f32.mrf.mxu0 }
0x104f   :  { %v4927_v52 = vadd.f32 %v4926_v43, %v4807_v1 }
0x1051   :  { %v5015_v55 = vadd.f32 %v5014_v42, %v4927_v52  ;;  %v5048_v52 = vrot.slane %v13319_v41, 6 }
0x1053   :  { %v5029_v24 = vadd.f32 %v5015_v55, %v14699_v22  ;;  %v5020_v7 = vrot.slane %v5015_v55, 2 }
0x1055   :  { %v5031_v39 = vrot.slane %v5029_v24, 2  ;;  %v5022_v36 = vadd.f32 %v5020_v7, %v14700_v12  ;;  %v4928_v7 = vpop.f32.mrf.mxu0 }
0x1056   :  { %v4929_v37 = vadd.f32 %v4928_v7, %v4809_v8  ;;  %v14795_v7 = vld [vmem:[#allocation66_spill] sm:$0xff] }
0x1057   :  { %5032 = vrot.lane.b32.xlu1 %v5031_v39, %s12334_s1  ;;  %v11054_v54 = vmul.f32 -1.442695, %v5022_v36 }
0x1058   :  { %v5017_v36 = vadd.f32 %v5016_v33, %v4929_v37  ;;  %v14799_v37 = vld [vmem:[#allocation36_spill] sm:$0xff] }
0x1059   :  { %12066 = vpow2.f32 %v11054_v54  ;;  %v14802_v33 = vld [vmem:[#allocation40_spill] sm:$0xff] }
0x1066   :  { %v12067_v28 = vpop.eup %12066 }
0x1067   :  { %v5026_v32 = vadd.f32 1.0, %v12067_v28 }
0x1069   :  { %12068 = vrcp.f32 %v5026_v32 }
0x1076   :  { %v12069_v2 = vpop.eup %12068 }
0x1077   :  { %v5042_v39 = vsub.f32 1.0, %v12069_v2  ;;  %v5050_v14 = vmul.f32 %v12069_v2, %v5048_v52  ;;  %v14797_v52 = vld [vmem:[#allocation34_spill] sm:$0xff] }
0x10c9   :  { %v5033_v23 = vpop.permute.xlu1 %5032 }
0x10ca   :  { %v5035_v15 = vmul.f32 %v12069_v2, %v5033_v23 }
0x10cc   :  { %5037 = vrot.lane.b32.xlu0 %v5035_v15, %s12334_s1  ;;  %v14791_v15 = vld [vmem:[#allocation64_spill] sm:$0xff] }
0x113e   :  { %v5038_v43 = vpop.permute.xlu0 %5037 }
0x113f   :  { %v5040_v42 = vadd.f32 %v5038_v43, %v14700_v12  ;;  %v14792_v43 = vld [vmem:[#allocation71_spill] sm:$0xff] }
0x1141   :  { %12070 = vtanh.f32 %v5040_v42  ;;  %v14793_v42 = vld [vmem:[#allocation65_spill] sm:$0xff] }
0x114e   :  { %v12071_v24 = vpop.eup %12070 }
0x114f   :  { %5044 = vrot.lane.b32.xlu1 %v12071_v24, %s12335_s21  ;;  %v14794_v24 = vld [vmem:[#allocation31_spill] sm:$0xff] }
0x1153   :  { %5543 = vrot.lane.b32.xlu1 %v5015_v55, %s12322_s24  ;;  %v5564_v55 = vadd.f32 %v5017_v36, %v14701_v47 }
0x11c1   :  { %v5045_v1 = vpop.permute.xlu1 %5044 }
0x11c2   :  { %v5047_v38 = vmul.f32 %v5045_v1, %v5042_v39  ;;  %v14796_v39 = vld [vmem:[#allocation32_spill] sm:$0xff]  ;;  %v14798_v1 = vld [vmem:[#allocation67_spill] sm:$0xff] }
0x11c4   :  { %v13519_v31 = vadd.f32 %v5050_v14, %v5047_v38  ;;  %v14800_v14 = vld [vmem:[#allocation38_spill] sm:$0xff]  ;;  %v14801_v38 = vld [vmem:[#allocation72_spill] sm:$0xff] }
0x11c6   :  { %v14602_v12 = vrot.slane %v13519_v31, 6 }
0x11c8   :  { %5054 = vrot.lane.b32.xlu0 %v14602_v12, %s12335_s21  ;;  %v14812_v12 = vld [vmem:[#allocation56_spill] sm:$0xff] }
0x11cc   :  { %5566 = vrot.lane.b32.xlu0 %v5564_v55, %s12335_s21  ;;  %v14804_v55 = vld [vmem:[#allocation46_spill] sm:$0xff] }
0x11d0   :  { %5554 = vrot.lane.b32.xlu0 %v5017_v36, %s12322_s24  ;;  %v14803_v36 = vld [vmem:[#allocation41_spill] sm:$0xff] }
0x11d4   :  { %5584 = vrot.lane.b32.xlu0 %v13519_v31, %s12335_s21 }
0x123a   :  { %v5055_v41 = vpop.permute.xlu0 %5054 }
0x123b   :  { %v5056_v8 = vsel %vm699_vm2, %v5055_v41, 0  ;;  %v14805_v41 = vld [vmem:[#allocation48_spill] sm:$0xff] }
0x123c   :  { %v5127_v54 = vand.u32 4294901760, %v5056_v8 }
0x123e   :  { %v5128_v28 = vsub.f32 %v5056_v8, %v5127_v54  ;;  %11624 = vmatmul.mubr.f32.vlgmr.msra.gmra.mxu1 %v5127_v54  ;;  %v14806_v8 = vld [vmem:[#allocation50_spill] sm:$0xff] }
0x123f   :  { %11638 = vmatpush3.msra.mxu1 %v12851_v27  ;;  %11645 = vmatprep.mubr.msk.f32.mxu1 %vm12336_vm4, %v14650_v18 }
0x1240   :  { %v5129_v32 = vand.u32 4294901760, %v5128_v28  ;;  %11639 = vmatprep.subr.mxu1 %v14650_v18 }
0x1241   :  { %11640 = vmatpush3.msra.mxu1 %v12853_v40 }
0x1242   :  { %v5130_v2 = vsub.f32 %v5128_v28, %v5129_v32  ;;  %11641 = vmatprep.subr.mxu1 %v14650_v18 }
0x1243   :  { %11642 = vmatpush3.msra.mxu1 %v12855_v17 }
0x1244   :  { %v5131_v23 = vand.u32 4294901760, %v5130_v2  ;;  %11643 = vmatprep.subr.mxu1 %v14650_v18  ;;  %v14810_v2 = vld [vmem:[#allocation54_spill] sm:$0xff] }
0x1245   :  { %11644 = vmatpush3.msra.mxu1 %v12901_v48 }
0x1246   :  { %11646 = vmatmul.mubr.f32.vlgmr.msra.gmra.mxu1 %v5129_v32  ;;  %11659 = vmatprep.subr.mxu1 %v14650_v18  ;;  %v14808_v32 = vld [vmem:[#allocation52_spill] sm:$0xff] }
0x1247   :  { %11613 = vmatmul.mubr.f32.vlgmr.msra.gmra.mxu0 %v5131_v23  ;;  %11660 = vmatpush3.msra.mxu1 %v12851_v27  ;;  %v14811_v23 = vld [vmem:[#allocation55_spill] sm:$0xff] }
0x1248   :  { %11627 = vmatpush3.msra.mxu0 %v12859_v44  ;;  %11661 = vmatprep.subr.mxu1 %v14650_v18 }
0x1249   :  { %11628 = vmatprep.subr.mxu0 %v14650_v18  ;;  %11662 = vmatpush3.msra.mxu1 %v12853_v40 }
0x124a   :  { %11629 = vmatpush3.msra.mxu0 %v12862_v3  ;;  %11663 = vmatprep.subr.mxu1 %v14650_v18 }
0x124b   :  { %11630 = vmatprep.subr.mxu0 %v14650_v18  ;;  %11664 = vmatpush3.msra.mxu1 %v12855_v17 }
0x124c   :  { %11631 = vmatpush3.msra.mxu0 %v14791_v15  ;;  %11665 = vmatprep.subr.mxu1 %v14650_v18 }
0x124d   :  { %11632 = vmatprep.subr.mxu0 %v14650_v18  ;;  %11634 = vmatprep.mubr.msk.f32.mxu0 %vm12336_vm4, %v14650_v18 }
0x124e   :  { %11633 = vmatpush3.msra.mxu0 %v14792_v43  ;;  %11666 = vmatpush3.msra.mxu1 %v12901_v48 }
0x124f   :  { %11667 = vmatprep.mubr.msk.f32.mxu1 %vm12336_vm4, %v14650_v18  ;;  %11635 = vmatmul.mubr.f32.vlgmr.msra.gmra.mxu0 %v5128_v28  ;;  %v14807_v28 = vld [vmem:[#allocation51_spill] sm:$0xff] }
0x1250   :  { %11648 = vmatprep.subr.mxu0 %v14650_v18  ;;  %11668 = vmatmul.mubr.f32.vlgmr.msra.gmra.mxu1 %v5127_v54 }
0x1251   :  { %11649 = vmatpush3.msra.mxu0 %v14793_v42  ;;  %11656 = vmatprep.mubr.msk.f32.mxu0 %vm12336_vm4, %v14650_v18 }
0x1252   :  { %11650 = vmatprep.subr.mxu0 %v14650_v18  ;;  %5708 = vmatprep.subr.mxu1 %v14794_v24 }
0x1253   :  { %11651 = vmatpush3.msra.mxu0 %v14795_v7  ;;  %5714 = vmatpush1.msra.mxu1 %v14796_v39 }
0x1254   :  { %11652 = vmatprep.subr.mxu0 %v14650_v18  ;;  %5720 = vmatprep.subr.mxu1 %v14797_v52 }
0x1255   :  { %11653 = vmatpush3.msra.mxu0 %v14798_v1  ;;  %5726 = vmatpush1.msra.mxu1 %v14799_v37 }
0x1256   :  { %11654 = vmatprep.subr.mxu0 %v14650_v18  ;;  %5732 = vmatprep.subr.mxu1 %v14800_v14 }
0x1257   :  { %11655 = vmatpush3.msra.mxu0 %v14801_v38  ;;  %5738 = vmatpush1.msra.mxu1 %v14802_v33 }
0x1258   :  { %11657 = vmatmul.mubr.f32.vlgmr.msra.gmra.mxu0 %v5127_v54  ;;  %5744 = vmatprep.subr.mxu1 %v14803_v36  ;;  %v14809_v54 = vld [vmem:[#allocation53_spill] sm:$0xff] }
0x1259   :  { %5750 = vmatpush1.msra.mxu1 %v14804_v55  ;;  %5612 = vmatprep.subr.mxu0 %v12442_v10 }
0x125a   :  { %5756 = vmatprep.subr.mxu1 %v14805_v41  ;;  %5614 = vmatpush1.msra.mxu0 %v12459_v19  ;;  %v14814_v41 = vld [vmem:[#allocation60_spill] sm:$0xff] }
0x125b   :  { %5762 = vmatpush1.msra.mxu1 %v14806_v8  ;;  %5616 = vmatprep.subr.mxu0 %v12461_v20 }
0x125c   :  { %5768 = vmatprep.subr.mxu1 %v14807_v28  ;;  %5618 = vmatpush1.msra.mxu0 %v12463_v21 }
0x125d   :  { %5774 = vmatpush1.msra.mxu1 %v14808_v32  ;;  %5620 = vmatprep.subr.mxu0 %v12508_v49 }
0x125e   :  { %5780 = vmatprep.subr.mxu1 %v14809_v54  ;;  %5622 = vmatpush1.msra.mxu0 %v12510_v50 }
0x125f   :  { %5786 = vmatpush1.msra.mxu1 %v14810_v2  ;;  %5624 = vmatprep.subr.mxu0 %v12520_v56 }
0x1260   :  { %5792 = vmatprep.subr.mxu1 %v14811_v23  ;;  %5626 = vmatpush1.msra.mxu0 %v12528_v59 }
0x1261   :  { %5798 = vmatpush1.msra.mxu1 %v14812_v12  ;;  %5628 = vmatprep.subr.mxu0 %v12530_v60  ;;  %v14813_v12 = vld [vmem:[#allocation22_spill] sm:$0xff] }
0x1262   :  { %5831 = vmatprep.mubr.f32.mxu1 %v14650_v18  ;;  %5961 = vmatprep.subr.mxu1 %v12442_v10 }
0x1263   :  { %5630 = vmatpush1.msra.mxu0 %v12535_v62  ;;  %5675 = vmatprep.mubr.f32.mxu0 %v14650_v18 }
0x1264   :  { %5632 = vmatprep.subr.mxu0 %v12537_v63 }
0x1265   :  { %5634 = vmatpush1.msra.mxu0 %v12539_v0 }
0x1266   :  { %5636 = vmatprep.subr.mxu0 %v12611_v45 }
0x1267   :  { %5638 = vmatpush1.msra.mxu0 %v12613_v46 }
0x1268   :  { %5640 = vmatprep.subr.mxu0 %v12624_v51 }
0x1269   :  { %5642 = vmatpush1.msra.mxu0 %v12636_v53 }
0x126a   :  { %5857 = vmatprep.subr.mxu0 %v14813_v12  ;;  %v5544_v12 = vpop.permute.xlu1 %5543 }
0x12fe   :  { %v5224_v23 = vpop.f32.mrf.mxu1 }
0x1300   :  { %v11625_v2 = vpop.f32.mrf.mxu1 }
0x1306   :  { %v5381_v54 = vpop.f32.mrf.mxu1 }
0x1307   :  { %v5133_v32 = vpop.f32.mrf.mxu0 }
0x1308   :  { %v11647_v28 = vpop.f32.mrf.mxu1  ;;  %v5134_v55 = vadd.f32 %v14814_v41, %v5133_v32  ;;  %v5567_v41 = vpop.permute.xlu0 %5566 }
0x1309   :  { %v11614_v8 = vpop.f32.mrf.mxu0 }
0x130a   :  { %v5225_v38 = vadd.f32 %v5224_v23, %v5134_v55 }
0x130f   :  { %v5304_v36 = vpop.f32.mrf.mxu0 }
0x1310   :  { %v5539_v33 = vpop.f32.mrf.mxu1  ;;  %v5305_v1 = vadd.f32 %v5304_v36, %v5225_v38 }
0x1311   :  { %v11636_v14 = vpop.f32.mrf.mxu0 }
0x1312   :  { %v11669_v37 = vpop.f32.mrf.mxu1  ;;  %v5382_v52 = vadd.f32 %v5381_v54, %v5305_v1 }
0x1318   :  { %v5464_v39 = vpop.f32.mrf.mxu0 }
0x1319   :  { %v5465_v7 = vadd.f32 %v5464_v39, %v5382_v52 }
0x131a   :  { %v11658_v24 = vpop.f32.mrf.mxu0 }
0x131b   :  { %v5540_v42 = vadd.f32 %v5539_v33, %v5465_v7  ;;  %v5555_v24 = vpop.permute.xlu0 %5554 }
0x131d   :  { %v5546_v43 = vadd.f32 %v5544_v12, %v5540_v42  ;;  %v5557_v7 = vadd.f32 %v5555_v24, %v5540_v42  ;;  %v14817_v24 = vld [vmem:[#allocation24_spill] sm:$0xff] }
0x131f   :  { %v11055_v2 = vmul.f32 -1.442695, %v5546_v43  ;;  %v11056_v39 = vmul.f32 -1.442695, %v5557_v7  ;;  %v5585_v23 = vpop.permute.xlu0 %5584  ;;  %v14818_v7 = vld [vmem:[#allocation25_spill] sm:$0xff] }
0x1321   :  { %12072 = vpow2.f32 %v11055_v2 }
0x132e   :  { %v12073_v15 = vpop.eup %12072 }
0x132f   :  { %v5550_v28 = vadd.f32 1.0, %v12073_v15 }
0x1331   :  { %12074 = vrcp.f32 %v5550_v28 }
0x133e   :  { %v12075_v8 = vpop.eup %12074 }
0x133f   :  { %v5569_v32 = vmul.f32 %v12075_v8, %v5567_v41 }
0x1341   :  { %5571 = vrot.lane.b32.xlu1 %v5569_v32, %s12334_s1 }
0x13b3   :  { %v5572_v14 = vpop.permute.xlu1 %5571 }
0x13b4   :  { %v5574_v37 = vadd.f32 %v5572_v14, %v5540_v42 }
0x13b6   :  { %12076 = vtanh.f32 %v5574_v37 }
0x13b7   :  { %12078 = vpow2.f32 %v11056_v39  ;;  %v14819_v39 = vld [vmem:[#allocation26_spill] sm:$0xff] }
0x13c3   :  { %v12077_v1 = vpop.eup %12076 }
0x13c4   :  { %5578 = vrot.lane.b32.xlu1 %v12077_v1, %s12335_s21  ;;  %v12079_v12 = vpop.eup %12078  ;;  %v14816_v1 = vld [vmem:[#allocation23_spill] sm:$0xff] }
0x13c5   :  { %v5561_v43 = vadd.f32 1.0, %v12079_v12  ;;  %v14820_v12 = vld [vmem:[#allocation27_spill] sm:$0xff] }
0x13c7   :  { %12080 = vrcp.f32 %v5561_v43  ;;  %v14821_v43 = vld [vmem:[#allocation28_spill] sm:$0xff] }
0x13d4   :  { %v12081_v15 = vpop.eup %12080 }
0x13d5   :  { %v5576_v52 = vsub.f32 1.0, %v12081_v15  ;;  %v5582_v36 = vmul.f32 %v12081_v15, %v13412_v30  ;;  %v14822_v15 = vld [vmem:[#allocation29_spill] sm:$0xff] }
0x1436   :  { %v5579_v38 = vpop.permute.xlu1 %5578 }
0x1437   :  { %v5581_v33 = vmul.f32 %v5579_v38, %v5576_v52  ;;  %v14823_v52 = vld [vmem:[#allocation30_spill] sm:$0xff]  ;;  %v14824_v38 = vld [vmem:[#allocation33_spill] sm:$0xff] }
0x1439   :  { %v13609_v55 = vadd.f32 %v5582_v36, %v5581_v33  ;;  %v14825_v33 = vld [vmem:[#allocation35_spill] sm:$0xff]  ;;  %v14826_v36 = vld [vmem:[#allocation37_spill] sm:$0xff] }
0x143b   :  { %14815 = vst [vmem:[#allocation42_spill] sm:$0xff] %v13609_v55  ;;  %v5588_v54 = vrot.slane %v13609_v55, 2 }
0x143d   :  { %v5590_v2 = vsel %vm699_vm2, %v5585_v23, %v5588_v54  ;;  %v14827_v54 = vld [vmem:[#allocation39_spill] sm:$0xff]  ;;  %v14828_v23 = vld [vmem:[#allocation68_spill] sm:$0xff] }
0x143e   :  { %v5592_v28 = vrot.slane %v5590_v2, 6  ;;  %v14829_v2 = vld [vmem:[#allocation43_spill] sm:$0xff] }
0x1440   :  { %v5593_v42 = vsel %vm701_vm3, %v5592_v28, 0  ;;  %v14830_v28 = vld [vmem:[#allocation44_spill] sm:$0xff] }
0x1441   :  { %v13614_v8 = vand.u32 4294901760, %v5593_v42 }
0x1443   :  { %v5677_v41 = vsub.f32 %v5593_v42, %v13614_v8  ;;  %5833 = vmatmul.mubr.f32.vlgmr.msra.gmra.mxu1 %v13614_v8  ;;  %v14831_v42 = vld [vmem:[#allocation69_spill] sm:$0xff] }
0x1444   :  { %5963 = vmatpush1.msra.mxu1 %v12459_v19  ;;  %6024 = vmatprep.mubr.f32.mxu1 %v14650_v18 }
0x1445   :  { %5965 = vmatprep.subr.mxu1 %v12461_v20  ;;  %v5678_v32 = vand.u32 4294901760, %v5677_v41 }
0x1446   :  { %5967 = vmatpush1.msra.mxu1 %v12463_v21 }
0x1447   :  { %5969 = vmatprep.subr.mxu1 %v12508_v49  ;;  %v5679_v14 = vsub.f32 %v5677_v41, %v5678_v32 }
0x1448   :  { %5971 = vmatpush1.msra.mxu1 %v12510_v50 }
0x1449   :  { %5973 = vmatprep.subr.mxu1 %v12520_v56  ;;  %v5680_v37 = vand.u32 4294901760, %v5679_v14  ;;  %v14834_v14 = vld [vmem:[#allocation70_spill] sm:$0xff] }
0x144a   :  { %5975 = vmatpush1.msra.mxu1 %v12528_v59 }
0x144b   :  { %5977 = vmatprep.subr.mxu1 %v12530_v60  ;;  %5681 = vmatmul.mubr.f32.vlgmr.msra.gmra.mxu0 %v5680_v37  ;;  %v14835_v37 = vld [vmem:[#allocation73_spill] sm:$0xff] }
0x144c   :  { %5860 = vmatpush1.msra.mxu0 %v12481_v26  ;;  %5979 = vmatpush1.msra.mxu1 %v12535_v62 }
0x144d   :  { %5863 = vmatprep.subr.mxu0 %v12495_v34  ;;  %5981 = vmatprep.subr.mxu1 %v12537_v63 }
0x144e   :  { %5866 = vmatpush1.msra.mxu0 %v12498_v35  ;;  %5983 = vmatpush1.msra.mxu1 %v12539_v0 }
0x144f   :  { %5869 = vmatprep.subr.mxu0 %v12523_v57  ;;  %5985 = vmatprep.subr.mxu1 %v12611_v45 }
0x1450   :  { %5872 = vmatpush1.msra.mxu0 %v12526_v58  ;;  %5987 = vmatpush1.msra.mxu1 %v12613_v46 }
0x1451   :  { %5875 = vmatprep.subr.mxu0 %v12533_v61  ;;  %5989 = vmatprep.subr.mxu1 %v12624_v51 }
0x1452   :  { %5878 = vmatpush1.msra.mxu0 %v12549_v5  ;;  %5991 = vmatpush1.msra.mxu1 %v12636_v53 }
0x1453   :  { %5881 = vmatprep.subr.mxu0 %v12552_v6  ;;  %6028 = vmatmul.mubr.f32.vlgmr.msra.gmra.mxu1 %v5678_v32  ;;  %v14833_v32 = vld [vmem:[#allocation49_spill] sm:$0xff] }
0x1454   :  { %6171 = vmatprep.subr.mxu1 %v12442_v10  ;;  %5884 = vmatpush1.msra.mxu0 %v12564_v11 }
0x1455   :  { %6173 = vmatpush1.msra.mxu1 %v12459_v19  ;;  %5887 = vmatprep.subr.mxu0 %v12571_v13 }
0x1456   :  { %6175 = vmatprep.subr.mxu1 %v12461_v20  ;;  %5890 = vmatpush1.msra.mxu0 %v12581_v29 }
0x1457   :  { %6177 = vmatpush1.msra.mxu1 %v12463_v21  ;;  %5893 = vmatprep.subr.mxu0 %v12631_v4 }
0x1458   :  { %6179 = vmatprep.subr.mxu1 %v12508_v49  ;;  %5896 = vmatpush1.msra.mxu0 %v12634_v25 }
0x1459   :  { %6181 = vmatpush1.msra.mxu1 %v12510_v50  ;;  %5899 = vmatprep.subr.mxu0 %v14724_v9 }
0x145a   :  { %6183 = vmatprep.subr.mxu1 %v12520_v56  ;;  %5902 = vmatpush1.msra.mxu0 %v14770_v16 }
0x145b   :  { %5935 = vmatprep.mubr.f32.mxu0 %v14650_v18  ;;  %6185 = vmatpush1.msra.mxu1 %v12528_v59 }
0x145c   :  { %5938 = vmatmul.mubr.f32.vlgmr.msra.gmra.mxu0 %v5677_v41  ;;  %6053 = vmatprep.subr.mxu0 %v14816_v1  ;;  %v14832_v41 = vld [vmem:[#allocation47_spill] sm:$0xff] }
0x145d   :  { %6187 = vmatprep.subr.mxu1 %v12530_v60  ;;  %6057 = vmatpush1.msra.mxu0 %v14817_v24 }
0x145e   :  { %6189 = vmatpush1.msra.mxu1 %v12535_v62  ;;  %6061 = vmatprep.subr.mxu0 %v14818_v7  ;;  %v14836_v7 = vld [vmem:[#allocation58_spill] sm:$0xff] }
0x145f   :  { %6191 = vmatprep.subr.mxu1 %v12537_v63  ;;  %6065 = vmatpush1.msra.mxu0 %v14819_v39 }
0x1460   :  { %6193 = vmatpush1.msra.mxu1 %v12539_v0  ;;  %6069 = vmatprep.subr.mxu0 %v14820_v12 }
0x1461   :  { %6195 = vmatprep.subr.mxu1 %v12611_v45  ;;  %6073 = vmatpush1.msra.mxu0 %v14821_v43 }
0x1462   :  { %6197 = vmatpush1.msra.mxu1 %v12613_v46  ;;  %6077 = vmatprep.subr.mxu0 %v14822_v15 }
0x1463   :  { %6199 = vmatprep.subr.mxu1 %v12624_v51  ;;  %6081 = vmatpush1.msra.mxu0 %v14823_v52 }
0x1464   :  { %6201 = vmatpush1.msra.mxu1 %v12636_v53  ;;  %6234 = vmatprep.mubr.f32.mxu1 %v14650_v18 }
0x1465   :  { %6085 = vmatprep.subr.mxu0 %v14824_v38  ;;  %6236 = vmatmul.mubr.f32.vlgmr.msra.gmra.mxu1 %v13614_v8 }
0x1466   :  { %6089 = vmatpush1.msra.mxu0 %v14825_v33  ;;  %6146 = vmatprep.mubr.f32.mxu0 %v14650_v18 }
0x1467   :  { %6093 = vmatprep.subr.mxu0 %v14826_v36  ;;  %11681 = vmatprep.subr.mxu1 %v14650_v18 }
0x1468   :  { %6097 = vmatpush1.msra.mxu0 %v14827_v54  ;;  %11682 = vmatpush3.msra.mxu1 %v14828_v23 }
0x1469   :  { %6101 = vmatprep.subr.mxu0 %v14829_v2  ;;  %11683 = vmatprep.subr.mxu1 %v14650_v18 }
0x146a   :  { %6105 = vmatpush1.msra.mxu0 %v14830_v28  ;;  %11684 = vmatpush3.msra.mxu1 %v14831_v42 }
0x146b   :  { %6109 = vmatprep.subr.mxu0 %v14832_v41  ;;  %11685 = vmatprep.subr.mxu1 %v14650_v18 }
0x146c   :  { %6113 = vmatpush1.msra.mxu0 %v14833_v32  ;;  %11686 = vmatpush3.msra.mxu1 %v14834_v14 }
0x146d   :  { %6148 = vmatmul.mubr.f32.vlgmr.msra.gmra.mxu0 %v13614_v8  ;;  %11687 = vmatprep.subr.mxu1 %v14650_v18 }
0x146e   :  { %11688 = vmatpush3.msra.mxu1 %v14835_v37  ;;  %11670 = vmatprep.subr.mxu0 %v14650_v18 }
0x146f   :  { %11689 = vmatprep.mubr.msk.f32.mxu1 %vm12336_vm4, %v14650_v18  ;;  %11703 = vmatprep.subr.mxu1 %v14650_v18 }
0x1470   :  { %11671 = vmatpush3.msra.mxu0 %v12851_v27  ;;  %11678 = vmatprep.mubr.msk.f32.mxu0 %vm12336_vm4, %v14650_v18 }
0x1471   :  { %11672 = vmatprep.subr.mxu0 %v14650_v18 }
0x1472   :  { %11673 = vmatpush3.msra.mxu0 %v12853_v40 }
0x1473   :  { %11674 = vmatprep.subr.mxu0 %v14650_v18 }
0x1474   :  { %11675 = vmatpush3.msra.mxu0 %v12855_v17 }
0x1475   :  { %11676 = vmatprep.subr.mxu0 %v14650_v18 }
0x1476   :  { %11677 = vmatpush3.msra.mxu0 %v12901_v48 }
0x1477   :  { %11692 = vmatprep.subr.mxu0 %v14650_v18 }
0x1503   :  { %v5834_v8 = vpop.f32.mrf.mxu1 }
0x1505   :  { %v5836_v37 = vpop.f32.mrf.mxu1 }
0x150b   :  { %v5682_v30 = vpop.f32.mrf.mxu0 }
0x150c   :  { %v5835_v36 = vadd.f32 %v5834_v8, %v5682_v30 }
0x150d   :  { %v5684_v14 = vpop.f32.mrf.mxu0 }
0x150e   :  { %v5837_v32 = vadd.f32 %v5836_v37, %v5684_v14 }
0x1513   :  { %v6029_v41 = vpop.f32.mrf.mxu1 }
0x1515   :  { %v6031_v23 = vpop.f32.mrf.mxu1 }
0x151c   :  { %v5939_v42 = vpop.f32.mrf.mxu0 }
0x151d   :  { %v5940_v33 = vadd.f32 %v5939_v42, %v5835_v36 }
0x151e   :  { %v5941_v28 = vpop.f32.mrf.mxu0 }
0x151f   :  { %v5942_v2 = vadd.f32 %v5941_v28, %v5837_v32  ;;  %v6030_v38 = vadd.f32 %v6029_v41, %v5940_v33 }
0x1521   :  { %v6032_v54 = vadd.f32 %v6031_v23, %v5942_v2 }
0x1525   :  { %v6237_v43 = vpop.f32.mrf.mxu1 }
0x1527   :  { %v6239_v42 = vpop.f32.mrf.mxu1 }
0x152d   :  { %v6149_v52 = vpop.f32.mrf.mxu0 }
0x152e   :  { %v6150_v15 = vadd.f32 %v6149_v52, %v6030_v38 }
0x1530   :  { %v6238_v12 = vadd.f32 %v6237_v43, %v6150_v15 }
0x1532   :  { %v6249_v39 = vadd.f32 %v6238_v12, %v14699_v22  ;;  %v6242_v24 = vadd.f32 %v6238_v12, %v14836_v7 }
0x1534   :  { %6251 = vrot.lane.b32.xlu1 %v6249_v39, %s12334_s1  ;;  %v11057_v14 = vmul.f32 -1.442695, %v6242_v24  ;;  %v6151_v39 = vpop.f32.mrf.mxu0 }
0x1535   :  { %v6152_v24 = vadd.f32 %v6151_v39, %v6032_v54  ;;  %v14842_v39 = vld [vmem:[#allocation66_spill] sm:$0xff] }
0x1536   :  { %12082 = vpow2.f32 %v11057_v14 }
0x1537   :  { %v6240_v41 = vadd.f32 %v6239_v42, %v6152_v24  ;;  %v14843_v24 = vld [vmem:[#allocation32_spill] sm:$0xff] }
0x1538   :  { %v14849_v42 = vld [vmem:[#allocation40_spill] sm:$0xff] }
0x1539   :  { %v6782_v8 = vadd.f32 %v6240_v41, %v14701_v47 }
0x1543   :  { %v12083_v37 = vpop.eup %12082 }
0x1544   :  { %v6246_v1 = vadd.f32 1.0, %v12083_v37 }
0x1546   :  { %12084 = vrcp.f32 %v6246_v1  ;;  %v14837_v1 = vrot.slane %v13519_v31, 6 }
0x1553   :  { %v12085_v28 = vpop.eup %12084 }
0x1554   :  { %v6261_v15 = vsub.f32 1.0, %v12085_v28  ;;  %v6268_v36 = vmul.f32 %v12085_v28, %v14837_v1  ;;  %v14846_v1 = vld [vmem:[#allocation36_spill] sm:$0xff] }
0x15a6   :  { %v6252_v23 = vpop.permute.xlu1 %6251 }
0x15a7   :  { %v6254_v30 = vmul.f32 %v12085_v28, %v6252_v23 }
0x15a9   :  { %6256 = vrot.lane.b32.xlu0 %v6254_v30, %s12334_s1  ;;  %v14838_v30 = vld [vmem:[#allocation64_spill] sm:$0xff] }
0x161b   :  { %v6257_v33 = vpop.permute.xlu0 %6256 }
0x161c   :  { %v6259_v52 = vadd.f32 %v6257_v33, %v14836_v7  ;;  %v14839_v33 = vld [vmem:[#allocation71_spill] sm:$0xff] }
0x161e   :  { %12086 = vtanh.f32 %v6259_v52  ;;  %v14840_v52 = vld [vmem:[#allocation65_spill] sm:$0xff] }
0x162b   :  { %v12087_v43 = vpop.eup %12086 }
0x162c   :  { %6263 = vrot.lane.b32.xlu1 %v12087_v43, %s12335_s21  ;;  %v14841_v43 = vld [vmem:[#allocation31_spill] sm:$0xff] }
0x1630   :  { %6761 = vrot.lane.b32.xlu1 %v6238_v12, %s12322_s24 }
0x169e   :  { %v6264_v38 = vpop.permute.xlu1 %6263 }
0x169f   :  { %v6266_v2 = vmul.f32 %v6264_v38, %v6261_v15  ;;  %v14844_v15 = vld [vmem:[#allocation34_spill] sm:$0xff]  ;;  %v14845_v38 = vld [vmem:[#allocation67_spill] sm:$0xff] }
0x16a1   :  { %v13717_v32 = vadd.f32 %v6268_v36, %v6266_v2  ;;  %v14847_v36 = vld [vmem:[#allocation38_spill] sm:$0xff]  ;;  %v14848_v2 = vld [vmem:[#allocation72_spill] sm:$0xff] }
0x16a3   :  { %6271 = vrot.lane.b32.xlu0 %v13717_v32, %s12335_s21 }
0x16a7   :  { %6784 = vrot.lane.b32.xlu0 %v6782_v8, %s12335_s21  ;;  %v14851_v8 = vld [vmem:[#allocation46_spill] sm:$0xff] }
0x16ab   :  { %6772 = vrot.lane.b32.xlu0 %v6240_v41, %s12322_s24  ;;  %v14850_v41 = vld [vmem:[#allocation41_spill] sm:$0xff] }
0x1715   :  { %v13724_v12 = vpop.permute.xlu0 %6271 }
0x1716   :  { %v6273_v31 = vsel %vm699_vm2, %v13724_v12, 0 }
0x1717   :  { %v6344_v54 = vand.u32 4294901760, %v6273_v31 }
0x1719   :  { %v6345_v14 = vsub.f32 %v6273_v31, %v6344_v54  ;;  %11690 = vmatmul.mubr.f32.vlgmr.msra.gmra.mxu1 %v6344_v54  ;;  %v14852_v31 = vld [vmem:[#allocation48_spill] sm:$0xff] }
0x171a   :  { %11704 = vmatpush3.msra.mxu1 %v12851_v27  ;;  %11711 = vmatprep.mubr.msk.f32.mxu1 %vm12336_vm4, %v14650_v18 }
0x171b   :  { %v6346_v37 = vand.u32 4294901760, %v6345_v14  ;;  %11705 = vmatprep.subr.mxu1 %v14650_v18 }
0x171c   :  { %11706 = vmatpush3.msra.mxu1 %v12853_v40 }
0x171d   :  { %v6347_v28 = vsub.f32 %v6345_v14, %v6346_v37  ;;  %11707 = vmatprep.subr.mxu1 %v14650_v18 }
0x171e   :  { %11708 = vmatpush3.msra.mxu1 %v12855_v17 }
0x171f   :  { %11709 = vmatprep.subr.mxu1 %v14650_v18  ;;  %v6348_v23 = vand.u32 4294901760, %v6347_v28  ;;  %v14855_v28 = vld [vmem:[#allocation52_spill] sm:$0xff] }
0x1720   :  { %11710 = vmatpush3.msra.mxu1 %v12901_v48 }
0x1721   :  { %11712 = vmatmul.mubr.f32.vlgmr.msra.gmra.mxu1 %v6346_v37  ;;  %11725 = vmatprep.subr.mxu1 %v14650_v18  ;;  %v14854_v37 = vld [vmem:[#allocation51_spill] sm:$0xff] }
0x1722   :  { %11679 = vmatmul.mubr.f32.vlgmr.msra.gmra.mxu0 %v6348_v23  ;;  %11726 = vmatpush3.msra.mxu1 %v12851_v27  ;;  %v14857_v23 = vld [vmem:[#allocation54_spill] sm:$0xff] }
0x1723   :  { %11693 = vmatpush3.msra.mxu0 %v12859_v44  ;;  %11727 = vmatprep.subr.mxu1 %v14650_v18 }
0x1724   :  { %11694 = vmatprep.subr.mxu0 %v14650_v18  ;;  %11728 = vmatpush3.msra.mxu1 %v12853_v40 }
0x1725   :  { %11695 = vmatpush3.msra.mxu0 %v12862_v3  ;;  %11729 = vmatprep.subr.mxu1 %v14650_v18 }
0x1726   :  { %11696 = vmatprep.subr.mxu0 %v14650_v18  ;;  %11730 = vmatpush3.msra.mxu1 %v12855_v17 }
0x1727   :  { %11697 = vmatpush3.msra.mxu0 %v14838_v30  ;;  %11731 = vmatprep.subr.mxu1 %v14650_v18 }
0x1728   :  { %11698 = vmatprep.subr.mxu0 %v14650_v18  ;;  %11700 = vmatprep.mubr.msk.f32.mxu0 %vm12336_vm4, %v14650_v18 }
0x1729   :  { %11699 = vmatpush3.msra.mxu0 %v14839_v33  ;;  %11732 = vmatpush3.msra.mxu1 %v12901_v48 }
0x172a   :  { %11733 = vmatprep.mubr.msk.f32.mxu1 %vm12336_vm4, %v14650_v18  ;;  %11701 = vmatmul.mubr.f32.vlgmr.msra.gmra.mxu0 %v6345_v14  ;;  %v14853_v14 = vld [vmem:[#allocation50_spill] sm:$0xff] }
0x172b   :  { %11714 = vmatprep.subr.mxu0 %v14650_v18  ;;  %11734 = vmatmul.mubr.f32.vlgmr.msra.gmra.mxu1 %v6344_v54 }
0x172c   :  { %11715 = vmatpush3.msra.mxu0 %v14840_v52  ;;  %11722 = vmatprep.mubr.msk.f32.mxu0 %vm12336_vm4, %v14650_v18 }
0x172d   :  { %11716 = vmatprep.subr.mxu0 %v14650_v18  ;;  %6920 = vmatprep.subr.mxu1 %v14841_v43 }
0x172e   :  { %11717 = vmatpush3.msra.mxu0 %v14842_v39  ;;  %6926 = vmatpush1.msra.mxu1 %v14843_v24 }
0x172f   :  { %11718 = vmatprep.subr.mxu0 %v14650_v18  ;;  %6932 = vmatprep.subr.mxu1 %v14844_v15 }
0x1730   :  { %11719 = vmatpush3.msra.mxu0 %v14845_v38  ;;  %6938 = vmatpush1.msra.mxu1 %v14846_v1 }
0x1731   :  { %11720 = vmatprep.subr.mxu0 %v14650_v18  ;;  %6944 = vmatprep.subr.mxu1 %v14847_v36 }
0x1732   :  { %11721 = vmatpush3.msra.mxu0 %v14848_v2  ;;  %6950 = vmatpush1.msra.mxu1 %v14849_v42 }
0x1733   :  { %11723 = vmatmul.mubr.f32.vlgmr.msra.gmra.mxu0 %v6344_v54  ;;  %6956 = vmatprep.subr.mxu1 %v14850_v41  ;;  %v14856_v54 = vld [vmem:[#allocation53_spill] sm:$0xff]  ;;  %v13805_v41 = vld [vmem:[%s14492_s7] ss:$0 sm:$0xff] }
0x1734   :  { %6962 = vmatpush1.msra.mxu1 %v14851_v8  ;;  %6824 = vmatprep.subr.mxu0 %v12442_v10  ;;  %14861 = vst [vmem:[#allocation45_spill] sm:$0xff] %v13805_v41 }
0x1735   :  { %6968 = vmatprep.subr.mxu1 %v14852_v31  ;;  %6826 = vmatpush1.msra.mxu0 %v12459_v19  ;;  %v14858_v31 = vld [vmem:[#allocation55_spill] sm:$0xff] }
0x1736   :  { %6974 = vmatpush1.msra.mxu1 %v14853_v14  ;;  %6828 = vmatprep.subr.mxu0 %v12461_v20  ;;  %v14859_v14 = vld [vmem:[#allocation56_spill] sm:$0xff] }
0x1737   :  { %6980 = vmatprep.subr.mxu1 %v14854_v37  ;;  %6830 = vmatpush1.msra.mxu0 %v12463_v21 }
0x1738   :  { %6986 = vmatpush1.msra.mxu1 %v14855_v28  ;;  %6832 = vmatprep.subr.mxu0 %v12508_v49 }
0x1739   :  { %6992 = vmatprep.subr.mxu1 %v14856_v54  ;;  %6834 = vmatpush1.msra.mxu0 %v12510_v50 }
0x173a   :  { %6998 = vmatpush1.msra.mxu1 %v14857_v23  ;;  %6836 = vmatprep.subr.mxu0 %v12520_v56 }
0x173b   :  { %7004 = vmatprep.subr.mxu1 %v14858_v31  ;;  %6838 = vmatpush1.msra.mxu0 %v12528_v59 }
0x173c   :  { %7010 = vmatpush1.msra.mxu1 %v14859_v14  ;;  %6840 = vmatprep.subr.mxu0 %v12530_v60  ;;  %v14860_v14 = vld [vmem:[#allocation22_spill] sm:$0xff] }
0x173d   :  { %7043 = vmatprep.mubr.f32.mxu1 %v14650_v18  ;;  %7173 = vmatprep.subr.mxu1 %v12442_v10 }
0x173e   :  { %6842 = vmatpush1.msra.mxu0 %v12535_v62  ;;  %6887 = vmatprep.mubr.f32.mxu0 %v14650_v18 }
0x173f   :  { %6844 = vmatprep.subr.mxu0 %v12537_v63 }
0x1740   :  { %6846 = vmatpush1.msra.mxu0 %v12539_v0 }
0x1741   :  { %6848 = vmatprep.subr.mxu0 %v12611_v45 }
0x1742   :  { %6850 = vmatpush1.msra.mxu0 %v12613_v46 }
0x1743   :  { %6852 = vmatprep.subr.mxu0 %v12624_v51 }
0x1744   :  { %6854 = vmatpush1.msra.mxu0 %v12636_v53 }
0x1745   :  { %7069 = vmatprep.subr.mxu0 %v14860_v14 }
0x17d9   :  { %v6441_v31 = vpop.f32.mrf.mxu1 }
0x17db   :  { %v11691_v23 = vpop.f32.mrf.mxu1 }
0x17e1   :  { %v6598_v54 = vpop.f32.mrf.mxu1 }
0x17e2   :  { %v6350_v28 = vpop.f32.mrf.mxu0 }
0x17e3   :  { %v11713_v37 = vpop.f32.mrf.mxu1  ;;  %v6351_v42 = vadd.f32 %v13805_v41, %v6350_v28  ;;  %v6785_v28 = vpop.permute.xlu0 %6784 }
0x17e4   :  { %v11680_v8 = vpop.f32.mrf.mxu0  ;;  %v6762_v37 = vpop.permute.xlu1 %6761 }
0x17e5   :  { %v6442_v1 = vadd.f32 %v6441_v31, %v6351_v42 }
0x17ea   :  { %v6521_v2 = vpop.f32.mrf.mxu0 }
0x17eb   :  { %v6756_v36 = vpop.f32.mrf.mxu1  ;;  %v6522_v24 = vadd.f32 %v6521_v2, %v6442_v1 }
0x17ec   :  { %v11702_v38 = vpop.f32.mrf.mxu0 }
0x17ed   :  { %v11735_v15 = vpop.f32.mrf.mxu1  ;;  %v6599_v14 = vadd.f32 %v6598_v54, %v6522_v24 }
0x17f3   :  { %v6681_v39 = vpop.f32.mrf.mxu0 }
0x17f4   :  { %v6682_v23 = vadd.f32 %v6681_v39, %v6599_v14 }
0x17f5   :  { %v11724_v43 = vpop.f32.mrf.mxu0 }
0x17f6   :  { %v6757_v52 = vadd.f32 %v6756_v36, %v6682_v23  ;;  %v6773_v43 = vpop.permute.xlu0 %6772 }
0x17f8   :  { %v6764_v8 = vadd.f32 %v6762_v37, %v6757_v52  ;;  %v6775_v39 = vadd.f32 %v6773_v43, %v6757_v52  ;;  %v14868_v43 = vld [vmem:[#allocation28_spill] sm:$0xff] }
0x17fa   :  { %v11058_v33 = vmul.f32 -1.442695, %v6764_v8  ;;  %v11059_v1 = vmul.f32 -1.442695, %v6775_v39  ;;  %v14863_v8 = vld [vmem:[#allocation23_spill] sm:$0xff]  ;;  %v14869_v39 = vld [vmem:[#allocation29_spill] sm:$0xff] }
0x17fc   :  { %12088 = vpow2.f32 %v11058_v33 }
0x1809   :  { %v12089_v30 = vpop.eup %12088 }
0x180a   :  { %v6768_v3 = vadd.f32 1.0, %v12089_v30 }
0x180c   :  { %12090 = vrcp.f32 %v6768_v3 }
0x1819   :  { %v12091_v44 = vpop.eup %12090 }
0x181a   :  { %v6787_v41 = vmul.f32 %v12091_v44, %v6785_v28  ;;  %v14864_v28 = vld [vmem:[#allocation24_spill] sm:$0xff] }
0x181c   :  { %6789 = vrot.lane.b32.xlu1 %v6787_v41, %s12334_s1 }
0x188e   :  { %v6790_v38 = vpop.permute.xlu1 %6789 }
0x188f   :  { %v6792_v15 = vadd.f32 %v6790_v38, %v6757_v52  ;;  %v14865_v38 = vld [vmem:[#allocation25_spill] sm:$0xff] }
0x1891   :  { %12092 = vtanh.f32 %v6792_v15  ;;  %v14866_v15 = vld [vmem:[#allocation26_spill] sm:$0xff] }
0x1892   :  { %12094 = vpow2.f32 %v11059_v1  ;;  %v14870_v1 = vld [vmem:[#allocation30_spill] sm:$0xff] }
0x189e   :  { %v12093_v24 = vpop.eup %12092 }
0x189f   :  { %6796 = vrot.lane.b32.xlu1 %v12093_v24, %s12335_s21  ;;  %v12095_v36 = vpop.eup %12094  ;;  %v14867_v24 = vld [vmem:[#allocation27_spill] sm:$0xff] }
0x18a0   :  { %v6779_v33 = vadd.f32 1.0, %v12095_v36  ;;  %v14871_v36 = vld [vmem:[#allocation33_spill] sm:$0xff] }
0x18a2   :  { %12096 = vrcp.f32 %v6779_v33  ;;  %v14872_v33 = vld [vmem:[#allocation35_spill] sm:$0xff] }
0x18af   :  { %v12097_v30 = vpop.eup %12096 }
0x18b0   :  { %v6794_v3 = vsub.f32 1.0, %v12097_v30  ;;  %v6800_v44 = vmul.f32 %v12097_v30, %v13609_v55  ;;  %v14873_v30 = vld [vmem:[#allocation37_spill] sm:$0xff] }
0x1911   :  { %v6797_v2 = vpop.permute.xlu1 %6796 }
0x1912   :  { %v6799_v42 = vmul.f32 %v6797_v2, %v6794_v3  ;;  %v14874_v3 = vld [vmem:[#allocation39_spill] sm:$0xff]  ;;  %v14875_v2 = vld [vmem:[#allocation68_spill] sm:$0xff] }
0x1914   :  { %v13811_v41 = vadd.f32 %v6800_v44, %v6799_v42  ;;  %v14876_v42 = vld [vmem:[#allocation43_spill] sm:$0xff]  ;;  %v14877_v44 = vld [vmem:[#allocation44_spill] sm:$0xff] }
0x1916   :  { %14862 = vst [vmem:[#allocation60_spill] sm:$0xff] %v13811_v41  ;;  %v6803_v31 = vsel %vm699_vm2, %v13724_v12, %v13811_v41 }
0x1917   :  { %v6805_v14 = vsel %vm701_vm3, %v6803_v31, 0  ;;  %v14878_v31 = vld [vmem:[#allocation69_spill] sm:$0xff] }
0x1918   :  { %v13817_v52 = vand.u32 4294901760, %v6805_v14 }
0x191a   :  { %7045 = vmatmul.mubr.f32.vlgmr.msra.gmra.mxu1 %v13817_v52  ;;  %v6889_v54 = vsub.f32 %v6805_v14, %v13817_v52  ;;  %v14879_v14 = vld [vmem:[#allocation47_spill] sm:$0xff] }
0x191b   :  { %7175 = vmatpush1.msra.mxu1 %v12459_v19  ;;  %7236 = vmatprep.mubr.f32.mxu1 %v14650_v18 }
0x191c   :  { %7177 = vmatprep.subr.mxu1 %v12461_v20  ;;  %v6890_v23 = vand.u32 4294901760, %v6889_v54 }
0x191d   :  { %7179 = vmatpush1.msra.mxu1 %v12463_v21 }
0x191e   :  { %7181 = vmatprep.subr.mxu1 %v12508_v49  ;;  %v6891_v12 = vsub.f32 %v6889_v54, %v6890_v23 }
0x191f   :  { %7183 = vmatpush1.msra.mxu1 %v12510_v50 }
0x1920   :  { %7185 = vmatprep.subr.mxu1 %v12520_v56  ;;  %v6892_v37 = vand.u32 4294901760, %v6891_v12  ;;  %v14882_v12 = vld [vmem:[#allocation73_spill] sm:$0xff] }
0x1921   :  { %7187 = vmatpush1.msra.mxu1 %v12528_v59 }
0x1922   :  { %7189 = vmatprep.subr.mxu1 %v12530_v60  ;;  %6893 = vmatmul.mubr.f32.vlgmr.msra.gmra.mxu0 %v6892_v37 }
0x1923   :  { %7072 = vmatpush1.msra.mxu0 %v12481_v26  ;;  %7191 = vmatpush1.msra.mxu1 %v12535_v62 }
0x1924   :  { %7075 = vmatprep.subr.mxu0 %v12495_v34  ;;  %7193 = vmatprep.subr.mxu1 %v12537_v63 }
0x1925   :  { %7078 = vmatpush1.msra.mxu0 %v12498_v35  ;;  %7195 = vmatpush1.msra.mxu1 %v12539_v0 }
0x1926   :  { %7081 = vmatprep.subr.mxu0 %v12523_v57  ;;  %7197 = vmatprep.subr.mxu1 %v12611_v45 }
0x1927   :  { %7084 = vmatpush1.msra.mxu0 %v12526_v58  ;;  %7199 = vmatpush1.msra.mxu1 %v12613_v46 }
0x1928   :  { %7087 = vmatprep.subr.mxu0 %v12533_v61  ;;  %7201 = vmatprep.subr.mxu1 %v12624_v51 }
0x1929   :  { %7090 = vmatpush1.msra.mxu0 %v12549_v5  ;;  %7203 = vmatpush1.msra.mxu1 %v12636_v53 }
0x192a   :  { %7093 = vmatprep.subr.mxu0 %v12552_v6  ;;  %7240 = vmatmul.mubr.f32.vlgmr.msra.gmra.mxu1 %v6890_v23  ;;  %v14881_v23 = vld [vmem:[#allocation70_spill] sm:$0xff] }
0x192b   :  { %7383 = vmatprep.subr.mxu1 %v12442_v10  ;;  %7096 = vmatpush1.msra.mxu0 %v12564_v11 }
0x192c   :  { %7385 = vmatpush1.msra.mxu1 %v12459_v19  ;;  %7099 = vmatprep.subr.mxu0 %v12571_v13 }
0x192d   :  { %7387 = vmatprep.subr.mxu1 %v12461_v20  ;;  %7102 = vmatpush1.msra.mxu0 %v12581_v29 }
0x192e   :  { %7389 = vmatpush1.msra.mxu1 %v12463_v21  ;;  %7105 = vmatprep.subr.mxu0 %v12631_v4 }
0x192f   :  { %7391 = vmatprep.subr.mxu1 %v12508_v49  ;;  %7108 = vmatpush1.msra.mxu0 %v12634_v25 }
0x1930   :  { %7393 = vmatpush1.msra.mxu1 %v12510_v50  ;;  %7111 = vmatprep.subr.mxu0 %v14724_v9 }
0x1931   :  { %7395 = vmatprep.subr.mxu1 %v12520_v56  ;;  %7114 = vmatpush1.msra.mxu0 %v14770_v16 }
0x1932   :  { %7147 = vmatprep.mubr.f32.mxu0 %v14650_v18  ;;  %7397 = vmatpush1.msra.mxu1 %v12528_v59 }
0x1933   :  { %7150 = vmatmul.mubr.f32.vlgmr.msra.gmra.mxu0 %v6889_v54  ;;  %7265 = vmatprep.subr.mxu0 %v14863_v8  ;;  %v14880_v54 = vld [vmem:[#allocation49_spill] sm:$0xff] }
0x1934   :  { %7399 = vmatprep.subr.mxu1 %v12530_v60  ;;  %7269 = vmatpush1.msra.mxu0 %v14864_v28 }
0x1935   :  { %7401 = vmatpush1.msra.mxu1 %v12535_v62  ;;  %7273 = vmatprep.subr.mxu0 %v14865_v38 }
0x1936   :  { %7403 = vmatprep.subr.mxu1 %v12537_v63  ;;  %7277 = vmatpush1.msra.mxu0 %v14866_v15 }
0x1937   :  { %7405 = vmatpush1.msra.mxu1 %v12539_v0  ;;  %7281 = vmatprep.subr.mxu0 %v14867_v24 }
0x1938   :  { %7407 = vmatprep.subr.mxu1 %v12611_v45  ;;  %7285 = vmatpush1.msra.mxu0 %v14868_v43 }
0x1939   :  { %7409 = vmatpush1.msra.mxu1 %v12613_v46  ;;  %7289 = vmatprep.subr.mxu0 %v14869_v39 }
0x193a   :  { %7411 = vmatprep.subr.mxu1 %v12624_v51  ;;  %7293 = vmatpush1.msra.mxu0 %v14870_v1 }
0x193b   :  { %7413 = vmatpush1.msra.mxu1 %v12636_v53  ;;  %7446 = vmatprep.mubr.f32.mxu1 %v14650_v18 }
0x193c   :  { %7297 = vmatprep.subr.mxu0 %v14871_v36  ;;  %7448 = vmatmul.mubr.f32.vlgmr.msra.gmra.mxu1 %v13817_v52 }
0x193d   :  { %7301 = vmatpush1.msra.mxu0 %v14872_v33  ;;  %7358 = vmatprep.mubr.f32.mxu0 %v14650_v18 }
0x193e   :  { %7305 = vmatprep.subr.mxu0 %v14873_v30  ;;  %11747 = vmatprep.subr.mxu1 %v14650_v18 }
0x193f   :  { %7309 = vmatpush1.msra.mxu0 %v14874_v3  ;;  %11748 = vmatpush3.msra.mxu1 %v14875_v2 }
0x1940   :  { %7313 = vmatprep.subr.mxu0 %v14876_v42  ;;  %11749 = vmatprep.subr.mxu1 %v14650_v18 }
0x1941   :  { %7317 = vmatpush1.msra.mxu0 %v14877_v44  ;;  %11750 = vmatpush3.msra.mxu1 %v14878_v31 }
0x1942   :  { %7321 = vmatprep.subr.mxu0 %v14879_v14  ;;  %11751 = vmatprep.subr.mxu1 %v14650_v18 }
0x1943   :  { %7325 = vmatpush1.msra.mxu0 %v14880_v54  ;;  %11752 = vmatpush3.msra.mxu1 %v14881_v23 }
0x1944   :  { %7360 = vmatmul.mubr.f32.vlgmr.msra.gmra.mxu0 %v13817_v52  ;;  %11753 = vmatprep.subr.mxu1 %v14650_v18 }
0x1945   :  { %11754 = vmatpush3.msra.mxu1 %v14882_v12  ;;  %11736 = vmatprep.subr.mxu0 %v14650_v18 }
0x1946   :  { %11755 = vmatprep.mubr.msk.f32.mxu1 %vm12336_vm4, %v14650_v18  ;;  %11769 = vmatprep.subr.mxu1 %v14650_v18 }
0x1947   :  { %11737 = vmatpush3.msra.mxu0 %v12851_v27  ;;  %11744 = vmatprep.mubr.msk.f32.mxu0 %vm12336_vm4, %v14650_v18 }
0x1948   :  { %11738 = vmatprep.subr.mxu0 %v14650_v18 }
0x1949   :  { %11739 = vmatpush3.msra.mxu0 %v12853_v40 }
0x194a   :  { %11740 = vmatprep.subr.mxu0 %v14650_v18 }
0x194b   :  { %11741 = vmatpush3.msra.mxu0 %v12855_v17 }
0x194c   :  { %11742 = vmatprep.subr.mxu0 %v14650_v18 }
0x194d   :  { %11743 = vmatpush3.msra.mxu0 %v12901_v48 }
0x194e   :  { %11758 = vmatprep.subr.mxu0 %v14650_v18 }
0x19da   :  { %v7046_v52 = vpop.f32.mrf.mxu1 }
0x19dc   :  { %v7048_v55 = vpop.f32.mrf.mxu1 }
0x19e2   :  { %v6894_v37 = vpop.f32.mrf.mxu0 }
0x19e3   :  { %v7047_v3 = vadd.f32 %v7046_v52, %v6894_v37 }
0x19e4   :  { %v6896_v12 = vpop.f32.mrf.mxu0 }
0x19e5   :  { %v7049_v23 = vadd.f32 %v7048_v55, %v6896_v12 }
0x19ea   :  { %v7241_v54 = vpop.f32.mrf.mxu1 }
0x19ec   :  { %v7243_v42 = vpop.f32.mrf.mxu1 }
0x19f3   :  { %v7151_v14 = vpop.f32.mrf.mxu0 }
0x19f4   :  { %v7152_v30 = vadd.f32 %v7151_v14, %v7047_v3 }
0x19f5   :  { %v7153_v31 = vpop.f32.mrf.mxu0 }
0x19f6   :  { %v7154_v44 = vadd.f32 %v7153_v31, %v7049_v23  ;;  %v7242_v33 = vadd.f32 %v7241_v54, %v7152_v30 }
0x19f8   :  { %v7244_v2 = vadd.f32 %v7243_v42, %v7154_v44 }
0x19fc   :  { %v7449_v39 = vpop.f32.mrf.mxu1 }
0x19fe   :  { %v7451_v37 = vpop.f32.mrf.mxu1 }
0x1a04   :  { %v7361_v36 = vpop.f32.mrf.mxu0 }
0x1a05   :  { %v7362_v1 = vadd.f32 %v7361_v36, %v7242_v33 }
0x1a07   :  { %v7450_v43 = vadd.f32 %v7449_v39, %v7362_v1 }
0x1a09   :  { %v7464_v24 = vadd.f32 %v7450_v43, %v14699_v22  ;;  %v7455_v38 = vrot.slane %v7450_v43, 6 }
0x1a0b   :  { %v7466_v15 = vrot.slane %v7464_v24, 6  ;;  %v7457_v55 = vadd.f32 %v7455_v38, %v14836_v7  ;;  %v7363_v38 = vpop.f32.mrf.mxu0 }
0x1a0c   :  { %v7364_v44 = vadd.f32 %v7363_v38, %v7244_v2  ;;  %v14886_v38 = vld [vmem:[#allocation71_spill] sm:$0xff] }
0x1a0d   :  { %7467 = vrot.lane.b32.xlu0 %v7466_v15, %s12334_s1  ;;  %v11060_v12 = vmul.f32 -1.442695, %v7457_v55  ;;  %v7483_v15 = vrot.slane %v13717_v32, 6 }
0x1a0e   :  { %v7452_v55 = vadd.f32 %v7451_v37, %v7364_v44  ;;  %v14890_v44 = vld [vmem:[#allocation32_spill] sm:$0xff] }
0x1a0f   :  { %12098 = vpow2.f32 %v11060_v12  ;;  %v14893_v37 = vld [vmem:[#allocation36_spill] sm:$0xff] }
0x1a1c   :  { %v12099_v31 = vpop.eup %12098 }
0x1a1d   :  { %v7461_v23 = vadd.f32 1.0, %v12099_v31  ;;  %v7999_v31 = vadd.f32 %v7452_v55, %v14701_v47 }
0x1a1f   :  { %12100 = vrcp.f32 %v7461_v23 }
0x1a2c   :  { %v12101_v42 = vpop.eup %12100 }
0x1a2d   :  { %v7477_v1 = vsub.f32 1.0, %v12101_v42  ;;  %v7485_v14 = vmul.f32 %v12101_v42, %v7483_v15  ;;  %v14887_v15 = vld [vmem:[#allocation65_spill] sm:$0xff] }
0x1a7f   :  { %v7468_v3 = vpop.permute.xlu0 %7467 }
0x1a80   :  { %v7470_v30 = vmul.f32 %v12101_v42, %v7468_v3 }
0x1a82   :  { %7472 = vrot.lane.b32.xlu1 %v7470_v30, %s12334_s1 }
0x1af4   :  { %v7473_v36 = vpop.permute.xlu1 %7472 }
0x1af5   :  { %v7475_v39 = vadd.f32 %v7473_v36, %v14836_v7  ;;  %v14883_v36 = vld [vmem:[#allocation62_spill] sm:$0xff] }
0x1af7   :  { %12102 = vtanh.f32 %v7475_v39  ;;  %v14884_v39 = vld [vmem:[#allocation63_spill] sm:$0xff] }
0x1b04   :  { %v12103_v24 = vpop.eup %12102 }
0x1b05   :  { %7479 = vrot.lane.b32.xlu0 %v12103_v24, %s12335_s21  ;;  %v14885_v24 = vld [vmem:[#allocation64_spill] sm:$0xff] }
0x1b09   :  { %7978 = vrot.lane.b32.xlu0 %v7450_v43, %s12322_s24 }
0x1b77   :  { %v7480_v33 = vpop.permute.xlu0 %7479 }
0x1b78   :  { %v7482_v54 = vmul.f32 %v7480_v33, %v7477_v1  ;;  %v14888_v1 = vld [vmem:[#allocation31_spill] sm:$0xff]  ;;  %v14889_v33 = vld [vmem:[#allocation66_spill] sm:$0xff] }
0x1b7a   :  { %v13919_v52 = vadd.f32 %v7485_v14, %v7482_v54  ;;  %v14891_v14 = vld [vmem:[#allocation34_spill] sm:$0xff]  ;;  %v14892_v54 = vld [vmem:[#allocation67_spill] sm:$0xff] }
0x1b7c   :  { %v7488_v12 = vrot.slane %v13919_v52, 2 }
0x1b7e   :  { %7489 = vrot.lane.b32.xlu1 %v7488_v12, %s12335_s21  ;;  %v14895_v12 = vld [vmem:[#allocation72_spill] sm:$0xff] }
0x1b82   :  { %8001 = vrot.lane.b32.xlu1 %v7999_v31, %s12335_s21  ;;  %v14896_v31 = vld [vmem:[#allocation40_spill] sm:$0xff] }
0x1b86   :  { %7989 = vrot.lane.b32.xlu1 %v7452_v55, %s12322_s24  ;;  %v14894_v55 = vld [vmem:[#allocation38_spill] sm:$0xff] }
0x1b8a   :  { %8019 = vrot.lane.b32.xlu1 %v13919_v52, %s12335_s21 }
0x1bf0   :  { %v7490_v32 = vpop.permute.xlu1 %7489 }
0x1bf1   :  { %v7491_v43 = vsel %vm699_vm2, %v7490_v32, 0  ;;  %v14897_v32 = vld [vmem:[#allocation41_spill] sm:$0xff] }
0x1bf2   :  { %v7562_v2 = vand.u32 4294901760, %v7491_v43 }
0x1bf4   :  { %v7563_v23 = vsub.f32 %v7491_v43, %v7562_v2  ;;  %11756 = vmatmul.mubr.f32.vlgmr.msra.gmra.mxu1 %v7562_v2  ;;  %v14898_v43 = vld [vmem:[#allocation46_spill] sm:$0xff] }
0x1bf5   :  { %11770 = vmatpush3.msra.mxu1 %v12851_v27  ;;  %11777 = vmatprep.mubr.msk.f32.mxu1 %vm12336_vm4, %v14650_v18 }
0x1bf6   :  { %v7564_v42 = vand.u32 4294901760, %v7563_v23  ;;  %11771 = vmatprep.subr.mxu1 %v14650_v18 }
0x1bf7   :  { %11772 = vmatpush3.msra.mxu1 %v12853_v40 }
0x1bf8   :  { %v7565_v3 = vsub.f32 %v7563_v23, %v7564_v42  ;;  %11773 = vmatprep.subr.mxu1 %v14650_v18 }
0x1bf9   :  { %11774 = vmatpush3.msra.mxu1 %v12855_v17 }
0x1bfa   :  { %v7566_v30 = vand.u32 4294901760, %v7565_v3  ;;  %11775 = vmatprep.subr.mxu1 %v14650_v18  ;;  %v14901_v3 = vld [vmem:[#allocation51_spill] sm:$0xff] }
0x1bfb   :  { %11776 = vmatpush3.msra.mxu1 %v12901_v48 }
0x1bfc   :  { %11778 = vmatmul.mubr.f32.vlgmr.msra.gmra.mxu1 %v7564_v42  ;;  %11791 = vmatprep.subr.mxu1 %v14650_v18  ;;  %v14900_v42 = vld [vmem:[#allocation50_spill] sm:$0xff] }
0x1bfd   :  { %11745 = vmatmul.mubr.f32.vlgmr.msra.gmra.mxu0 %v7566_v30  ;;  %11792 = vmatpush3.msra.mxu1 %v12851_v27  ;;  %v14902_v30 = vld [vmem:[#allocation52_spill] sm:$0xff] }
0x1bfe   :  { %11759 = vmatpush3.msra.mxu0 %v14883_v36  ;;  %11793 = vmatprep.subr.mxu1 %v14650_v18 }
0x1bff   :  { %11760 = vmatprep.subr.mxu0 %v14650_v18  ;;  %11794 = vmatpush3.msra.mxu1 %v12853_v40 }
0x1c00   :  { %11761 = vmatpush3.msra.mxu0 %v14884_v39  ;;  %11795 = vmatprep.subr.mxu1 %v14650_v18 }
0x1c01   :  { %11762 = vmatprep.subr.mxu0 %v14650_v18  ;;  %11796 = vmatpush3.msra.mxu1 %v12855_v17 }
0x1c02   :  { %11763 = vmatpush3.msra.mxu0 %v14885_v24  ;;  %11797 = vmatprep.subr.mxu1 %v14650_v18 }
0x1c03   :  { %11764 = vmatprep.subr.mxu0 %v14650_v18  ;;  %11766 = vmatprep.mubr.msk.f32.mxu0 %vm12336_vm4, %v14650_v18 }
0x1c04   :  { %11765 = vmatpush3.msra.mxu0 %v14886_v38  ;;  %11798 = vmatpush3.msra.mxu1 %v12901_v48 }
0x1c05   :  { %11799 = vmatprep.mubr.msk.f32.mxu1 %vm12336_vm4, %v14650_v18  ;;  %11767 = vmatmul.mubr.f32.vlgmr.msra.gmra.mxu0 %v7563_v23  ;;  %v14899_v23 = vld [vmem:[#allocation48_spill] sm:$0xff] }
0x1c06   :  { %11780 = vmatprep.subr.mxu0 %v14650_v18  ;;  %11800 = vmatmul.mubr.f32.vlgmr.msra.gmra.mxu1 %v7562_v2 }
0x1c07   :  { %11781 = vmatpush3.msra.mxu0 %v14887_v15  ;;  %11788 = vmatprep.mubr.msk.f32.mxu0 %vm12336_vm4, %v14650_v18 }
0x1c08   :  { %11782 = vmatprep.subr.mxu0 %v14650_v18  ;;  %8143 = vmatprep.subr.mxu1 %v14888_v1 }
0x1c09   :  { %11783 = vmatpush3.msra.mxu0 %v14889_v33  ;;  %8149 = vmatpush1.msra.mxu1 %v14890_v44 }
0x1c0a   :  { %11784 = vmatprep.subr.mxu0 %v14650_v18  ;;  %8155 = vmatprep.subr.mxu1 %v14891_v14 }
0x1c0b   :  { %11785 = vmatpush3.msra.mxu0 %v14892_v54  ;;  %8161 = vmatpush1.msra.mxu1 %v14893_v37 }
0x1c0c   :  { %11786 = vmatprep.subr.mxu0 %v14650_v18  ;;  %8167 = vmatprep.subr.mxu1 %v14894_v55 }
0x1c0d   :  { %11787 = vmatpush3.msra.mxu0 %v14895_v12  ;;  %8173 = vmatpush1.msra.mxu1 %v14896_v31  ;;  %v14908_v31 = vld [vmem:[#allocation45_spill] sm:$0xff] }
0x1c0e   :  { %11789 = vmatmul.mubr.f32.vlgmr.msra.gmra.mxu0 %v7562_v2  ;;  %8179 = vmatprep.subr.mxu1 %v14897_v32  ;;  %v14903_v2 = vld [vmem:[#allocation53_spill] sm:$0xff] }
0x1c0f   :  { %8185 = vmatpush1.msra.mxu1 %v14898_v43  ;;  %8047 = vmatprep.subr.mxu0 %v12442_v10  ;;  %v14904_v43 = vld [vmem:[#allocation54_spill] sm:$0xff] }
0x1c10   :  { %8191 = vmatprep.subr.mxu1 %v14899_v23  ;;  %8049 = vmatpush1.msra.mxu0 %v12459_v19  ;;  %v14905_v23 = vld [vmem:[#allocation55_spill] sm:$0xff] }
0x1c11   :  { %8197 = vmatpush1.msra.mxu1 %v14900_v42  ;;  %8051 = vmatprep.subr.mxu0 %v12461_v20  ;;  %v14906_v42 = vld [vmem:[#allocation56_spill] sm:$0xff] }
0x1c12   :  { %8203 = vmatprep.subr.mxu1 %v14901_v3  ;;  %8053 = vmatpush1.msra.mxu0 %v12463_v21 }
0x1c13   :  { %8209 = vmatpush1.msra.mxu1 %v14902_v30  ;;  %8055 = vmatprep.subr.mxu0 %v12508_v49 }
0x1c14   :  { %8215 = vmatprep.subr.mxu1 %v14903_v2  ;;  %8057 = vmatpush1.msra.mxu0 %v12510_v50 }
0x1c15   :  { %8221 = vmatpush1.msra.mxu1 %v14904_v43  ;;  %8059 = vmatprep.subr.mxu0 %v12520_v56 }
0x1c16   :  { %8227 = vmatprep.subr.mxu1 %v14905_v23  ;;  %8061 = vmatpush1.msra.mxu0 %v12528_v59 }
0x1c17   :  { %8233 = vmatpush1.msra.mxu1 %v14906_v42  ;;  %8063 = vmatprep.subr.mxu0 %v12530_v60  ;;  %v14907_v42 = vld [vmem:[#allocation22_spill] sm:$0xff] }
0x1c18   :  { %8266 = vmatprep.mubr.f32.mxu1 %v14650_v18  ;;  %8396 = vmatprep.subr.mxu1 %v12442_v10 }
0x1c19   :  { %8065 = vmatpush1.msra.mxu0 %v12535_v62  ;;  %8110 = vmatprep.mubr.f32.mxu0 %v14650_v18 }
0x1c1a   :  { %8067 = vmatprep.subr.mxu0 %v12537_v63 }
0x1c1b   :  { %8069 = vmatpush1.msra.mxu0 %v12539_v0 }
0x1c1c   :  { %8071 = vmatprep.subr.mxu0 %v12611_v45 }
0x1c1d   :  { %8073 = vmatpush1.msra.mxu0 %v12613_v46 }
0x1c1e   :  { %8075 = vmatprep.subr.mxu0 %v12624_v51 }
0x1c1f   :  { %8077 = vmatpush1.msra.mxu0 %v12636_v53 }
0x1c20   :  { %8292 = vmatprep.subr.mxu0 %v14907_v42  ;;  %v7979_v42 = vpop.permute.xlu0 %7978 }
0x1cb4   :  { %v7659_v23 = vpop.f32.mrf.mxu1 }
0x1cb6   :  { %v11757_v43 = vpop.f32.mrf.mxu1 }
0x1cbc   :  { %v7816_v2 = vpop.f32.mrf.mxu1 }
0x1cbd   :  { %v7568_v30 = vpop.f32.mrf.mxu0 }
0x1cbe   :  { %v11779_v3 = vpop.f32.mrf.mxu1  ;;  %v7569_v12 = vadd.f32 %v14908_v31, %v7568_v30  ;;  %v8002_v31 = vpop.permute.xlu1 %8001 }
0x1cbf   :  { %v11746_v32 = vpop.f32.mrf.mxu0 }
0x1cc0   :  { %v7660_v54 = vadd.f32 %v7659_v23, %v7569_v12 }
0x1cc5   :  { %v7739_v55 = vpop.f32.mrf.mxu0 }
0x1cc6   :  { %v7974_v37 = vpop.f32.mrf.mxu1  ;;  %v7740_v33 = vadd.f32 %v7739_v55, %v7660_v54 }
0x1cc7   :  { %v11768_v14 = vpop.f32.mrf.mxu0 }
0x1cc8   :  { %v11801_v44 = vpop.f32.mrf.mxu1  ;;  %v7817_v1 = vadd.f32 %v7816_v2, %v7740_v33 }
0x1cce   :  { %v7899_v15 = vpop.f32.mrf.mxu0 }
0x1ccf   :  { %v7900_v38 = vadd.f32 %v7899_v15, %v7817_v1 }
0x1cd0   :  { %v11790_v24 = vpop.f32.mrf.mxu0 }
0x1cd1   :  { %v7975_v39 = vadd.f32 %v7974_v37, %v7900_v38  ;;  %v7990_v24 = vpop.permute.xlu1 %7989 }
0x1cd3   :  { %v7981_v36 = vadd.f32 %v7979_v42, %v7975_v39  ;;  %v7992_v38 = vadd.f32 %v7990_v24, %v7975_v39  ;;  %v14910_v24 = vld [vmem:[#allocation26_spill] sm:$0xff] }
0x1cd5   :  { %v11061_v43 = vmul.f32 -1.442695, %v7981_v36  ;;  %v11062_v15 = vmul.f32 -1.442695, %v7992_v38  ;;  %v8020_v2 = vpop.permute.xlu1 %8019  ;;  %v14911_v38 = vld [vmem:[#allocation27_spill] sm:$0xff] }
0x1cd7   :  { %12104 = vpow2.f32 %v11061_v43 }
0x1ce4   :  { %v12105_v47 = vpop.eup %12104 }
0x1ce5   :  { %v7985_v3 = vadd.f32 1.0, %v12105_v47 }
0x1ce7   :  { %12106 = vrcp.f32 %v7985_v3 }
0x1cf4   :  { %v12107_v32 = vpop.eup %12106 }
0x1cf5   :  { %v8004_v30 = vmul.f32 %v12107_v32, %v8002_v31 }
0x1cf7   :  { %8006 = vrot.lane.b32.xlu0 %v8004_v30, %s12334_s1 }
0x1d69   :  { %v8007_v14 = vpop.permute.xlu0 %8006 }
0x1d6a   :  { %v8009_v44 = vadd.f32 %v8007_v14, %v7975_v39 }
0x1d6c   :  { %12108 = vtanh.f32 %v8009_v44 }
0x1d6d   :  { %12110 = vpow2.f32 %v11062_v15  ;;  %v14912_v15 = vld [vmem:[#allocation28_spill] sm:$0xff] }
0x1d79   :  { %v12109_v33 = vpop.eup %12108 }
0x1d7a   :  { %8013 = vrot.lane.b32.xlu0 %v12109_v33, %s12335_s21  ;;  %v12111_v36 = vpop.eup %12110  ;;  %v14909_v33 = vld [vmem:[#allocation25_spill] sm:$0xff] }
0x1d7b   :  { %v7996_v1 = vadd.f32 1.0, %v12111_v36  ;;  %v14913_v36 = vld [vmem:[#allocation29_spill] sm:$0xff] }
0x1d7d   :  { %12112 = vrcp.f32 %v7996_v1  ;;  %v14914_v1 = vld [vmem:[#allocation30_spill] sm:$0xff] }
0x1d8a   :  { %v12113_v47 = vpop.eup %12112 }
0x1d8b   :  { %v8011_v54 = vsub.f32 1.0, %v12113_v47  ;;  %v8017_v12 = vmul.f32 %v12113_v47, %v13811_v41  ;;  %v14915_v47 = vld [vmem:[#allocation33_spill] sm:$0xff] }
0x1dec   :  { %v8014_v37 = vpop.permute.xlu0 %8013 }
0x1ded   :  { %v8016_v55 = vmul.f32 %v8014_v37, %v8011_v54  ;;  %v14916_v54 = vld [vmem:[#allocation35_spill] sm:$0xff]  ;;  %v14917_v37 = vld [vmem:[#allocation37_spill] sm:$0xff] }
0x1def   :  { %v14007_v23 = vadd.f32 %v8017_v12, %v8016_v55  ;;  %v14918_v55 = vld [vmem:[#allocation39_spill] sm:$0xff]  ;;  %v14919_v12 = vld [vmem:[#allocation68_spill] sm:$0xff] }
0x1df1   :  { %v8023_v42 = vrot.slane %v14007_v23, 6 }
0x1df3   :  { %v8025_v43 = vsel %vm699_vm2, %v8020_v2, %v8023_v42  ;;  %v14920_v42 = vld [vmem:[#allocation43_spill] sm:$0xff]  ;;  %v14921_v2 = vld [vmem:[#allocation44_spill] sm:$0xff] }
0x1df4   :  { %v8027_v3 = vrot.slane %v8025_v43, 2  ;;  %v14922_v43 = vld [vmem:[#allocation69_spill] sm:$0xff] }
0x1df6   :  { %v8028_v39 = vsel %vm701_vm3, %v8027_v3, 0  ;;  %v14923_v3 = vld [vmem:[#allocation47_spill] sm:$0xff] }
0x1df7   :  { %v14012_v32 = vand.u32 4294901760, %v8028_v39 }
0x1df9   :  { %v8112_v31 = vsub.f32 %v8028_v39, %v14012_v32  ;;  %8268 = vmatmul.mubr.f32.vlgmr.msra.gmra.mxu1 %v14012_v32  ;;  %v14924_v39 = vld [vmem:[#allocation49_spill] sm:$0xff] }
0x1dfa   :  { %8398 = vmatpush1.msra.mxu1 %v12459_v19  ;;  %8459 = vmatprep.mubr.f32.mxu1 %v14650_v18 }
0x1dfb   :  { %8400 = vmatprep.subr.mxu1 %v12461_v20  ;;  %v8113_v30 = vand.u32 4294901760, %v8112_v31 }
0x1dfc   :  { %8402 = vmatpush1.msra.mxu1 %v12463_v21 }
0x1dfd   :  { %8404 = vmatprep.subr.mxu1 %v12508_v49  ;;  %v8114_v14 = vsub.f32 %v8112_v31, %v8113_v30 }
0x1dfe   :  { %8406 = vmatpush1.msra.mxu1 %v12510_v50 }
0x1dff   :  { %8408 = vmatprep.subr.mxu1 %v12520_v56  ;;  %v8115_v44 = vand.u32 4294901760, %v8114_v14 }
0x1e00   :  { %8410 = vmatpush1.msra.mxu1 %v12528_v59 }
0x1e01   :  { %8412 = vmatprep.subr.mxu1 %v12530_v60  ;;  %8116 = vmatmul.mubr.f32.vlgmr.msra.gmra.mxu0 %v8115_v44 }
0x1e02   :  { %8295 = vmatpush1.msra.mxu0 %v12481_v26  ;;  %8414 = vmatpush1.msra.mxu1 %v12535_v62 }
0x1e03   :  { %8298 = vmatprep.subr.mxu0 %v12495_v34  ;;  %8416 = vmatprep.subr.mxu1 %v12537_v63 }
0x1e04   :  { %8301 = vmatpush1.msra.mxu0 %v12498_v35  ;;  %8418 = vmatpush1.msra.mxu1 %v12539_v0 }
0x1e05   :  { %8304 = vmatprep.subr.mxu0 %v12523_v57  ;;  %8420 = vmatprep.subr.mxu1 %v12611_v45 }
0x1e06   :  { %8307 = vmatpush1.msra.mxu0 %v12526_v58  ;;  %8422 = vmatpush1.msra.mxu1 %v12613_v46 }
0x1e07   :  { %8310 = vmatprep.subr.mxu0 %v12533_v61  ;;  %8424 = vmatprep.subr.mxu1 %v12624_v51 }
0x1e08   :  { %8313 = vmatpush1.msra.mxu0 %v12549_v5  ;;  %8426 = vmatpush1.msra.mxu1 %v12636_v53 }
0x1e09   :  { %8316 = vmatprep.subr.mxu0 %v12552_v6  ;;  %8463 = vmatmul.mubr.f32.vlgmr.msra.gmra.mxu1 %v8113_v30  ;;  %v14926_v30 = vld [vmem:[#allocation73_spill] sm:$0xff] }
0x1e0a   :  { %8606 = vmatprep.subr.mxu1 %v12442_v10  ;;  %8319 = vmatpush1.msra.mxu0 %v12564_v11 }
0x1e0b   :  { %8608 = vmatpush1.msra.mxu1 %v12459_v19  ;;  %8322 = vmatprep.subr.mxu0 %v12571_v13 }
0x1e0c   :  { %8610 = vmatprep.subr.mxu1 %v12461_v20  ;;  %8325 = vmatpush1.msra.mxu0 %v12581_v29 }
0x1e0d   :  { %8612 = vmatpush1.msra.mxu1 %v12463_v21  ;;  %8328 = vmatprep.subr.mxu0 %v12631_v4 }
0x1e0e   :  { %8614 = vmatprep.subr.mxu1 %v12508_v49  ;;  %8331 = vmatpush1.msra.mxu0 %v12634_v25 }
0x1e0f   :  { %8616 = vmatpush1.msra.mxu1 %v12510_v50  ;;  %8334 = vmatprep.subr.mxu0 %v14724_v9 }
0x1e10   :  { %8618 = vmatprep.subr.mxu1 %v12520_v56  ;;  %8337 = vmatpush1.msra.mxu0 %v14770_v16 }
0x1e11   :  { %8370 = vmatprep.mubr.f32.mxu0 %v14650_v18  ;;  %8620 = vmatpush1.msra.mxu1 %v12528_v59 }
0x1e12   :  { %8373 = vmatmul.mubr.f32.vlgmr.msra.gmra.mxu0 %v8112_v31  ;;  %8488 = vmatprep.subr.mxu0 %v14863_v8  ;;  %v14925_v31 = vld [vmem:[#allocation70_spill] sm:$0xff] }
0x1e13   :  { %8622 = vmatprep.subr.mxu1 %v12530_v60  ;;  %8492 = vmatpush1.msra.mxu0 %v14864_v28 }
0x1e14   :  { %8624 = vmatpush1.msra.mxu1 %v12535_v62  ;;  %8496 = vmatprep.subr.mxu0 %v14909_v33 }
0x1e15   :  { %8626 = vmatprep.subr.mxu1 %v12537_v63  ;;  %8500 = vmatpush1.msra.mxu0 %v14910_v24 }
0x1e16   :  { %8628 = vmatpush1.msra.mxu1 %v12539_v0  ;;  %8504 = vmatprep.subr.mxu0 %v14911_v38 }
0x1e17   :  { %8630 = vmatprep.subr.mxu1 %v12611_v45  ;;  %8508 = vmatpush1.msra.mxu0 %v14912_v15 }
0x1e18   :  { %8632 = vmatpush1.msra.mxu1 %v12613_v46  ;;  %8512 = vmatprep.subr.mxu0 %v14913_v36 }
0x1e19   :  { %8634 = vmatprep.subr.mxu1 %v12624_v51  ;;  %8516 = vmatpush1.msra.mxu0 %v14914_v1 }
0x1e1a   :  { %8636 = vmatpush1.msra.mxu1 %v12636_v53  ;;  %8669 = vmatprep.mubr.f32.mxu1 %v14650_v18 }
0x1e1b   :  { %8520 = vmatprep.subr.mxu0 %v14915_v47  ;;  %8671 = vmatmul.mubr.f32.vlgmr.msra.gmra.mxu1 %v14012_v32 }
0x1e1c   :  { %8524 = vmatpush1.msra.mxu0 %v14916_v54  ;;  %8581 = vmatprep.mubr.f32.mxu0 %v14650_v18 }
0x1e1d   :  { %8528 = vmatprep.subr.mxu0 %v14917_v37  ;;  %11813 = vmatprep.subr.mxu1 %v14650_v18 }
0x1e1e   :  { %8532 = vmatpush1.msra.mxu0 %v14918_v55  ;;  %11814 = vmatpush3.msra.mxu1 %v14919_v12 }
0x1e1f   :  { %8536 = vmatprep.subr.mxu0 %v14920_v42  ;;  %11815 = vmatprep.subr.mxu1 %v14650_v18 }
0x1e20   :  { %8540 = vmatpush1.msra.mxu0 %v14921_v2  ;;  %11816 = vmatpush3.msra.mxu1 %v14922_v43 }
0x1e21   :  { %8544 = vmatprep.subr.mxu0 %v14923_v3  ;;  %11817 = vmatprep.subr.mxu1 %v14650_v18 }
0x1e22   :  { %8548 = vmatpush1.msra.mxu0 %v14924_v39  ;;  %11818 = vmatpush3.msra.mxu1 %v14925_v31 }
0x1e23   :  { %8583 = vmatmul.mubr.f32.vlgmr.msra.gmra.mxu0 %v14012_v32  ;;  %11819 = vmatprep.subr.mxu1 %v14650_v18 }
0x1e24   :  { %11820 = vmatpush3.msra.mxu1 %v14926_v30  ;;  %11802 = vmatprep.subr.mxu0 %v14650_v18 }
0x1e25   :  { %11821 = vmatprep.mubr.msk.f32.mxu1 %vm12336_vm4, %v14650_v18  ;;  %11835 = vmatprep.subr.mxu1 %v14650_v18 }
0x1e26   :  { %11803 = vmatpush3.msra.mxu0 %v12851_v27  ;;  %11810 = vmatprep.mubr.msk.f32.mxu0 %vm12336_vm4, %v14650_v18 }
0x1e27   :  { %11804 = vmatprep.subr.mxu0 %v14650_v18 }
0x1e28   :  { %11805 = vmatpush3.msra.mxu0 %v12853_v40 }
0x1e29   :  { %11806 = vmatprep.subr.mxu0 %v14650_v18 }
0x1e2a   :  { %11807 = vmatpush3.msra.mxu0 %v12855_v17 }
0x1e2b   :  { %11808 = vmatprep.subr.mxu0 %v14650_v18 }
0x1e2c   :  { %11809 = vmatpush3.msra.mxu0 %v12901_v48 }
0x1e2d   :  { %11824 = vmatprep.subr.mxu0 %v14650_v18 }
0x1eb9   :  { %v8269_v32 = vpop.f32.mrf.mxu1 }
0x1ebb   :  { %v8271_v44 = vpop.f32.mrf.mxu1 }
0x1ec1   :  { %v8117_v14 = vpop.f32.mrf.mxu0 }
0x1ec2   :  { %v8270_v12 = vadd.f32 %v8269_v32, %v8117_v14 }
0x1ec3   :  { %v8119_v41 = vpop.f32.mrf.mxu0 }
0x1ec4   :  { %v8272_v30 = vadd.f32 %v8271_v44, %v8119_v41 }
0x1ec9   :  { %v8464_v31 = vpop.f32.mrf.mxu1 }
0x1ecb   :  { %v8466_v2 = vpop.f32.mrf.mxu1 }
0x1ed2   :  { %v8374_v39 = vpop.f32.mrf.mxu0 }
0x1ed3   :  { %v8375_v55 = vadd.f32 %v8374_v39, %v8270_v12 }
0x1ed4   :  { %v8376_v3 = vpop.f32.mrf.mxu0 }
0x1ed5   :  { %v8377_v43 = vadd.f32 %v8376_v3, %v8272_v30  ;;  %v8465_v37 = vadd.f32 %v8464_v31, %v8375_v55 }
0x1ed7   :  { %v8467_v42 = vadd.f32 %v8466_v2, %v8377_v43 }
0x1edb   :  { %v8672_v1 = vpop.f32.mrf.mxu1 }
0x1edd   :  { %v8674_v14 = vpop.f32.mrf.mxu1 }
0x1ee3   :  { %v8584_v54 = vpop.f32.mrf.mxu0 }
0x1ee4   :  { %v8585_v47 = vadd.f32 %v8584_v54, %v8465_v37 }
0x1ee6   :  { %v8673_v36 = vadd.f32 %v8672_v1, %v8585_v47  ;;  %v8706_v47 = vrot.slane %v13919_v52, 6 }
0x1ee8   :  { %v8687_v15 = vadd.f32 %v8673_v36, %v14699_v22  ;;  %v8678_v24 = vrot.slane %v8673_v36, 4 }
0x1eea   :  { %v8689_v38 = vrot.slane %v8687_v15, 4  ;;  %v8680_v41 = vadd.f32 %v8678_v24, %v14836_v7  ;;  %v8586_v24 = vpop.f32.mrf.mxu0 }
0x1eeb   :  { %v8587_v43 = vadd.f32 %v8586_v24, %v8467_v42  ;;  %v14931_v24 = vld [vmem:[#allocation64_spill] sm:$0xff] }
0x1eec   :  { %8690 = vrot.lane.b32.xlu0 %v8689_v38, %s12334_s1  ;;  %v11063_v44 = vmul.f32 -1.442695, %v8680_v41 }
0x1eed   :  { %v8675_v41 = vadd.f32 %v8674_v14, %v8587_v43  ;;  %v14935_v43 = vld [vmem:[#allocation66_spill] sm:$0xff]  ;;  %v14938_v14 = vld [vmem:[#allocation67_spill] sm:$0xff] }
0x1eee   :  { %12114 = vpow2.f32 %v11063_v44 }
0x1efb   :  { %v12115_v3 = vpop.eup %12114 }
0x1efc   :  { %v8684_v30 = vadd.f32 1.0, %v12115_v3  ;;  %v14928_v3 = vld [vmem:[#allocation61_spill] sm:$0xff] }
0x1efe   :  { %12116 = vrcp.f32 %v8684_v30  ;;  %v9222_v30 = vadd.f32 %v8675_v41, %v14928_v3 }
0x1f0b   :  { %v12117_v2 = vpop.eup %12116 }
0x1f0c   :  { %v8700_v38 = vsub.f32 1.0, %v12117_v2  ;;  %v8708_v39 = vmul.f32 %v12117_v2, %v8706_v47  ;;  %v14933_v47 = vld [vmem:[#allocation65_spill] sm:$0xff] }
0x1f5e   :  { %v8691_v12 = vpop.permute.xlu0 %8690 }
0x1f5f   :  { %v8693_v55 = vmul.f32 %v12117_v2, %v8691_v12 }
0x1f61   :  { %8695 = vrot.lane.b32.xlu1 %v8693_v55, %s12334_s1 }
0x1fd3   :  { %v8696_v54 = vpop.permute.xlu1 %8695 }
0x1fd4   :  { %v8698_v1 = vadd.f32 %v8696_v54, %v14836_v7 }
0x1fd6   :  { %12118 = vtanh.f32 %v8698_v1  ;;  %v14929_v1 = vld [vmem:[#allocation62_spill] sm:$0xff] }
0x1fe3   :  { %v12119_v15 = vpop.eup %12118 }
0x1fe4   :  { %8702 = vrot.lane.b32.xlu0 %v12119_v15, %s12335_s21  ;;  %v14930_v15 = vld [vmem:[#allocation63_spill] sm:$0xff] }
0x1fe8   :  { %9201 = vrot.lane.b32.xlu0 %v8673_v36, %s12322_s24 }
0x2056   :  { %v8703_v37 = vpop.permute.xlu0 %8702 }
0x2057   :  { %v8705_v31 = vmul.f32 %v8703_v37, %v8700_v38  ;;  %v14932_v38 = vld [vmem:[#allocation71_spill] sm:$0xff] }
0x2058   :  { %v14934_v37 = vld [vmem:[#allocation31_spill] sm:$0xff] }
0x2059   :  { %v14114_v32 = vadd.f32 %v8708_v39, %v8705_v31  ;;  %v14936_v39 = vld [vmem:[#allocation32_spill] sm:$0xff]  ;;  %v14937_v31 = vld [vmem:[#allocation34_spill] sm:$0xff] }
0x205b   :  { %14927 = vst [vmem:[#allocation58_spill] sm:$0xff] %v14114_v32  ;;  %v8711_v44 = vrot.slane %v14114_v32, 4 }
0x205d   :  { %8712 = vrot.lane.b32.xlu1 %v8711_v44, %s12335_s21  ;;  %v14940_v44 = vld [vmem:[#allocation38_spill] sm:$0xff] }
0x2061   :  { %9224 = vrot.lane.b32.xlu1 %v9222_v30, %s12335_s21  ;;  %v14941_v30 = vld [vmem:[#allocation72_spill] sm:$0xff] }
0x2065   :  { %9212 = vrot.lane.b32.xlu1 %v8675_v41, %s12322_s24  ;;  %v14939_v41 = vld [vmem:[#allocation36_spill] sm:$0xff] }
0x2069   :  { %9242 = vrot.lane.b32.xlu1 %v14114_v32, %s12335_s21 }
0x20cf   :  { %v8713_v52 = vpop.permute.xlu1 %8712 }
0x20d0   :  { %v8714_v36 = vsel %vm699_vm2, %v8713_v52, 0  ;;  %v14942_v52 = vld [vmem:[#allocation40_spill] sm:$0xff] }
0x20d1   :  { %v8785_v42 = vand.u32 4294901760, %v8714_v36 }
0x20d3   :  { %v8786_v2 = vsub.f32 %v8714_v36, %v8785_v42  ;;  %11822 = vmatmul.mubr.f32.vlgmr.msra.gmra.mxu1 %v8785_v42  ;;  %v14943_v36 = vld [vmem:[#allocation41_spill] sm:$0xff] }
0x20d4   :  { %11836 = vmatpush3.msra.mxu1 %v12851_v27  ;;  %11843 = vmatprep.mubr.msk.f32.mxu1 %vm12336_vm4, %v14650_v18 }
0x20d5   :  { %v8787_v12 = vand.u32 4294901760, %v8786_v2  ;;  %11837 = vmatprep.subr.mxu1 %v14650_v18 }
0x20d6   :  { %11838 = vmatpush3.msra.mxu1 %v12853_v40 }
0x20d7   :  { %v8788_v55 = vsub.f32 %v8786_v2, %v8787_v12  ;;  %11839 = vmatprep.subr.mxu1 %v14650_v18 }
0x20d8   :  { %11840 = vmatpush3.msra.mxu1 %v12855_v17 }
0x20d9   :  { %v8789_v54 = vand.u32 4294901760, %v8788_v55  ;;  %11841 = vmatprep.subr.mxu1 %v14650_v18  ;;  %v14946_v55 = vld [vmem:[#allocation50_spill] sm:$0xff] }
0x20da   :  { %11842 = vmatpush3.msra.mxu1 %v12901_v48 }
0x20db   :  { %11844 = vmatmul.mubr.f32.vlgmr.msra.gmra.mxu1 %v8787_v12  ;;  %11857 = vmatprep.subr.mxu1 %v14650_v18  ;;  %v14945_v12 = vld [vmem:[#allocation48_spill] sm:$0xff] }
0x20dc   :  { %11811 = vmatmul.mubr.f32.vlgmr.msra.gmra.mxu0 %v8789_v54  ;;  %11858 = vmatpush3.msra.mxu1 %v12851_v27  ;;  %v14947_v54 = vld [vmem:[#allocation51_spill] sm:$0xff] }
0x20dd   :  { %11825 = vmatpush3.msra.mxu0 %v14929_v1  ;;  %11859 = vmatprep.subr.mxu1 %v14650_v18 }
0x20de   :  { %11826 = vmatprep.subr.mxu0 %v14650_v18  ;;  %11860 = vmatpush3.msra.mxu1 %v12853_v40 }
0x20df   :  { %11827 = vmatpush3.msra.mxu0 %v14930_v15  ;;  %11861 = vmatprep.subr.mxu1 %v14650_v18 }
0x20e0   :  { %11828 = vmatprep.subr.mxu0 %v14650_v18  ;;  %11862 = vmatpush3.msra.mxu1 %v12855_v17 }
0x20e1   :  { %11829 = vmatpush3.msra.mxu0 %v14931_v24  ;;  %11863 = vmatprep.subr.mxu1 %v14650_v18 }
0x20e2   :  { %11830 = vmatprep.subr.mxu0 %v14650_v18  ;;  %11832 = vmatprep.mubr.msk.f32.mxu0 %vm12336_vm4, %v14650_v18 }
0x20e3   :  { %11831 = vmatpush3.msra.mxu0 %v14932_v38  ;;  %11864 = vmatpush3.msra.mxu1 %v12901_v48 }
0x20e4   :  { %11865 = vmatprep.mubr.msk.f32.mxu1 %vm12336_vm4, %v14650_v18  ;;  %11833 = vmatmul.mubr.f32.vlgmr.msra.gmra.mxu0 %v8786_v2  ;;  %v14944_v2 = vld [vmem:[#allocation46_spill] sm:$0xff] }
0x20e5   :  { %11846 = vmatprep.subr.mxu0 %v14650_v18  ;;  %11866 = vmatmul.mubr.f32.vlgmr.msra.gmra.mxu1 %v8785_v42 }
0x20e6   :  { %11847 = vmatpush3.msra.mxu0 %v14933_v47  ;;  %11854 = vmatprep.mubr.msk.f32.mxu0 %vm12336_vm4, %v14650_v18 }
0x20e7   :  { %11848 = vmatprep.subr.mxu0 %v14650_v18  ;;  %9366 = vmatprep.subr.mxu1 %v14934_v37  ;;  %v14948_v37 = vld [vmem:[#allocation52_spill] sm:$0xff] }
0x20e8   :  { %11849 = vmatpush3.msra.mxu0 %v14935_v43  ;;  %9372 = vmatpush1.msra.mxu1 %v14936_v39  ;;  %v14950_v39 = vld [vmem:[#allocation54_spill] sm:$0xff] }
0x20e9   :  { %11850 = vmatprep.subr.mxu0 %v14650_v18  ;;  %9378 = vmatprep.subr.mxu1 %v14937_v31  ;;  %v14951_v31 = vld [vmem:[#allocation55_spill] sm:$0xff] }
0x20ea   :  { %11851 = vmatpush3.msra.mxu0 %v14938_v14  ;;  %9384 = vmatpush1.msra.mxu1 %v14939_v41  ;;  %v14952_v41 = vld [vmem:[#allocation56_spill] sm:$0xff] }
0x20eb   :  { %11852 = vmatprep.subr.mxu0 %v14650_v18  ;;  %9390 = vmatprep.subr.mxu1 %v14940_v44  ;;  %v14953_v44 = vld [vmem:[#allocation22_spill] sm:$0xff] }
0x20ec   :  { %11853 = vmatpush3.msra.mxu0 %v14941_v30  ;;  %9396 = vmatpush1.msra.mxu1 %v14942_v52 }
0x20ed   :  { %11855 = vmatmul.mubr.f32.vlgmr.msra.gmra.mxu0 %v8785_v42  ;;  %9402 = vmatprep.subr.mxu1 %v14943_v36  ;;  %v14949_v42 = vld [vmem:[#allocation53_spill] sm:$0xff] }
0x20ee   :  { %9408 = vmatpush1.msra.mxu1 %v14944_v2  ;;  %9270 = vmatprep.subr.mxu0 %v12442_v10 }
0x20ef   :  { %9414 = vmatprep.subr.mxu1 %v14945_v12  ;;  %9272 = vmatpush1.msra.mxu0 %v12459_v19 }
0x20f0   :  { %9420 = vmatpush1.msra.mxu1 %v14946_v55  ;;  %9274 = vmatprep.subr.mxu0 %v12461_v20 }
0x20f1   :  { %9426 = vmatprep.subr.mxu1 %v14947_v54  ;;  %9276 = vmatpush1.msra.mxu0 %v12463_v21 }
0x20f2   :  { %9432 = vmatpush1.msra.mxu1 %v14948_v37  ;;  %9278 = vmatprep.subr.mxu0 %v12508_v49  ;;  %v14201_v37 = vld [vmem:[%s14492_s7] ss:$0 sm:$0xff]  ;;  %s12337_s7 = smov [#allocation14]  }
0x20f3   :  { %9438 = vmatprep.subr.mxu1 %v14949_v42  ;;  %9280 = vmatpush1.msra.mxu0 %v12510_v50  ;;  %14954 = vst [vmem:[#allocation23_spill] sm:$0xff] %v14201_v37  ;;  %s11022_s30 = sshll.u32 %s12337_s7, 4  ;;  %s11023_s30 = int_to_ptr.vmem [resolvable:$true] %s11022_s30 }
0x20f4   :  { %9444 = vmatpush1.msra.mxu1 %v14950_v39  ;;  %9282 = vmatprep.subr.mxu0 %v12520_v56  ;;  %s12269_s0 = scalar_lea.vmem %s11023_s30, 64  ;;  %p12274_p3 = scmp.lt.s32.totalorder %s11023_s30, %s11023_s30 }
0x20f5   :  { %9450 = vmatprep.subr.mxu1 %v14951_v31  ;;  %9284 = vmatpush1.msra.mxu0 %v12528_v59  ;;  %p12270_p2 = scmp.ne.s32.totalorder %s11023_s30, %s12269_s0  ;;  %p12275_p4 = scmp.lt.s32.totalorder %s12269_s0, %s12269_s0 }
0x20f6   :  { %9456 = vmatpush1.msra.mxu1 %v14952_v41  ;;  %9286 = vmatprep.subr.mxu0 %v12530_v60 }
0x20f7   :  { %9489 = vmatprep.mubr.f32.mxu1 %v14650_v18  ;;  %9619 = vmatprep.subr.mxu1 %v12442_v10  ;;  %p12276_p5 = por %p12275_p4, %p12274_p3 }
0x20f8   :  { %9288 = vmatpush1.msra.mxu0 %v12535_v62  ;;  %9333 = vmatprep.mubr.f32.mxu0 %v14650_v18 }
0x20f9   :  { %9290 = vmatprep.subr.mxu0 %v12537_v63  ;;  %p12277_p6 = pnand %p12276_p5, %p12270_p2 }
0x20fa   :  { %9292 = vmatpush1.msra.mxu0 %v12539_v0 }
0x20fb   :  { %9294 = vmatprep.subr.mxu0 %v12611_v45 }
0x20fc   :  { %9296 = vmatpush1.msra.mxu0 %v12613_v46 }
0x20fd   :  { %9298 = vmatprep.subr.mxu0 %v12624_v51 }
0x20fe   :  { %9300 = vmatpush1.msra.mxu0 %v12636_v53 }
0x20ff   :  { %9515 = vmatprep.subr.mxu0 %v14953_v44 }
0x2193   :  { %v8882_v52 = vpop.f32.mrf.mxu1 }
0x2195   :  { %v11823_v36 = vpop.f32.mrf.mxu1 }
0x219b   :  { %v9039_v2 = vpop.f32.mrf.mxu1 }
0x219c   :  { %v8791_v12 = vpop.f32.mrf.mxu0 }
0x219d   :  { %v11845_v55 = vpop.f32.mrf.mxu1  ;;  %v8792_v42 = vadd.f32 %v14201_v37, %v8791_v12  ;;  %v9225_v12 = vpop.permute.xlu1 %9224 }
0x219e   :  { %v11812_v54 = vpop.f32.mrf.mxu0  ;;  %v9202_v55 = vpop.permute.xlu0 %9201 }
0x219f   :  { %v8883_v41 = vadd.f32 %v8882_v52, %v8792_v42 }
0x21a4   :  { %v8962_v39 = vpop.f32.mrf.mxu0 }
0x21a5   :  { %v9197_v31 = vpop.f32.mrf.mxu1  ;;  %v8963_v43 = vadd.f32 %v8962_v39, %v8883_v41 }
0x21a6   :  { %v11834_v30 = vpop.f32.mrf.mxu0 }
0x21a7   :  { %v11867_v14 = vpop.f32.mrf.mxu1  ;;  %v9040_v44 = vadd.f32 %v9039_v2, %v8963_v43 }
0x21ad   :  { %v9122_v47 = vpop.f32.mrf.mxu0 }
0x21ae   :  { %v9123_v36 = vadd.f32 %v9122_v47, %v9040_v44 }
0x21af   :  { %v11856_v38 = vpop.f32.mrf.mxu0 }
0x21b0   :  { %v9198_v24 = vadd.f32 %v9197_v31, %v9123_v36  ;;  %v9213_v38 = vpop.permute.xlu1 %9212 }
0x21b2   :  { %v9204_v54 = vadd.f32 %v9202_v55, %v9198_v24  ;;  %v9215_v47 = vadd.f32 %v9213_v38, %v9198_v24 }
0x21b4   :  { %v11064_v15 = vmul.f32 -1.442695, %v9204_v54  ;;  %v11065_v52 = vmul.f32 -1.442695, %v9215_v47  ;;  %v9243_v41 = vpop.permute.xlu1 %9242 }
0x21b6   :  { %12120 = vpow2.f32 %v11064_v15 }
0x21c3   :  { %v12121_v1 = vpop.eup %12120 }
0x21c4   :  { %v9208_v3 = vadd.f32 1.0, %v12121_v1 }
0x21c6   :  { %12122 = vrcp.f32 %v9208_v3 }
0x21d3   :  { %v12123_v32 = vpop.eup %12122 }
0x21d4   :  { %v9227_v37 = vmul.f32 %v12123_v32, %v9225_v12 }
0x21d6   :  { %9229 = vrot.lane.b32.xlu0 %v9227_v37, %s12334_s1 }
0x2248   :  { %v9230_v30 = vpop.permute.xlu0 %9229 }
0x2249   :  { %v9232_v14 = vadd.f32 %v9230_v30, %v9198_v24 }
0x224b   :  { %12124 = vtanh.f32 %v9232_v14 }
0x224c   :  { %12126 = vpow2.f32 %v11065_v52 }
0x2258   :  { %v12125_v43 = vpop.eup %12124 }
0x2259   :  { %9236 = vrot.lane.b32.xlu0 %v12125_v43, %s12335_s21  ;;  %v12127_v2 = vpop.eup %12126 }
0x225a   :  { %v9219_v15 = vadd.f32 1.0, %v12127_v2 }
0x225c   :  { %12128 = vrcp.f32 %v9219_v15 }
0x2269   :  { %v12129_v1 = vpop.eup %12128 }
0x226a   :  { %v9234_v3 = vsub.f32 1.0, %v12129_v1  ;;  %v9240_v32 = vmul.f32 %v12129_v1, %v14007_v23 }
0x22cb   :  { %v9237_v42 = vpop.permute.xlu0 %9236 }
0x22cc   :  { %v9239_v39 = vmul.f32 %v9237_v42, %v9234_v3 }
0x22ce   :  { %v14207_v37 = vadd.f32 %v9240_v32, %v9239_v39 }
0x22d0   :  { %v9246_v31 = vrot.slane %v14207_v37, 4 }
0x22d2   :  { %v9248_v44 = vsel %vm699_vm2, %v9243_v41, %v9246_v31 }
0x22d3   :  { %v9250_v36 = vrot.slane %v9248_v44, 4 }
0x22d5   :  { %v9251_v24 = vsel %vm701_vm3, %v9250_v36, 0 }
0x22d6   :  { %v14212_v55 = vand.u32 4294901760, %v9251_v24 }
0x22d8   :  { %v9335_v54 = vsub.f32 %v9251_v24, %v14212_v55  ;;  %9491 = vmatmul.mubr.f32.vlgmr.msra.gmra.mxu1 %v14212_v55  ;;  %v14972_v24 = vld [vmem:[#allocation58_spill] sm:$0xff] }
0x22d9   :  { %9621 = vmatpush1.msra.mxu1 %v12459_v19  ;;  %9682 = vmatprep.mubr.f32.mxu1 %v14650_v18 }
0x22da   :  { %9623 = vmatprep.subr.mxu1 %v12461_v20  ;;  %v9336_v12 = vand.u32 4294901760, %v9335_v54 }
0x22db   :  { %9625 = vmatpush1.msra.mxu1 %v12463_v21 }
0x22dc   :  { %9627 = vmatprep.subr.mxu1 %v12508_v49  ;;  %v9337_v30 = vsub.f32 %v9335_v54, %v9336_v12 }
0x22dd   :  { %9629 = vmatpush1.msra.mxu1 %v12510_v50 }
0x22de   :  { %9631 = vmatprep.subr.mxu1 %v12520_v56  ;;  %v9338_v14 = vand.u32 4294901760, %v9337_v30 }
0x22df   :  { %9633 = vmatpush1.msra.mxu1 %v12528_v59 }
0x22e0   :  { %9635 = vmatprep.subr.mxu1 %v12530_v60  ;;  %9339 = vmatmul.mubr.f32.vlgmr.msra.gmra.mxu0 %v9338_v14 }
0x22e1   :  { %9518 = vmatpush1.msra.mxu0 %v12481_v26  ;;  %9637 = vmatpush1.msra.mxu1 %v12535_v62  ;;  %v14959_v26 = vld [vmem:[#allocation30_spill] sm:$0xff] }
0x22e2   :  { %9521 = vmatprep.subr.mxu0 %v12495_v34  ;;  %9639 = vmatprep.subr.mxu1 %v12537_v63  ;;  %v14960_v34 = vld [vmem:[#allocation33_spill] sm:$0xff] }
0x22e3   :  { %9524 = vmatpush1.msra.mxu0 %v12498_v35  ;;  %9641 = vmatpush1.msra.mxu1 %v12539_v0  ;;  %v14961_v35 = vld [vmem:[#allocation35_spill] sm:$0xff] }
0x22e4   :  { %9527 = vmatprep.subr.mxu0 %v12523_v57  ;;  %9643 = vmatprep.subr.mxu1 %v12611_v45  ;;  %v14965_v57 = vld [vmem:[#allocation43_spill] sm:$0xff] }
0x22e5   :  { %9530 = vmatpush1.msra.mxu0 %v12526_v58  ;;  %9645 = vmatpush1.msra.mxu1 %v12613_v46  ;;  %v14966_v58 = vld [vmem:[#allocation44_spill] sm:$0xff] }
0x22e6   :  { %9533 = vmatprep.subr.mxu0 %v12533_v61  ;;  %9647 = vmatprep.subr.mxu1 %v12624_v51  ;;  %v14969_v61 = vld [vmem:[#allocation49_spill] sm:$0xff] }
0x22e7   :  { %9536 = vmatpush1.msra.mxu0 %v12549_v5  ;;  %9649 = vmatpush1.msra.mxu1 %v12636_v53 }
0x22e8   :  { %9539 = vmatprep.subr.mxu0 %v12552_v6  ;;  %9686 = vmatmul.mubr.f32.vlgmr.msra.gmra.mxu1 %v9336_v12 }
0x22e9   :  { %9829 = vmatprep.subr.mxu1 %v12442_v10  ;;  %9542 = vmatpush1.msra.mxu0 %v12564_v11  ;;  %v14955_v10 = vld [vmem:[#allocation26_spill] sm:$0xff] }
0x22ea   :  { %9831 = vmatpush1.msra.mxu1 %v12459_v19  ;;  %9545 = vmatprep.subr.mxu0 %v12571_v13  ;;  %v14956_v19 = vld [vmem:[#allocation27_spill] sm:$0xff] }
0x22eb   :  { %9833 = vmatprep.subr.mxu1 %v12461_v20  ;;  %9548 = vmatpush1.msra.mxu0 %v12581_v29  ;;  %v14957_v20 = vld [vmem:[#allocation28_spill] sm:$0xff] }
0x22ec   :  { %9835 = vmatpush1.msra.mxu1 %v12463_v21  ;;  %9551 = vmatprep.subr.mxu0 %v12631_v4  ;;  %v14958_v21 = vld [vmem:[#allocation29_spill] sm:$0xff] }
0x22ed   :  { %9837 = vmatprep.subr.mxu1 %v12508_v49  ;;  %9554 = vmatpush1.msra.mxu0 %v12634_v25  ;;  %v14962_v49 = vld [vmem:[#allocation37_spill] sm:$0xff] }
0x22ee   :  { %9839 = vmatpush1.msra.mxu1 %v12510_v50  ;;  %9557 = vmatprep.subr.mxu0 %v14724_v9  ;;  %v14963_v50 = vld [vmem:[#allocation39_spill] sm:$0xff] }
0x22ef   :  { %9841 = vmatprep.subr.mxu1 %v12520_v56  ;;  %9560 = vmatpush1.msra.mxu0 %v14770_v16  ;;  %v14964_v56 = vld [vmem:[#allocation68_spill] sm:$0xff] }
0x22f0   :  { %9593 = vmatprep.mubr.f32.mxu0 %v14650_v18  ;;  %9843 = vmatpush1.msra.mxu1 %v12528_v59  ;;  %v14967_v59 = vld [vmem:[#allocation69_spill] sm:$0xff] }
0x22f1   :  { %9596 = vmatmul.mubr.f32.vlgmr.msra.gmra.mxu0 %v9335_v54  ;;  %9711 = vmatprep.subr.mxu0 %v14863_v8 }
0x22f2   :  { %9845 = vmatprep.subr.mxu1 %v12530_v60  ;;  %9715 = vmatpush1.msra.mxu0 %v14864_v28  ;;  %v14968_v60 = vld [vmem:[#allocation47_spill] sm:$0xff] }
0x22f3   :  { %9847 = vmatpush1.msra.mxu1 %v12535_v62  ;;  %9719 = vmatprep.subr.mxu0 %v14909_v33  ;;  %v14970_v62 = vld [vmem:[#allocation70_spill] sm:$0xff] }
0x22f4   :  { %9849 = vmatprep.subr.mxu1 %v12537_v63  ;;  %9723 = vmatpush1.msra.mxu0 %v14955_v10  ;;  %v14971_v63 = vld [vmem:[#allocation73_spill] sm:$0xff] }
0x22f5   :  { %9851 = vmatpush1.msra.mxu1 %v12539_v0  ;;  %9727 = vmatprep.subr.mxu0 %v14956_v19 }
0x22f6   :  { %9853 = vmatprep.subr.mxu1 %v12611_v45  ;;  %9731 = vmatpush1.msra.mxu0 %v14957_v20 }
0x22f7   :  { %9855 = vmatpush1.msra.mxu1 %v12613_v46  ;;  %9735 = vmatprep.subr.mxu0 %v14958_v21  ;;  %v14973_v21 = vld [vmem:[#allocation61_spill] sm:$0xff] }
0x22f8   :  { %9857 = vmatprep.subr.mxu1 %v12624_v51  ;;  %9739 = vmatpush1.msra.mxu0 %v14959_v26 }
0x22f9   :  { %9859 = vmatpush1.msra.mxu1 %v12636_v53  ;;  %9892 = vmatprep.mubr.f32.mxu1 %v14650_v18 }
0x22fa   :  { %9743 = vmatprep.subr.mxu0 %v14960_v34  ;;  %9894 = vmatmul.mubr.f32.vlgmr.msra.gmra.mxu1 %v14212_v55 }
0x22fb   :  { %9747 = vmatpush1.msra.mxu0 %v14961_v35  ;;  %9804 = vmatprep.mubr.f32.mxu0 %v14650_v18 }
0x22fc   :  { %9751 = vmatprep.subr.mxu0 %v14962_v49  ;;  %11879 = vmatprep.subr.mxu1 %v14650_v18 }
0x22fd   :  { %9755 = vmatpush1.msra.mxu0 %v14963_v50  ;;  %11880 = vmatpush3.msra.mxu1 %v14964_v56 }
0x22fe   :  { %9759 = vmatprep.subr.mxu0 %v14965_v57  ;;  %11881 = vmatprep.subr.mxu1 %v14650_v18 }
0x22ff   :  { %9763 = vmatpush1.msra.mxu0 %v14966_v58  ;;  %11882 = vmatpush3.msra.mxu1 %v14967_v59  ;;  %v14974_v59 = vld [vmem:[#allocation62_spill] sm:$0xff] }
0x2300   :  { %9767 = vmatprep.subr.mxu0 %v14968_v60  ;;  %11883 = vmatprep.subr.mxu1 %v14650_v18  ;;  %v14975_v60 = vld [vmem:[#allocation63_spill] sm:$0xff] }
0x2301   :  { %9771 = vmatpush1.msra.mxu0 %v14969_v61  ;;  %11884 = vmatpush3.msra.mxu1 %v14970_v62  ;;  %v14976_v61 = vld [vmem:[#allocation64_spill] sm:$0xff] }
0x2302   :  { %9806 = vmatmul.mubr.f32.vlgmr.msra.gmra.mxu0 %v14212_v55  ;;  %11885 = vmatprep.subr.mxu1 %v14650_v18  ;;  %v9929_v55 = vrot.slane %v14972_v24, 6  ;;  %v14981_v62 = vld [vmem:[#allocation72_spill] sm:$0xff] }
0x2303   :  { %11886 = vmatpush3.msra.mxu1 %v14971_v63  ;;  %11868 = vmatprep.subr.mxu0 %v14650_v18 }
0x2304   :  { %11887 = vmatprep.mubr.msk.f32.mxu1 %vm12336_vm4, %v14650_v18  ;;  %11901 = vmatprep.subr.mxu1 %v14650_v18 }
0x2305   :  { %11869 = vmatpush3.msra.mxu0 %v12851_v27  ;;  %11876 = vmatprep.mubr.msk.f32.mxu0 %vm12336_vm4, %v14650_v18 }
0x2306   :  { %11870 = vmatprep.subr.mxu0 %v14650_v18 }
0x2307   :  { %11871 = vmatpush3.msra.mxu0 %v12853_v40 }
0x2308   :  { %11872 = vmatprep.subr.mxu0 %v14650_v18 }
0x2309   :  { %11873 = vmatpush3.msra.mxu0 %v12855_v17 }
0x230a   :  { %11874 = vmatprep.subr.mxu0 %v14650_v18 }
0x230b   :  { %11875 = vmatpush3.msra.mxu0 %v12901_v48 }
0x230c   :  { %11890 = vmatprep.subr.mxu0 %v14650_v18 }
0x2398   :  { %v9492_v0 = vpop.f32.mrf.mxu1 }
0x239a   :  { %v9494_v6 = vpop.f32.mrf.mxu1 }
0x23a0   :  { %v9340_v5 = vpop.f32.mrf.mxu0 }
0x23a1   :  { %v9493_v53 = vadd.f32 %v9492_v0, %v9340_v5 }
0x23a2   :  { %v9342_v11 = vpop.f32.mrf.mxu0 }
0x23a3   :  { %v9495_v13 = vadd.f32 %v9494_v6, %v9342_v11 }
0x23a8   :  { %v9687_v29 = vpop.f32.mrf.mxu1 }
0x23aa   :  { %v9689_v4 = vpop.f32.mrf.mxu1 }
0x23b1   :  { %v9597_v45 = vpop.f32.mrf.mxu0 }
0x23b2   :  { %v9598_v9 = vadd.f32 %v9597_v45, %v9493_v53 }
0x23b3   :  { %v9599_v46 = vpop.f32.mrf.mxu0 }
0x23b4   :  { %v9600_v51 = vadd.f32 %v9599_v46, %v9495_v13  ;;  %v9688_v16 = vadd.f32 %v9687_v29, %v9598_v9  ;;  %v14982_v29 = vld [vmem:[#allocation23_spill] sm:$0xff] }
0x23b6   :  { %v9690_v25 = vadd.f32 %v9689_v4, %v9600_v51 }
0x23ba   :  { %v9895_v33 = vpop.f32.mrf.mxu1 }
0x23bc   :  { %v9897_v19 = vpop.f32.mrf.mxu1 }
0x23c2   :  { %v9807_v8 = vpop.f32.mrf.mxu0 }
0x23c3   :  { %v9808_v28 = vadd.f32 %v9807_v8, %v9688_v16 }
0x23c4   :  { %v9809_v44 = vpop.f32.mrf.mxu0 }
0x23c5   :  { %v9896_v43 = vadd.f32 %v9895_v33, %v9808_v28  ;;  %v9810_v12 = vadd.f32 %v9809_v44, %v9690_v25 }
0x23c7   :  { %v9910_v38 = vadd.f32 %v9896_v43, %v14699_v22  ;;  %v9901_v52 = vrot.slane %v9896_v43, 2  ;;  %v9898_v20 = vadd.f32 %v9897_v19, %v9810_v12 }
0x23c9   :  { %v9912_v47 = vrot.slane %v9910_v38, 2  ;;  %v9903_v2 = vadd.f32 %v9901_v52, %v14836_v7  ;;  %v10445_v26 = vadd.f32 %v9898_v20, %v14973_v21 }
0x23cb   :  { %9913 = vrot.lane.b32.xlu0 %v9912_v47, %s12334_s1  ;;  %v11066_v15 = vmul.f32 -1.442695, %v9903_v2 }
0x23cd   :  { %12130 = vpow2.f32 %v11066_v15 }
0x23da   :  { %v12131_v1 = vpop.eup %12130 }
0x23db   :  { %v9907_v3 = vadd.f32 1.0, %v12131_v1 }
0x23dd   :  { %12132 = vrcp.f32 %v9907_v3 }
0x23ea   :  { %v12133_v42 = vpop.eup %12132 }
0x23eb   :  { %v9923_v36 = vsub.f32 1.0, %v12133_v42  ;;  %v9931_v30 = vmul.f32 %v12133_v42, %v9929_v55 }
0x243d   :  { %v9914_v39 = vpop.permute.xlu0 %9913 }
0x243e   :  { %v9916_v32 = vmul.f32 %v12133_v42, %v9914_v39 }
0x2440   :  { %9918 = vrot.lane.b32.xlu1 %v9916_v32, %s12334_s1 }
0x24b2   :  { %v9919_v31 = vpop.permute.xlu1 %9918 }
0x24b3   :  { %v9921_v41 = vadd.f32 %v9919_v31, %v14836_v7  ;;  %v10508_v31 = vld [vmem:[#allocation11 + $0x18] sm:$0xff] }
0x24b5   :  { %12134 = vtanh.f32 %v9921_v41  ;;  %v10507_v41 = vld [vmem:[#allocation11 + $0x10] sm:$0xff] }
0x24b6   :  { %v14370_v24 = vand.u32 4294901760, %v10507_v41 }
0x24b8   :  { %v14379_v12 = vsub.f32 %v10507_v41, %v14370_v24 }
0x24ba   :  { %v10634_v19 = vand.u32 4294901760, %v14379_v12 }
0x24bc   :  { %v10635_v21 = vsub.f32 %v14379_v12, %v10634_v19 }
0x24c2   :  { %v12135_v22 = vpop.eup %12134 }
0x24c3   :  { %9925 = vrot.lane.b32.xlu0 %v12135_v22, %s12335_s21  ;;  %v10506_v22 = vld [vmem:[#allocation11 + $0x8] sm:$0xff] }
0x24c4   :  { %v14372_v55 = vand.u32 4294901760, %v10506_v22 }
0x24c7   :  { %10424 = vrot.lane.b32.xlu0 %v9896_v43, %s12322_s24 }
0x2535   :  { %v9926_v54 = vpop.permute.xlu0 %9925 }
0x2536   :  { %v9928_v14 = vmul.f32 %v9926_v54, %v9923_v36  ;;  %v14368_v36 = vand.u32 4294901760, %v10508_v31 }
0x2538   :  { %v14314_v10 = vadd.f32 %v9931_v30, %v9928_v14  ;;  %v14376_v54 = vsub.f32 %v10508_v31, %v14368_v36  ;;  %v14382_v30 = vsub.f32 %v10506_v22, %v14372_v55 }
0x2539   :  { %v10425_v38 = vpop.permute.xlu0 %10424 }
0x253a   :  { %v9934_v7 = vrot.slane %v14314_v10, 6  ;;  %v10627_v14 = vand.u32 4294901760, %v14376_v54 }
0x253c   :  { %9935 = vrot.lane.b32.xlu1 %v9934_v7, %s12335_s21  ;;  %v10628_v7 = vsub.f32 %v14376_v54, %v10627_v14 }
0x2540   :  { %10447 = vrot.lane.b32.xlu1 %v10445_v26, %s12335_s21 }
0x2544   :  { %10435 = vrot.lane.b32.xlu1 %v9898_v20, %s12322_s24  ;;  %v10641_v20 = vand.u32 4294901760, %v14382_v30 }
0x2546   :  { %v10642_v26 = vsub.f32 %v14382_v30, %v10641_v20 }
0x25ae   :  { %v9936_v34 = vpop.permute.xlu1 %9935 }
0x25af   :  { %v9937_v35 = vsel %vm699_vm2, %v9936_v34, 0  ;;  %v10629_v34 = vand.u32 4294901760, %v10628_v7 }
0x25b0   :  { %v10008_v49 = vand.u32 4294901760, %v9937_v35 }
0x25b2   :  { %v10009_v50 = vsub.f32 %v9937_v35, %v10008_v49  ;;  %11888 = vmatmul.mubr.f32.vlgmr.msra.gmra.mxu1 %v10008_v49  ;;  %v10448_v3 = vpop.permute.xlu1 %10447  ;;  %v10643_v35 = vand.u32 4294901760, %v10642_v26 }
0x25b3   :  { %11902 = vmatpush3.msra.mxu1 %v12851_v27  ;;  %11909 = vmatprep.mubr.msk.f32.mxu1 %vm12336_vm4, %v14650_v18 }
0x25b4   :  { %v10010_v56 = vand.u32 4294901760, %v10009_v50  ;;  %11903 = vmatprep.subr.mxu1 %v14650_v18 }
0x25b5   :  { %11904 = vmatpush3.msra.mxu1 %v12853_v40 }
0x25b6   :  { %v10011_v57 = vsub.f32 %v10009_v50, %v10010_v56  ;;  %11905 = vmatprep.subr.mxu1 %v14650_v18 }
0x25b7   :  { %11906 = vmatpush3.msra.mxu1 %v12855_v17 }
0x25b8   :  { %v10012_v58 = vand.u32 4294901760, %v10011_v57  ;;  %11907 = vmatprep.subr.mxu1 %v14650_v18 }
0x25b9   :  { %11908 = vmatpush3.msra.mxu1 %v12901_v48 }
0x25ba   :  { %11910 = vmatmul.mubr.f32.vlgmr.msra.gmra.mxu1 %v10010_v56  ;;  %11923 = vmatprep.subr.mxu1 %v14650_v18 }
0x25bb   :  { %11877 = vmatmul.mubr.f32.vlgmr.msra.gmra.mxu0 %v10012_v58  ;;  %11924 = vmatpush3.msra.mxu1 %v12851_v27  ;;  %v14977_v27 = vld [vmem:[#allocation71_spill] sm:$0xff] }
0x25bc   :  { %11891 = vmatpush3.msra.mxu0 %v14974_v59  ;;  %11925 = vmatprep.subr.mxu1 %v14650_v18  ;;  %v10505_v59 = vld [vmem:[#allocation11] sm:$0xff] }
0x25bd   :  { %11892 = vmatprep.subr.mxu0 %v14650_v18  ;;  %11926 = vmatpush3.msra.mxu1 %v12853_v40  ;;  %v14978_v40 = vld [vmem:[#allocation65_spill] sm:$0xff] }
0x25be   :  { %11893 = vmatpush3.msra.mxu0 %v14975_v60  ;;  %11927 = vmatprep.subr.mxu1 %v14650_v18  ;;  %v14407_v60 = vand.u32 4294901760, %v10505_v59 }
0x25bf   :  { %11894 = vmatprep.subr.mxu0 %v14650_v18  ;;  %11928 = vmatpush3.msra.mxu1 %v12855_v17  ;;  %v14979_v17 = vld [vmem:[#allocation66_spill] sm:$0xff] }
0x25c0   :  { %11895 = vmatpush3.msra.mxu0 %v14976_v61  ;;  %11929 = vmatprep.subr.mxu1 %v14650_v18  ;;  %v14410_v61 = vsub.f32 %v10505_v59, %v14407_v60 }
0x25c1   :  { %11896 = vmatprep.subr.mxu0 %v14650_v18  ;;  %11898 = vmatprep.mubr.msk.f32.mxu0 %vm12336_vm4, %v14650_v18 }
0x25c2   :  { %11897 = vmatpush3.msra.mxu0 %v14977_v27  ;;  %11930 = vmatpush3.msra.mxu1 %v12901_v48  ;;  %v14980_v48 = vld [vmem:[#allocation67_spill] sm:$0xff]  ;;  %v10648_v27 = vand.u32 4294901760, %v14410_v61 }
0x25c3   :  { %11931 = vmatprep.mubr.msk.f32.mxu1 %vm12336_vm4, %v14650_v18  ;;  %11899 = vmatmul.mubr.f32.vlgmr.msra.gmra.mxu0 %v10009_v50 }
0x25c4   :  { %11912 = vmatprep.subr.mxu0 %v14650_v18  ;;  %11932 = vmatmul.mubr.f32.vlgmr.msra.gmra.mxu1 %v10008_v49 }
0x25c5   :  { %11913 = vmatpush3.msra.mxu0 %v14978_v40  ;;  %11920 = vmatprep.mubr.msk.f32.mxu0 %vm12336_vm4, %v14650_v18  ;;  %v10649_v40 = vsub.f32 %v14410_v61, %v10648_v27 }
0x25c6   :  { %11914 = vmatprep.subr.mxu0 %v14650_v18  ;;  %11945 = vmatprep.subr.mxu1 %v14650_v18 }
0x25c7   :  { %11915 = vmatpush3.msra.mxu0 %v14979_v17  ;;  %11953 = vmatprep.mubr.msk.f32.mxu1 %vm12336_vm4, %v14650_v18  ;;  %v10650_v17 = vand.u32 4294901760, %v10649_v40 }
0x25c8   :  { %11916 = vmatprep.subr.mxu0 %v14650_v18  ;;  %11946 = vmatpush3.msra.mxu1 %v10629_v34 }
0x25c9   :  { %11917 = vmatpush3.msra.mxu0 %v14980_v48  ;;  %11947 = vmatprep.subr.mxu1 %v14650_v18 }
0x25ca   :  { %11918 = vmatprep.subr.mxu0 %v14650_v18 }
0x25cb   :  { %11919 = vmatpush3.msra.mxu0 %v14981_v62  ;;  %v14983_v62 = vld [vmem:[#allocation59_spill] sm:$0xff] }
0x25cc   :  { %11921 = vmatmul.mubr.f32.vlgmr.msra.gmra.mxu0 %v10008_v49  ;;  %11934 = vmatprep.subr.mxu0 %v14650_v18  ;;  %v10436_v49 = vpop.permute.xlu1 %10435 }
0x25cd   :  { %11942 = vmatprep.mubr.msk.f32.mxu0 %vm12336_vm4, %v14650_v18  ;;  %11935 = vmatpush3.msra.mxu0 %v14368_v36 }
0x25ce   :  { %11936 = vmatprep.subr.mxu0 %v14650_v18 }
0x25cf   :  { %11937 = vmatpush3.msra.mxu0 %v14370_v24 }
0x25d0   :  { %11938 = vmatprep.subr.mxu0 %v14650_v18 }
0x25d1   :  { %11939 = vmatpush3.msra.mxu0 %v14372_v55 }
0x25d2   :  { %11940 = vmatprep.subr.mxu0 %v14650_v18 }
0x25d3   :  { %11941 = vmatpush3.msra.mxu0 %v14407_v60 }
0x25d4   :  { %11956 = vmatprep.subr.mxu0 %v14650_v18 }
0x2672   :  { %v10105_v63 = vpop.f32.mrf.mxu1 }
0x2674   :  { %v11889_v0 = vpop.f32.mrf.mxu1 }
0x2675   :  { %v14984_v0 = vld [vmem:[#allocation74_spill] sm:$0xff] }
0x267a   :  { %v10262_v5 = vpop.f32.mrf.mxu1 }
0x267b   :  { %v10014_v6 = vpop.f32.mrf.mxu0 }
0x267c   :  { %v11911_v11 = vpop.f32.mrf.mxu1  ;;  %v10015_v45 = vadd.f32 %v14982_v29, %v10014_v6  ;;  %v14985_v6 = vld [vmem:[#allocation42_spill] sm:$0xff]  ;;  %v14986_v29 = vld [vmem:[#allocation57_spill] sm:$0xff] }
0x267d   :  { %v11878_v13 = vpop.f32.mrf.mxu0  ;;  %v10480_v11 = vrot.slane %v14985_v6, 5 }
0x267e   :  { %v10106_v4 = vadd.f32 %v10105_v63, %v10015_v45  ;;  %v10476_v63 = vrot.slane %v14983_v62, 7 }
0x2680   :  { %v10492_v45 = vsel %vm10491_vm5, %v14986_v29, %v10476_v63 }
0x2683   :  { %v10185_v46 = vpop.f32.mrf.mxu0 }
0x2684   :  { %v10420_v51 = vpop.f32.mrf.mxu1  ;;  %v10186_v9 = vadd.f32 %v10185_v46, %v10106_v4  ;;  %v14987_v46 = vld [vmem:[#allocation60_spill] sm:$0xff] }
0x2685   :  { %v11900_v25 = vpop.f32.mrf.mxu0 }
0x2686   :  { %v11933_v53 = vpop.f32.mrf.mxu1  ;;  %v10263_v16 = vadd.f32 %v10262_v5, %v10186_v9  ;;  %v10478_v5 = vrot.slane %v14984_v0, 6  ;;  %v10485_v25 = vrot.slane %v14007_v23, 3 }
0x268c   :  { %v10345_v8 = vpop.f32.mrf.mxu0 }
0x268d   :  { %v10346_v28 = vadd.f32 %v10345_v8, %v10263_v16  ;;  %v10494_v16 = vsel %vm10493_vm6, %v10492_v45, %v10478_v5  ;;  %v10487_v8 = vrot.slane %v14207_v37, 2 }
0x268e   :  { %v11922_v33 = vpop.f32.mrf.mxu0 }
0x268f   :  { %v10421_v43 = vadd.f32 %v10420_v51, %v10346_v28  ;;  %v10483_v51 = vrot.slane %v14987_v46, 4  ;;  %v10496_v33 = vsel %vm10495_vm7, %v10494_v16, %v10480_v11 }
0x2691   :  { %v10427_v47 = vadd.f32 %v10425_v38, %v10421_v43  ;;  %v10438_v50 = vadd.f32 %v10436_v49, %v10421_v43  ;;  %v10498_v38 = vsel %vm10497_vm8, %v10496_v33, %v10483_v51 }
0x2693   :  { %v11067_v52 = vmul.f32 -1.442695, %v10427_v47  ;;  %v11068_v56 = vmul.f32 -1.442695, %v10438_v50 }
0x2695   :  { %12136 = vpow2.f32 %v11067_v52  ;;  %v10500_v52 = vsel %vm10499_vm9, %v10498_v38, %v10485_v25 }
0x26a2   :  { %v12137_v2 = vpop.eup %12136 }
0x26a3   :  { %v10431_v15 = vadd.f32 1.0, %v12137_v2  ;;  %v10502_v2 = vsel %vm10501_vm11, %v10500_v52, %v10487_v8 }
0x26a5   :  { %12138 = vrcp.f32 %v10431_v15 }
0x26b2   :  { %v12139_v1 = vpop.eup %12138 }
0x26b3   :  { %v10450_v42 = vmul.f32 %v12139_v1, %v10448_v3 }
0x26b5   :  { %10452 = vrot.lane.b32.xlu0 %v10450_v42, %s12334_s1 }
0x2727   :  { %v10453_v39 = vpop.permute.xlu0 %10452 }
0x2728   :  { %v10455_v32 = vadd.f32 %v10453_v39, %v10421_v43 }
0x272a   :  { %12140 = vtanh.f32 %v10455_v32 }
0x272b   :  { %12142 = vpow2.f32 %v11068_v56 }
0x2737   :  { %v12141_v44 = vpop.eup %12140 }
0x2738   :  { %10459 = vrot.lane.b32.xlu0 %v12141_v44, %s12335_s21  ;;  %v12143_v57 = vpop.eup %12142 }
0x2739   :  { %v10442_v58 = vadd.f32 1.0, %v12143_v57 }
0x273b   :  { %12144 = vrcp.f32 %v10442_v58 }
0x273c   :  { %10465 = vrot.lane.b32.xlu0 %v14314_v10, %s12335_s21  ;;  %v10636_v10 = vand.u32 4294901760, %v10635_v21 }
0x273e   :  { %11948 = vmatpush3.msra.mxu1 %v10636_v10 }
0x273f   :  { %11949 = vmatprep.subr.mxu1 %v14650_v18 }
0x2740   :  { %11950 = vmatpush3.msra.mxu1 %v10643_v35 }
0x2741   :  { %11951 = vmatprep.subr.mxu1 %v14650_v18 }
0x2742   :  { %11952 = vmatpush3.msra.mxu1 %v10650_v17 }
0x2743   :  { %11967 = vmatprep.subr.mxu1 %v14650_v18 }
0x2748   :  { %v12145_v48 = vpop.eup %12144 }
0x2749   :  { %v10457_v13 = vsub.f32 1.0, %v12145_v48  ;;  %v10463_v9 = vmul.f32 %v12145_v48, %v14207_v37 }
0x27aa   :  { %v10460_v4 = vpop.permute.xlu0 %10459 }
0x27ab   :  { %v10462_v53 = vmul.f32 %v10460_v4, %v10457_v13 }
0x27ad   :  { %v10464_v28 = vadd.f32 %v10463_v9, %v10462_v53 }
0x27ae   :  { %v10466_v43 = vpop.permute.xlu0 %10465 }
0x27af   :  { %v10489_v47 = vrot.slane %v10464_v28, 1  ;;  %10469 = vst.msk [vmem:[#allocation14 - $0x6] sm:$0xc0] %vm10468_vm10, %v10466_v43 }
0x27b1   :  { %v10504_v23 = vsel %vm10503_vm12, %v10502_v2, %v10489_v47 }
0x27b2   :  { %10517 = vrot.lane.b32.xlu1 %v10504_v23, %s12335_s21 }
0x27b6   :  { %10471 = vrot.lane.b32.xlu1 %v10464_v28, %s12335_s21 }
0x2824   :  { %v10518_v15 = vpop.permute.xlu1 %10517 }
0x2825   :  { %v10519_v37 = vsel %vm699_vm2, %v10518_v15, 0 }
0x2826   :  { %v10590_v1 = vand.u32 4294901760, %v10519_v37 }
0x2828   :  { %v10591_v3 = vsub.f32 %v10519_v37, %v10590_v1  ;;  %11954 = vmatmul.mubr.f32.vlgmr.msra.gmra.mxu1 %v10590_v1  ;;  %v10472_v42 = vpop.permute.xlu1 %10471 }
0x2829   :  { %11968 = vmatpush3.msra.mxu1 %v14368_v36  ;;  %10475 = vst.msk [vmem:[#allocation14 + $0x2] sm:$0x3] %vm130_vm0, %v10472_v42  ;;  %11975 = vmatprep.mubr.msk.f32.mxu1 %vm12336_vm4, %v14650_v18 }
0x282a   :  { %v10592_v39 = vand.u32 4294901760, %v10591_v3  ;;  %11969 = vmatprep.subr.mxu1 %v14650_v18 }
0x282b   :  { %11970 = vmatpush3.msra.mxu1 %v14370_v24 }
0x282c   :  { %v10593_v32 = vsub.f32 %v10591_v3, %v10592_v39  ;;  %11971 = vmatprep.subr.mxu1 %v14650_v18 }
0x282d   :  { %11972 = vmatpush3.msra.mxu1 %v14372_v55 }
0x282e   :  { %v10594_v31 = vand.u32 4294901760, %v10593_v32  ;;  %11973 = vmatprep.subr.mxu1 %v14650_v18 }
0x282f   :  { %11974 = vmatpush3.msra.mxu1 %v14407_v60 }
0x2830   :  { %11976 = vmatmul.mubr.f32.vlgmr.msra.gmra.mxu1 %v10592_v39  ;;  %11989 = vmatprep.subr.mxu1 %v14650_v18 }
0x2831   :  { %11943 = vmatmul.mubr.f32.vlgmr.msra.gmra.mxu0 %v10594_v31  ;;  %11990 = vmatpush3.msra.mxu1 %v14368_v36 }
0x2832   :  { %11957 = vmatpush3.msra.mxu0 %v14376_v54  ;;  %11991 = vmatprep.subr.mxu1 %v14650_v18 }
0x2833   :  { %11958 = vmatprep.subr.mxu0 %v14650_v18  ;;  %11992 = vmatpush3.msra.mxu1 %v14370_v24 }
0x2834   :  { %11959 = vmatpush3.msra.mxu0 %v14379_v12  ;;  %11993 = vmatprep.subr.mxu1 %v14650_v18 }
0x2835   :  { %11960 = vmatprep.subr.mxu0 %v14650_v18  ;;  %11994 = vmatpush3.msra.mxu1 %v14372_v55 }
0x2836   :  { %11961 = vmatpush3.msra.mxu0 %v14382_v30  ;;  %11995 = vmatprep.subr.mxu1 %v14650_v18 }
0x2837   :  { %11962 = vmatprep.subr.mxu0 %v14650_v18  ;;  %11964 = vmatprep.mubr.msk.f32.mxu0 %vm12336_vm4, %v14650_v18 }
0x2838   :  { %11963 = vmatpush3.msra.mxu0 %v14410_v61  ;;  %11996 = vmatpush3.msra.mxu1 %v14407_v60 }
0x2839   :  { %11997 = vmatprep.mubr.msk.f32.mxu1 %vm12336_vm4, %v14650_v18  ;;  %11965 = vmatmul.mubr.f32.vlgmr.msra.gmra.mxu0 %v10591_v3 }
0x283a   :  { %11978 = vmatprep.subr.mxu0 %v14650_v18  ;;  %11998 = vmatmul.mubr.f32.vlgmr.msra.gmra.mxu1 %v10590_v1 }
0x283b   :  { %11979 = vmatpush3.msra.mxu0 %v10627_v14  ;;  %11986 = vmatprep.mubr.msk.f32.mxu0 %vm12336_vm4, %v14650_v18 }
0x283c   :  { %11980 = vmatprep.subr.mxu0 %v14650_v18 }
0x283d   :  { %11981 = vmatpush3.msra.mxu0 %v10634_v19 }
0x283e   :  { %11982 = vmatprep.subr.mxu0 %v14650_v18 }
0x283f   :  { %11983 = vmatpush3.msra.mxu0 %v10641_v20 }
0x2840   :  { %11984 = vmatprep.subr.mxu0 %v14650_v18 }
0x2841   :  { %11985 = vmatpush3.msra.mxu0 %v10648_v27 }
0x2842   :  { %11987 = vmatmul.mubr.f32.vlgmr.msra.gmra.mxu0 %v10590_v1 }
0x2843   :  { %12280 = shalt.err (!%p12277_p6)
}
0x2844   :  { %11028 = dma.vmem_to_hbm [thread:$0]  %s11023_s30, 64, %s14497_s12, [#allocation15], %s12322_s24, %s12322_s24, %s12323_s25  }
0x2845   :  { %v11069_v55 = vld [vmem:[%s14495_s10] ss:$0 sm:$0xff]  ;;  %s12338_s12 = smov [#allocation13]  }
0x2846   :  { %s11013_s24 = sshll.u32 %s12338_s12, 4  ;;  %s11014_s24 = int_to_ptr.vmem [resolvable:$true] %s11013_s24 }
0x2847   :  { %s12289_s25 = scalar_lea.vmem %s11014_s24, 128  ;;  %p12294_p8 = scmp.lt.s32.totalorder %s11014_s24, %s11014_s24 }
0x2848   :  { %p12290_p7 = scmp.ne.s32.totalorder %s11014_s24, %s12289_s25  ;;  %p12295_p9 = scmp.lt.s32.totalorder %s12289_s25, %s12289_s25 }
0x284a   :  { %p12296_p10 = por %p12295_p9, %p12294_p8 }
0x284c   :  { %p12297_p11 = pnand %p12296_p10, %p12290_p7 }
0x28e8   :  { %v10687_v18 = vpop.f32.mrf.mxu1 }
0x28ea   :  { %v11955_v41 = vpop.f32.mrf.mxu1 }
0x28f0   :  { %v10844_v22 = vpop.f32.mrf.mxu1 }
0x28f1   :  { %v10596_v44 = vpop.f32.mrf.mxu0 }
0x28f2   :  { %v11977_v36 = vpop.f32.mrf.mxu1  ;;  %v10597_v54 = vadd.f32 %v11069_v55, %v10596_v44 }
0x28f3   :  { %v11944_v24 = vpop.f32.mrf.mxu0 }
0x28f4   :  { %v10688_v14 = vadd.f32 %v10687_v18, %v10597_v54 }
0x28f9   :  { %v10767_v12 = vpop.f32.mrf.mxu0 }
0x28fa   :  { %v11002_v30 = vpop.f32.mrf.mxu1  ;;  %v10768_v7 = vadd.f32 %v10767_v12, %v10688_v14 }
0x28fb   :  { %v11966_v19 = vpop.f32.mrf.mxu0 }
0x28fc   :  { %v11999_v20 = vpop.f32.mrf.mxu1  ;;  %v10845_v21 = vadd.f32 %v10844_v22, %v10768_v7 }
0x2902   :  { %v10927_v26 = vpop.f32.mrf.mxu0 }
0x2903   :  { %v10928_v34 = vadd.f32 %v10927_v26, %v10845_v21 }
0x2904   :  { %v11988_v10 = vpop.f32.mrf.mxu0 }
0x2905   :  { %v11003_v35 = vadd.f32 %v11002_v30, %v10928_v34 }
0x2907   :  { %11006 = vst [vmem:[#allocation13] sm:$0xff] %v11003_v35 }
0x2908   :  { %12300 = shalt.err (!%p12297_p11)
}
0x2909   :  { %11016 = dma.vmem_to_hbm [thread:$0]  %s11014_s24, 128, %s14496_s11, [#allocation4]  }
0x290a   :  { %12317 = dma.done.wait [#allocation4], 128  }
0x290b   :  { %12318 = vsyncadd [#allocation4], 4294967168 }
0x290c   :  { %12319 = dma.done.wait [#allocation15], 64  }
0x290d   :  { %12320 = vsyncadd [#allocation15], 4294967232 }
0x290e   :  { %11035 = vsyncpa [#allocation3], 1 }
0x290f   :  { %11036 = vsyncpa [#allocation6], 1 }
0x2910   :  { %11037 = vsyncpa [#allocation9], 1 }
0x2911   :  { %11038 = vsyncpa [#allocation12], 1 }
0x2912   :  { %11039 = vsyncpa [#allocation4], 1 }
0x2913   :  { %11040 = vsyncpa [#allocation15], 1 }

</bundles_post_ra>
